<compile_context>
chip_gen: v6e
topology: v6e:2x2x1
jax: 0.10.0
libtpu: 0.0.40
codegen_flags: <defaults>
</compile_context>

<pallas_src>
from functools import partial

import numpy as np
import jax
import jax.numpy as jnp
from jax.experimental import pallas as pl
from jax.experimental.pallas import tpu as pltpu


# ----------------------------------------------------------------------------
# Model config (matches the PyTorch module at small shapes)
# ----------------------------------------------------------------------------
INPUT_DIM = (16, 16, 4)                 # (H, W, C); input_dim[-1] = in channels
ENC_FILTERS = [8, 16]
ENC_KSIZE = [3, 3]
ENC_STRIDES = [2, 2]
ENC_PAD = [1, 1]
DEC_T_FILTERS = [16, 8, 4]
DEC_T_KSIZE = [3, 3]
DEC_T_STRIDES = [2, 2]
DEC_PAD = [1, 1]
DEC_OUT_PAD = [1, 1]
Z_DIM = 32

LEAKY_SLOPE = 0.01                      # nn.LeakyReLU default


# ----------------------------------------------------------------------------
# The single fused Pallas kernel: 4 x (matmul + bias + activation), all in VMEM
# ----------------------------------------------------------------------------
def make_fused_forward(acts, bias_offsets, bias_sizes):
    """Build the pallas_call wrapper for a fixed layer stack (all static config)."""
    n = len(acts)

    def kernel(x_ref, *rest):
        # rest = (W0..W{n-1} bf16, bias_all f32 (1, sum Dout), o_ref)
        wrefs = rest[:n]
        b_ref, o_ref = rest[n], rest[n + 1]
        h = x_ref[...].astype(jnp.bfloat16)                    # (B, Din0)
        for li in range(n):
            w = wrefs[li][...]                                 # (Din, Dout) bf16
            off, sz = bias_offsets[li], bias_sizes[li]         # static, 128-aligned
            b = b_ref[:, off:off + sz]                         # (1, Dout) f32
            y = jnp.dot(h, w, preferred_element_type=jnp.float32) + b
            act = acts[li]
            if act == "leaky_relu":
                a = jnp.maximum(y, LEAKY_SLOPE * y)            # 2 VPU ops
            elif act == "sigmoid":
                e = jnp.exp(-y)                                # EUP
                a = pl.reciprocal(1.0 + e, approx=True)        # EUP, off the VALU
            else:
                a = y
            # cast to bf16 right after the epilogue so the next matmul LHS is ready
            h = a.astype(jnp.bfloat16) if li + 1 < n else a
        o_ref[...] = h.astype(o_ref.dtype)

    def fwd(x2d, weights, bias_all):
        B = x2d.shape[0]
        d_out = int(weights[-1].shape[1])
        flops = 2 * B * sum(int(w.shape[0]) * int(w.shape[1]) for w in weights)
        bytes_accessed = (x2d.size * x2d.dtype.itemsize
                          + sum(int(w.size) * 2 for w in weights)    # bf16 weights
                          + int(bias_all.size) * 4
                          + B * d_out * 4)
        ce = pl.CostEstimate(flops=flops,
                             transcendentals=2 * B * d_out,          # exp + recip
                             bytes_accessed=bytes_accessed)
        return pl.pallas_call(
            kernel,
            out_shape=jax.ShapeDtypeStruct((B, d_out), jnp.float32),
            in_specs=[pl.BlockSpec(memory_space=pltpu.MemorySpace.VMEM)] * (n + 2),
            out_specs=pl.BlockSpec(memory_space=pltpu.MemorySpace.VMEM),
            cost_estimate=ce,
        )(x2d, *weights, bias_all)

    return fwd


# ----------------------------------------------------------------------------
# Build-time lowering of conv / conv-transpose to dense matrices (one-time cost)
# ----------------------------------------------------------------------------
def _flat_index(order, c, h, w, H, W, C):
    if order == "nchw":
        return c * (H * W) + h * W + w
    return (h * W + w) * C + c                              # "nhwc"


def _conv2d_matrix(w, stride, pad, Hin, Win, in_order, out_order):
    """Dense T s.t. flat_out = flat_in @ T equals PyTorch Conv2d(w, stride, pad)."""
    Cout, Cin, K, _ = w.shape
    OH = (Hin + 2 * pad - K) // stride + 1
    OW = (Win + 2 * pad - K) // stride + 1
    oh, ow, kh, kw, ci, co = [g.ravel() for g in np.meshgrid(
        np.arange(OH), np.arange(OW), np.arange(K), np.arange(K),
        np.arange(Cin), np.arange(Cout), indexing="ij")]
    ih = oh * stride + kh - pad
    iw = ow * stride + kw - pad
    valid = (ih >= 0) & (ih < Hin) & (iw >= 0) & (iw < Win)
    oh, ow, kh, kw, ci, co, ih, iw = (a[valid] for a in (oh, ow, kh, kw, ci, co, ih, iw))
    din = _flat_index(in_order, ci, ih, iw, Hin, Win, Cin)
    dout = _flat_index(out_order, co, oh, ow, OH, OW, Cout)
    T = jnp.zeros((Cin * Hin * Win, Cout * OH * OW), jnp.float32)
    T = T.at[din, dout].set(w[co, ci, kh, kw])
    return T, OH, OW


def _convT2d_matrix(w, stride, pad, out_pad, Hin, Win, in_order, out_order):
    """Dense T for PyTorch ConvTranspose2d; w: (Cin, Cout, K, K)."""
    Cin, Cout, K, _ = w.shape
    OH = (Hin - 1) * stride - 2 * pad + K + out_pad
    OW = (Win - 1) * stride - 2 * pad + K + out_pad
    ih, iw, kh, kw, ci, co = [g.ravel() for g in np.meshgrid(
        np.arange(Hin), np.arange(Win), np.arange(K), np.arange(K),
        np.arange(Cin), np.arange(Cout), indexing="ij")]
    oh = ih * stride + kh - pad
    ow = iw * stride + kw - pad
    valid = (oh >= 0) & (oh < OH) & (ow >= 0) & (ow < OW)
    ih, iw, kh, kw, ci, co, oh, ow = (a[valid] for a in (ih, iw, kh, kw, ci, co, oh, ow))
    din = _flat_index(in_order, ci, ih, iw, Hin, Win, Cin)
    dout = _flat_index(out_order, co, oh, ow, OH, OW, Cout)
    T = jnp.zeros((Cin * Hin * Win, Cout * OH * OW), jnp.float32)
    T = T.at[din, dout].set(w[ci, co, kh, kw])
    return T, OH, OW


def _bias_vec(b, OH, OW, order):
    v = jnp.repeat(b, OH * OW) if order == "nchw" else jnp.tile(b, OH * OW)
    return v.reshape(1, -1).astype(jnp.float32)


def _uniform(key, shape, fan_in):
    bound = 1.0 / np.sqrt(fan_in)
    return jax.random.uniform(key, shape, jnp.float32, -bound, bound)


def build_model(key):
    """Returns (jitted forward fn, (weights, bias_all) pytree, torch-layout raw weights)."""
    keys = iter(jax.random.split(key, 16))
    H, W, C = INPUT_DIM[0], INPUT_DIM[1], INPUT_DIM[2]

    Ws_f32, biases, acts = [], [], []
    raw = {"enc": [], "dec": []}

    # ---- encoder: Conv2d + LeakyReLU stack (first layer consumes NCHW-flat input) ----
    in_order = "nchw"
    for i, Cout in enumerate(ENC_FILTERS):
        K, s, p = ENC_KSIZE[i], ENC_STRIDES[i], ENC_PAD[i]
        fan_in = C * K * K
        w = _uniform(next(keys), (Cout, C, K, K), fan_in)
        b = _uniform(next(keys), (Cout,), fan_in)
        raw["enc"].append((w, b, s, p))
        T, OH, OW = _conv2d_matrix(w, s, p, H, W, in_order, "nhwc")
        Ws_f32.append(T)
        biases.append(_bias_vec(b, OH, OW, "nhwc"))
        acts.append("leaky_relu")
        H, W, C, in_order = OH, OW, Cout, "nhwc"

    shape_pre_flatten = (C, H, W)                 # torch (C,H,W) = (16,4,4)
    flat_dim = C * H * W

    # permutation: internal NHWC-flat position -> torch NCHW-flat position
    hh, ww, cc = np.meshgrid(np.arange(H), np.arange(W), np.arange(C), indexing="ij")
    perm = (cc * (H * W) + hh * W + ww).ravel()

    # ---- raw fc1 / fc2 (torch layouts: W.T so flat_in @ W = torch Linear) ----
    wf1 = _uniform(next(keys), (flat_dim, Z_DIM), flat_dim)
    bf1 = _uniform(next(keys), (Z_DIM,), flat_dim)
    wf2 = _uniform(next(keys), (Z_DIM, flat_dim), Z_DIM)
    bf2 = _uniform(next(keys), (flat_dim,), Z_DIM)
    raw["fc1_w"], raw["fc1_b"] = wf1, bf1
    raw["fc2_w"], raw["fc2_b"] = wf2, bf2
    raw["pre_flatten"] = shape_pre_flatten

    M_fc1 = wf1[perm, :]                          # (flat, z)   rows in NHWC order
    M_fc2 = wf2[:, perm]                          # (z, flat)   cols in NHWC order
    b_fc2p = bf2[perm]

    # ---- decoder ConvTranspose2d Toeplitz matrices ----
    n_layers = len(DEC_T_FILTERS)
    dec_mats = []
    Hd, Wd = H, W
    for i in range(1, n_layers):
        cin_t, cout_t = DEC_T_FILTERS[i - 1], DEC_T_FILTERS[i]
        K, s = DEC_T_KSIZE[i - 1], DEC_T_STRIDES[i - 1]
        p, op = DEC_PAD[i - 1], DEC_OUT_PAD[i - 1]
        fan_in = cout_t * K * K                   # PyTorch ConvTranspose2d fan_in
        w = _uniform(next(keys), (cin_t, cout_t, K, K), fan_in)
        b = _uniform(next(keys), (cout_t,), fan_in)
        raw["dec"].append((w, b, s, p, op))
        last = i == n_layers - 1
        out_order = "nchw" if last else "nhwc"    # bake NCHW back-permute into last matrix
        T, OH, OW = _convT2d_matrix(w, s, p, op, Hd, Wd, "nhwc", out_order)
        dec_mats.append((T, _bias_vec(b, OH, OW, out_order), last))
        Hd, Wd = OH, OW
        Cd = cout_t

    # ---- build-time fusion: fc1 -> fc2 -> convT1 (no activations between), f32 compose ----
    T_ct1, b_ct1, _ = dec_mats[0]
    W_fused = M_fc1 @ M_fc2 @ T_ct1                               # (flat, 512) f32
    b_fused = (bf1 @ M_fc2 + b_fc2p).reshape(1, -1) @ T_ct1 + b_ct1
    Ws_f32.append(W_fused)
    biases.append(b_fused)
    acts.append("leaky_relu")                                     # convT1's epilogue

    # ---- remaining decoder layer(s): just convT2 (Sigmoid, NCHW-flat output) ----
    for T, bvec, last in dec_mats[1:]:
        Ws_f32.append(T)
        biases.append(bvec)
        acts.append("sigmoid" if last else "leaky_relu")

    out_chw = (Cd, Hd, Wd)

    # bf16 weights (cast AFTER the f32 composition), one concatenated f32 bias buffer
    weights = [w.astype(jnp.bfloat16) for w in Ws_f32]
    bias_sizes = tuple(int(b.shape[1]) for b in biases)           # (512, 256, 512, 1024)
    bias_offsets = tuple(int(o) for o in np.cumsum((0,) + bias_sizes)[:-1])  # 128-aligned
    bias_all = jnp.concatenate(biases, axis=1)                    # (1, 2304) f32
    acts = tuple(acts)

    fwd2d = make_fused_forward(acts, bias_offsets, bias_sizes)

    def forward(x_nchw, weights, bias_all):
        B = x_nchw.shape[0]
        y2d = fwd2d(x_nchw.reshape(B, -1), weights, bias_all)     # NCHW-flat out
        return y2d.reshape(B, *out_chw)

    return jax.jit(forward), (weights, bias_all), raw


# ----------------------------------------------------------------------------
# Pure-XLA reference (f32, torch-layout weights) — used only to validate the kernel
# ----------------------------------------------------------------------------
def _leaky(x):
    return jnp.where(x >= 0.0, x, LEAKY_SLOPE * x)


def reference_forward(x, raw):
    h = x
    for w, b, s, p in raw["enc"]:
        h = jax.lax.conv_general_dilated(
            h, w, window_strides=(s, s), padding=[(p, p), (p, p)],
            dimension_numbers=("NCHW", "OIHW", "NCHW"))
        h = _leaky(h + b[None, :, None, None])
    B = h.shape[0]
    z = h.reshape(B, -1) @ raw["fc1_w"] + raw["fc1_b"]
    y = z @ raw["fc2_w"] + raw["fc2_b"]
    h = y.reshape(B, *raw["pre_flatten"])
    n = len(raw["dec"])
    for i, (w, b, s, p, op) in enumerate(raw["dec"]):
        K = w.shape[2]
        w_conv = w[:, :, ::-1, ::-1].transpose(1, 0, 2, 3)          # (Cout,Cin,K,K)
        h = jax.lax.conv_general_dilated(
            h, w_conv, window_strides=(1, 1),
            padding=[(K - 1 - p, K - 1 - p + op)] * 2,
            lhs_dilation=(s, s),
            dimension_numbers=("NCHW", "OIHW", "NCHW"))
        h = h + b[None, :, None, None]
        h = jax.nn.sigmoid(h) if i == n - 1 else _leaky(h)
    return h


if __name__ == "__main__":
    key = jax.random.PRNGKey(0)
    k_x, k_p = jax.random.split(key)
    # NCHW input, matching PyTorch: (B=2, C=4, H=16, W=16)
    x = jax.random.normal(k_x, (2, INPUT_DIM[-1], INPUT_DIM[0], INPUT_DIM[1]),
                          dtype=jnp.float32)

    forward, params, raw = build_model(k_p)
    weights, bias_all = params
    out = jax.block_until_ready(forward(x, weights, bias_all))

    assert out.shape == (2, INPUT_DIM[-1], INPUT_DIM[0], INPUT_DIM[1]), out.shape
    assert bool(jnp.all(jnp.isfinite(out)))
    # final Sigmoid (approx-reciprocal may overshoot 1.0 by ~1e-3 at most)
    assert bool(jnp.all((out >= 0.0) & (out <= 1.0 + 1e-3)))

    # numerical check vs pure-XLA reference (bf16 kernel weights -> loose tolerance)
    ref = jax.block_until_ready(reference_forward(x, raw))  # eager: static pads/strides
    max_err = float(jnp.max(jnp.abs(out - ref)))
    assert max_err < 5e-2, f"mismatch vs reference: {max_err}"

    print("KERNEL_OK")
</pallas_src>

<mosaic_0001>
module attributes {stable_mosaic.version = 11 : i64} {
  func.func @kernel(%arg0: memref<2x1024xf32, #tpu.memory_space<vmem>>, %arg1: memref<1024x512xbf16, #tpu.memory_space<vmem>>, %arg2: memref<512x256xbf16, #tpu.memory_space<vmem>>, %arg3: memref<256x512xbf16, #tpu.memory_space<vmem>>, %arg4: memref<512x1024xbf16, #tpu.memory_space<vmem>>, %arg5: memref<1x2304xf32, #tpu.memory_space<vmem>>, %arg6: memref<2x1024xf32, #tpu.memory_space<vmem>>) attributes {dimension_semantics = [], scalar_prefetch = 0 : i64, scratch_operands = 0 : i64, tpu.core_type = #tpu.core_type<tc>} {
    %c0 = arith.constant 0 : index
    %c0_0 = arith.constant 0 : index
    %0 = vector.load %arg0[%c0, %c0_0] : memref<2x1024xf32, #tpu.memory_space<vmem>>, vector<2x1024xf32>
    %1 = arith.truncf %0 : vector<2x1024xf32> to vector<2x1024xbf16>
    %c0_1 = arith.constant 0 : index
    %c0_2 = arith.constant 0 : index
    %2 = vector.load %arg1[%c0_1, %c0_2] : memref<1024x512xbf16, #tpu.memory_space<vmem>>, vector<1024x512xbf16>
    %c0_3 = arith.constant 0 : index
    %c0_4 = arith.constant 0 : index
    %3 = vector.load %arg5[%c0_3, %c0_4] : memref<1x2304xf32, #tpu.memory_space<vmem>>, vector<1x512xf32>
    %cst = arith.constant dense<0.000000e+00> : vector<2x512xf32>
    %4 = tpu.matmul %1, %2, %cst {dimension_numbers = #tpu.dot_dimension_numbers<[1], [0], [0], [1], [0, 0, 1, 1], [], []>} : vector<2x1024xbf16>, vector<1024x512xbf16>, vector<2x512xf32> -> vector<2x512xf32>
    %5 = vector.broadcast %3 : vector<1x512xf32> to vector<2x512xf32>
    %6 = arith.addf %4, %5 : vector<2x512xf32>
    %cst_5 = arith.constant 0.00999999977 : f32
    %7 = vector.broadcast %cst_5 : f32 to vector<2x512xf32>
    %8 = arith.mulf %7, %6 : vector<2x512xf32>
    %9 = arith.maximumf %6, %8 : vector<2x512xf32>
    %10 = arith.truncf %9 : vector<2x512xf32> to vector<2x512xbf16>
    %c0_6 = arith.constant 0 : index
    %c0_7 = arith.constant 0 : index
    %11 = vector.load %arg2[%c0_6, %c0_7] : memref<512x256xbf16, #tpu.memory_space<vmem>>, vector<512x256xbf16>
    %c0_8 = arith.constant 0 : index
    %c512 = arith.constant 512 : index
    %12 = vector.load %arg5[%c0_8, %c512] : memref<1x2304xf32, #tpu.memory_space<vmem>>, vector<1x256xf32>
    %cst_9 = arith.constant dense<0.000000e+00> : vector<2x256xf32>
    %13 = tpu.matmul %10, %11, %cst_9 {dimension_numbers = #tpu.dot_dimension_numbers<[1], [0], [0], [1], [0, 0, 1, 1], [], []>} : vector<2x512xbf16>, vector<512x256xbf16>, vector<2x256xf32> -> vector<2x256xf32>
    %14 = vector.broadcast %12 : vector<1x256xf32> to vector<2x256xf32>
    %15 = arith.addf %13, %14 : vector<2x256xf32>
    %cst_10 = arith.constant 0.00999999977 : f32
    %16 = vector.broadcast %cst_10 : f32 to vector<2x256xf32>
    %17 = arith.mulf %16, %15 : vector<2x256xf32>
    %18 = arith.maximumf %15, %17 : vector<2x256xf32>
    %19 = arith.truncf %18 : vector<2x256xf32> to vector<2x256xbf16>
    %c0_11 = arith.constant 0 : index
    %c0_12 = arith.constant 0 : index
    %20 = vector.load %arg3[%c0_11, %c0_12] : memref<256x512xbf16, #tpu.memory_space<vmem>>, vector<256x512xbf16>
    %c0_13 = arith.constant 0 : index
    %c768 = arith.constant 768 : index
    %21 = vector.load %arg5[%c0_13, %c768] : memref<1x2304xf32, #tpu.memory_space<vmem>>, vector<1x512xf32>
    %cst_14 = arith.constant dense<0.000000e+00> : vector<2x512xf32>
    %22 = tpu.matmul %19, %20, %cst_14 {dimension_numbers = #tpu.dot_dimension_numbers<[1], [0], [0], [1], [0, 0, 1, 1], [], []>} : vector<2x256xbf16>, vector<256x512xbf16>, vector<2x512xf32> -> vector<2x512xf32>
    %23 = vector.broadcast %21 : vector<1x512xf32> to vector<2x512xf32>
    %24 = arith.addf %22, %23 : vector<2x512xf32>
    %cst_15 = arith.constant 0.00999999977 : f32
    %25 = vector.broadcast %cst_15 : f32 to vector<2x512xf32>
    %26 = arith.mulf %25, %24 : vector<2x512xf32>
    %27 = arith.maximumf %24, %26 : vector<2x512xf32>
    %28 = arith.truncf %27 : vector<2x512xf32> to vector<2x512xbf16>
    %c0_16 = arith.constant 0 : index
    %c0_17 = arith.constant 0 : index
    %29 = vector.load %arg4[%c0_16, %c0_17] : memref<512x1024xbf16, #tpu.memory_space<vmem>>, vector<512x1024xbf16>
    %c0_18 = arith.constant 0 : index
    %c1280 = arith.constant 1280 : index
    %30 = vector.load %arg5[%c0_18, %c1280] : memref<1x2304xf32, #tpu.memory_space<vmem>>, vector<1x1024xf32>
    %cst_19 = arith.constant dense<0.000000e+00> : vector<2x1024xf32>
    %31 = tpu.matmul %28, %29, %cst_19 {dimension_numbers = #tpu.dot_dimension_numbers<[1], [0], [0], [1], [0, 0, 1, 1], [], []>} : vector<2x512xbf16>, vector<512x1024xbf16>, vector<2x1024xf32> -> vector<2x1024xf32>
    %32 = vector.broadcast %30 : vector<1x1024xf32> to vector<2x1024xf32>
    %33 = arith.addf %31, %32 : vector<2x1024xf32>
    %cst_20 = arith.constant 0.000000e+00 : f32
    %34 = vector.broadcast %cst_20 : f32 to vector<2x1024xf32>
    %35 = arith.subf %34, %33 : vector<2x1024xf32>
    %36 = math.exp %35 : vector<2x1024xf32>
    %cst_21 = arith.constant 1.000000e+00 : f32
    %37 = vector.broadcast %cst_21 : f32 to vector<2x1024xf32>
    %38 = arith.addf %37, %36 : vector<2x1024xf32>
    %39 = tpu.reciprocal %38 {approx = true} : vector<2x1024xf32> -> vector<2x1024xf32>
    %c0_22 = arith.constant 0 : index
    %c0_23 = arith.constant 0 : index
    %40 = vector.load %arg6[%c0_22, %c0_23] : memref<2x1024xf32, #tpu.memory_space<vmem>>, vector<2x1024xf32>
    tpu.vector_store %arg6[%c0_22, %c0_23], %39 {strides = array<i32>} : memref<2x1024xf32, #tpu.memory_space<vmem>>, vector<2x1024xf32>,
    return
  }
}

</mosaic_0001>

<bundles_post_ra>
// kernel: forward.1
= control target key start
LH: loop header
LB: loop body
LE: loop exit
PB: predicated region body
PF: predicated region fallthrough
CT: control target
= control target key end

     0   :  { %11 = vsyncpa [#allocation3], 0  ;;  %s6584_s0 = inlined_call_operand.vmem [shape: f32[2,1024], index: 0, kind: input, shape index: {}]   ;;  %s6585_s1 = inlined_call_operand.hbm [shape: bf16[1024,512], index: 1, kind: input, shape index: {}]   ;;  %s6586_s2 = inlined_call_operand.hbm [shape: bf16[512,256], index: 2, kind: input, shape index: {}]   ;;  %s6587_s3 = inlined_call_operand.hbm [shape: bf16[256,512], index: 3, kind: input, shape index: {}]   ;;  %s6588_s4 = inlined_call_operand.hbm [shape: bf16[512,1024], index: 4, kind: input, shape index: {}]   ;;  %s6589_s5 = inlined_call_operand.vmem [shape: f32[1,2304], index: 5, kind: input, shape index: {}]   ;;  %s6590_s6 = inlined_call_operand.vmem [shape: f32[2,1024], index: 6, kind: output, shape index: {}]  }
   0x1   :  { %12 = vsyncpa [#allocation5], 0 }
   0x2   :  { %13 = vsyncpa [#allocation8], 0  ;;  %s6360_s21 = smov [#allocation4]  }
   0x3   :  { %s33_s22 = sshll.u32 %s6360_s21, 4  ;;  %s34_s22 = int_to_ptr.vmem [resolvable:$true] %s33_s22 }
   0x4   :  { %s6282_s23 = scalar_lea.vmem %s34_s22, 8192  ;;  %p6287_p1 = scmp.lt.s32.totalorder %s34_s22, %s34_s22 }
   0x5   :  { %p6283_p0 = scmp.ne.s32.totalorder %s34_s22, %s6282_s23  ;;  %p6288_p2 = scmp.lt.s32.totalorder %s6282_s23, %s6282_s23 }
   0x7   :  { %p6289_p3 = por %p6288_p2, %p6287_p1 }
   0x9   :  { %p6290_p4 = pnand %p6289_p3, %p6283_p0 }
   0xb   :  { %6293 = shalt.err (!%p6290_p4)
}
   0xc   :  { %s6361_s24 = smov 128   ;;  %s6362_s25 = smov 8  }
   0xd   :  { %39 = dma.hbm_to_vmem [thread:$0]  %s6586_s2, 8192, %s34_s22, [#allocation5], %s6361_s24, %s6361_s24, %s6362_s25  }
   0xe   :  { %s6363_s28 = smov [#allocation2]  }
   0xf   :  { %s21_s29 = sshll.u32 %s6363_s28, 4  ;;  %s22_s29 = int_to_ptr.vmem [resolvable:$true] %s21_s29 }
  0x10   :  { %s6302_s30 = scalar_lea.vmem %s22_s29, 32768  ;;  %p6307_p6 = scmp.lt.s32.totalorder %s22_s29, %s22_s29 }
  0x11   :  { %p6303_p5 = scmp.ne.s32.totalorder %s22_s29, %s6302_s30  ;;  %p6308_p7 = scmp.lt.s32.totalorder %s6302_s30, %s6302_s30 }
  0x13   :  { %p6309_p8 = por %p6308_p7, %p6307_p6 }
  0x15   :  { %p6310_p9 = pnand %p6309_p8, %p6303_p5 }
  0x17   :  { %6313 = shalt.err (!%p6310_p9)
}
  0x18   :  { %s6364_s7 = smov 256   ;;  %s6365_s8 = smov 16  }
  0x19   :  { %27 = dma.hbm_to_vmem [thread:$0]  %s6585_s1, 32768, %s22_s29, [#allocation3], %s6364_s7, %s6364_s7, %s6365_s8  }
  0x1a   :  { %s6366_s11 = smov [#allocation6]   ;;  %s6367_s13 = smov [#allocation7]  }
  0x1b   :  { %s45_s12 = sshll.u32 %s6366_s11, 4  ;;  %s57_s2 = sshll.u32 %s6367_s13, 4  ;;  %s46_s12 = int_to_ptr.vmem [resolvable:$true] %s45_s12  ;;  %s58_s2 = int_to_ptr.vmem [resolvable:$true] %s57_s2 }
  0x1c   :  { %s6322_s14 = scalar_lea.vmem %s46_s12, 8192  ;;  %p6327_p11 = scmp.lt.s32.totalorder %s46_s12, %s46_s12 }
  0x1d   :  { %p6323_p10 = scmp.ne.s32.totalorder %s46_s12, %s6322_s14  ;;  %p6328_p12 = scmp.lt.s32.totalorder %s6322_s14, %s6322_s14 }
  0x1f   :  { %p6329_p13 = por %p6328_p12, %p6327_p11 }
  0x21   :  { %p6330_p0 = pnand %p6329_p13, %p6323_p10 }
  0x23   :  { %6333 = shalt.err (!%p6330_p0)
}
  0x24   :  { %51 = dma.hbm_to_vmem [thread:$0]  %s6587_s3, 8192, %s46_s12, [#allocation5], %s6364_s7, %s6364_s7, %s6365_s8  }
  0x25   :  { %s6342_s17 = scalar_lea.vmem %s58_s2, 32768  ;;  %p6347_p2 = scmp.lt.s32.totalorder %s58_s2, %s58_s2 }
  0x26   :  { %p6343_p1 = scmp.ne.s32.totalorder %s58_s2, %s6342_s17  ;;  %p6348_p3 = scmp.lt.s32.totalorder %s6342_s17, %s6342_s17 }
  0x28   :  { %p6349_p4 = por %p6348_p3, %p6347_p2 }
  0x2a   :  { %p6350_p5 = pnand %p6349_p4, %p6343_p1 }
  0x2c   :  { %6353 = shalt.err (!%p6350_p5)
}
  0x2d   :  { %s6368_s1 = smov 512   ;;  %s6369_s18 = smov 32  }
  0x2e   :  { %63 = dma.hbm_to_vmem [thread:$0]  %s6588_s4, 32768, %s58_s2, [#allocation8], %s6368_s1, %s6368_s1, %s6369_s18  }
  0x2f   :  { %6354 = dma.done.wait [#allocation3], 32768  }
  0x30   :  { %6355 = vsyncadd [#allocation3], 4294934528 }
  0x31   :  { %6356 = dma.done.wait [#allocation5], 16384  }
  0x32   :  { %6357 = vsyncadd [#allocation5], 4294950912 }
  0x33   :  { %6358 = dma.done.wait [#allocation8], 32768  }
  0x34   :  { %6359 = vsyncadd [#allocation8], 4294934528  ;;  %v5664_v0 = vld [vmem:[#allocation2 + $0xe4] ss:$16 sps:$4 sm:$0xff]   ;;  %v5668_v2 = vld [vmem:[#allocation2 + $0xe0] ss:$16 sps:$4 sm:$0xff]   ;;  %v86_v38 = vlaneseq }
  0x35   :  { %v5666_v1 = vld [vmem:[#allocation2 + $0x2e4] ss:$16 sps:$4 sm:$0xff]   ;;  %1690 = vmatprep.subr.bf16.mxu0 %v5664_v0  ;;  %v5669_v3 = vld [vmem:[#allocation2 + $0x2e0] ss:$16 sps:$4 sm:$0xff]   ;;  %v6370_v36 = vmov 1983009808  }
  0x36   :  { %1731 = vmatprep.subr.bf16.mxu1 %v5666_v1  ;;  %v5670_v4 = vld [vmem:[#allocation2 + $0xc4] ss:$16 sps:$4 sm:$0xff]   ;;  %1691 = vmatpush1.bf16.msra.mxu0 %v5668_v2  ;;  %v5674_v6 = vld [vmem:[#allocation2 + $0xc0] ss:$16 sps:$4 sm:$0xff]   ;;  %v84_v37 = vunpack.c.l.s4 %v6370_v36  ;;  %v6418_v43 = vshrl.u32 %v86_v38, 7 }
  0x37   :  { %1732 = vmatpush1.bf16.msra.mxu1 %v5669_v3  ;;  %v5672_v5 = vld [vmem:[#allocation2 + $0x2c4] ss:$16 sps:$4 sm:$0xff]   ;;  %1692 = vmatprep.subr.bf16.mxu0 %v5670_v4  ;;  %v5675_v7 = vld [vmem:[#allocation2 + $0x2c0] ss:$16 sps:$4 sm:$0xff]  }
  0x38   :  { %1733 = vmatprep.subr.bf16.mxu1 %v5672_v5  ;;  %v5676_v8 = vld [vmem:[#allocation2 + $0xa4] ss:$16 sps:$4 sm:$0xff]   ;;  %v5680_v10 = vld [vmem:[#allocation2 + $0xa0] ss:$16 sps:$4 sm:$0xff]   ;;  %v85_v42 = vunpack.c.0.s8 %v84_v37 }
  0x39   :  { %v5678_v9 = vld [vmem:[#allocation2 + $0x2a4] ss:$16 sps:$4 sm:$0xff]   ;;  %v5681_v11 = vld [vmem:[#allocation2 + $0x2a0] ss:$16 sps:$4 sm:$0xff]  }
  0x3a   :  { %1693 = vmatpush1.bf16.msra.mxu0 %v5674_v6  ;;  %v5682_v12 = vld [vmem:[#allocation2 + $0x84] ss:$16 sps:$4 sm:$0xff]   ;;  %v5686_v14 = vld [vmem:[#allocation2 + $0x80] ss:$16 sps:$4 sm:$0xff]   ;;  %v6421_v49 = vsub.s32 %v85_v42, %v6418_v43  ;;  %v79_v42 = vld [vmem:[%s6584_s0 + $0x8] sm:$0xff] }
  0x3b   :  { %1734 = vmatpush1.bf16.msra.mxu1 %v5675_v7  ;;  %1694 = vmatprep.subr.bf16.mxu0 %v5676_v8  ;;  %v5684_v13 = vld [vmem:[#allocation2 + $0x284] ss:$16 sps:$4 sm:$0xff]   ;;  %v5687_v15 = vld [vmem:[#allocation2 + $0x280] ss:$16 sps:$4 sm:$0xff]  }
  0x3c   :  { %1735 = vmatprep.subr.bf16.mxu1 %v5678_v9  ;;  %v5688_v16 = vld [vmem:[#allocation2 + $0x64] ss:$16 sps:$4 sm:$0xff]   ;;  %v5692_v18 = vld [vmem:[#allocation2 + $0x60] ss:$16 sps:$4 sm:$0xff]  }
  0x3d   :  { %v5690_v17 = vld [vmem:[#allocation2 + $0x264] ss:$16 sps:$4 sm:$0xff]   ;;  %v5693_v19 = vld [vmem:[#allocation2 + $0x260] ss:$16 sps:$4 sm:$0xff]  }
  0x3e   :  { %1695 = vmatpush1.bf16.msra.mxu0 %v5680_v10  ;;  %v5694_v20 = vld [vmem:[#allocation2 + $0x44] ss:$16 sps:$4 sm:$0xff]   ;;  %v5698_v22 = vld [vmem:[#allocation2 + $0x40] ss:$16 sps:$4 sm:$0xff]  }
  0x3f   :  { %1736 = vmatpush1.bf16.msra.mxu1 %v5681_v11  ;;  %1696 = vmatprep.subr.bf16.mxu0 %v5682_v12  ;;  %v5696_v21 = vld [vmem:[#allocation2 + $0x244] ss:$16 sps:$4 sm:$0xff]   ;;  %v5699_v23 = vld [vmem:[#allocation2 + $0x240] ss:$16 sps:$4 sm:$0xff]  }
  0x40   :  { %1737 = vmatprep.subr.bf16.mxu1 %v5684_v13  ;;  %v5700_v24 = vld [vmem:[#allocation2 + $0x24] ss:$16 sps:$4 sm:$0xff]   ;;  %v5704_v26 = vld [vmem:[#allocation2 + $0x20] ss:$16 sps:$4 sm:$0xff]  }
  0x41   :  { %v5702_v25 = vld [vmem:[#allocation2 + $0x224] ss:$16 sps:$4 sm:$0xff]   ;;  %v5705_v27 = vld [vmem:[#allocation2 + $0x220] ss:$16 sps:$4 sm:$0xff]  }
  0x42   :  { %1697 = vmatpush1.bf16.msra.mxu0 %v5686_v14  ;;  %v5706_v28 = vld [vmem:[#allocation2 + $0x4] ss:$16 sps:$4 sm:$0xff]   ;;  %v5710_v30 = vld [vmem:[#allocation2] ss:$16 sps:$4 sm:$0xff]  }
  0x43   :  { %1738 = vmatpush1.bf16.msra.mxu1 %v5687_v15  ;;  %1698 = vmatprep.subr.bf16.mxu0 %v5688_v16  ;;  %v5708_v29 = vld [vmem:[#allocation2 + $0x204] ss:$16 sps:$4 sm:$0xff]   ;;  %v5711_v31 = vld [vmem:[#allocation2 + $0x200] ss:$16 sps:$4 sm:$0xff]  }
  0x44   :  { %1739 = vmatprep.subr.bf16.mxu1 %v5690_v17  ;;  %v5712_v32 = vld [vmem:[#allocation2 + $0x1e4] ss:$16 sps:$4 sm:$0xff]   ;;  %v5716_v34 = vld [vmem:[#allocation2 + $0x1e0] ss:$16 sps:$4 sm:$0xff]  }
  0x45   :  { %v5714_v33 = vld [vmem:[#allocation2 + $0x3e4] ss:$16 sps:$4 sm:$0xff]   ;;  %v5717_v35 = vld [vmem:[#allocation2 + $0x3e0] ss:$16 sps:$4 sm:$0xff]  }
  0x46   :  { %1699 = vmatpush1.bf16.msra.mxu0 %v5692_v18  ;;  %v5718_v39 = vld [vmem:[#allocation2 + $0x1c4] ss:$16 sps:$4 sm:$0xff]   ;;  %v5722_v41 = vld [vmem:[#allocation2 + $0x1c0] ss:$16 sps:$4 sm:$0xff]  }
  0x47   :  { %1740 = vmatpush1.bf16.msra.mxu1 %v5693_v19  ;;  %1700 = vmatprep.subr.bf16.mxu0 %v5694_v20  ;;  %v5720_v40 = vld [vmem:[#allocation2 + $0x3c4] ss:$16 sps:$4 sm:$0xff]   ;;  %v5723_v44 = vld [vmem:[#allocation2 + $0x3c0] ss:$16 sps:$4 sm:$0xff]  }
  0x48   :  { %1741 = vmatprep.subr.bf16.mxu1 %v5696_v21  ;;  %v5724_v45 = vld [vmem:[#allocation2 + $0x1a4] ss:$16 sps:$4 sm:$0xff]   ;;  %v5728_v47 = vld [vmem:[#allocation2 + $0x1a0] ss:$16 sps:$4 sm:$0xff]  }
  0x49   :  { %v5726_v46 = vld [vmem:[#allocation2 + $0x3a4] ss:$16 sps:$4 sm:$0xff]   ;;  %v5729_v48 = vld [vmem:[#allocation2 + $0x3a0] ss:$16 sps:$4 sm:$0xff]  }
  0x4a   :  { %1701 = vmatpush1.bf16.msra.mxu0 %v5698_v22  ;;  %v5730_v50 = vld [vmem:[#allocation2 + $0x184] ss:$16 sps:$4 sm:$0xff]   ;;  %v5734_v53 = vld [vmem:[#allocation2 + $0x180] ss:$16 sps:$4 sm:$0xff]  }
  0x4b   :  { %1742 = vmatpush1.bf16.msra.mxu1 %v5699_v23  ;;  %1702 = vmatprep.subr.bf16.mxu0 %v5700_v24  ;;  %v5732_v51 = vld [vmem:[#allocation2 + $0x384] ss:$16 sps:$4 sm:$0xff]   ;;  %v5735_v56 = vld [vmem:[#allocation2 + $0x380] ss:$16 sps:$4 sm:$0xff]  }
  0x4c   :  { %1743 = vmatprep.subr.bf16.mxu1 %v5702_v25  ;;  %v78_v52 = vld [vmem:[%s6584_s0] sm:$0xff] }
  0x4d   :  { %v89_v54 = vrot.slane %v78_v52, %v6421_v49  ;;  %v82_v55 = vcombine.high %v78_v52, %v78_v52  ;;  %v5736_v57 = vld [vmem:[#allocation2 + $0x164] ss:$16 sps:$4 sm:$0xff]   ;;  %v5740_v61 = vld [vmem:[#allocation2 + $0x160] ss:$16 sps:$4 sm:$0xff]  }
  0x4e   :  { %1703 = vmatpush1.bf16.msra.mxu0 %v5704_v26  ;;  %v5738_v58 = vld [vmem:[#allocation2 + $0x364] ss:$16 sps:$4 sm:$0xff]   ;;  %v5741_v0 = vld [vmem:[#allocation2 + $0x360] ss:$16 sps:$4 sm:$0xff]  }
  0x4f   :  { %1744 = vmatpush1.bf16.msra.mxu1 %v5705_v27  ;;  %1704 = vmatprep.subr.bf16.mxu0 %v5706_v28  ;;  %v97_v59 = vcombine.high %v89_v54, %v89_v54  ;;  %v96_v60 = vrot.slane %v82_v55, %v6421_v49  ;;  %v5742_v1 = vld [vmem:[#allocation2 + $0x144] ss:$16 sps:$4 sm:$0xff]   ;;  %v5746_v4 = vld [vmem:[#allocation2 + $0x140] ss:$16 sps:$4 sm:$0xff]   ;;  %v6434_v16 = vpack.c.bf16 %v89_v54, %v89_v54 }
  0x50   :  { %1745 = vmatprep.subr.bf16.mxu1 %v5708_v29  ;;  %v5744_v2 = vld [vmem:[#allocation2 + $0x344] ss:$16 sps:$4 sm:$0xff]   ;;  %v5747_v5 = vld [vmem:[#allocation2 + $0x340] ss:$16 sps:$4 sm:$0xff]  }
  0x51   :  { %v6428_v62 = vpack.c.bf16 %v97_v59, %v97_v59  ;;  %v98_v63 = vcombine.high %v96_v60, %v96_v60  ;;  %v5748_v6 = vld [vmem:[#allocation2 + $0x124] ss:$16 sps:$4 sm:$0xff]   ;;  %v5752_v8 = vld [vmem:[#allocation2 + $0x120] ss:$16 sps:$4 sm:$0xff]   ;;  %v6436_v17 = vpack.c.bf16 %v96_v60, %v96_v60 }
  0x52   :  { %1705 = vmatpush1.bf16.msra.mxu0 %v5710_v30  ;;  %v5750_v7 = vld [vmem:[#allocation2 + $0x324] ss:$16 sps:$4 sm:$0xff]   ;;  %v5753_v9 = vld [vmem:[#allocation2 + $0x320] ss:$16 sps:$4 sm:$0xff]  }
  0x53   :  { %1746 = vmatpush1.bf16.msra.mxu1 %v5711_v31  ;;  %1706 = vmatprep.subr.bf16.mxu0 %v5712_v32  ;;  %v6430_v3 = vpack.c.bf16 %v98_v63, %v98_v63  ;;  %v5754_v10 = vld [vmem:[#allocation2 + $0x104] ss:$16 sps:$4 sm:$0xff]   ;;  %v5758_v12 = vld [vmem:[#allocation2 + $0x100] ss:$16 sps:$4 sm:$0xff]  }
  0x54   :  { %1747 = vmatprep.subr.bf16.mxu1 %v5714_v33  ;;  %1722 = vmatprep.mubr.bf16.mxu0 %v6428_v62  ;;  %v5756_v11 = vld [vmem:[#allocation2 + $0x304] ss:$16 sps:$4 sm:$0xff]   ;;  %v5759_v13 = vld [vmem:[#allocation2 + $0x300] ss:$16 sps:$4 sm:$0xff]  }
  0x55   :  { %1763 = vmatprep.mubr.bf16.mxu1 %v6430_v3  ;;  %v5763_v14 = vld [vmem:[#allocation2 + $0x4e4] ss:$16 sps:$4 sm:$0xff]   ;;  %v5761_v18 = vld [vmem:[#allocation2 + $0x4e0] ss:$16 sps:$4 sm:$0xff]  }
  0x56   :  { %1707 = vmatpush2.bf16.msra.mxu0 %v5716_v34  ;;  %v5766_v15 = vld [vmem:[#allocation2 + $0x6e4] ss:$16 sps:$4 sm:$0xff]   ;;  %v5764_v19 = vld [vmem:[#allocation2 + $0x6e0] ss:$16 sps:$4 sm:$0xff]  }
  0x57   :  { %1748 = vmatpush2.bf16.msra.mxu1 %v5717_v35  ;;  %1708 = vmatprep.subr.bf16.mxu0 %v5718_v39  ;;  %v5769_v20 = vld [vmem:[#allocation2 + $0x4c4] ss:$16 sps:$4 sm:$0xff]   ;;  %v5767_v22 = vld [vmem:[#allocation2 + $0x4c0] ss:$16 sps:$4 sm:$0xff]  }
  0x58   :  { %1749 = vmatprep.subr.bf16.mxu1 %v5720_v40  ;;  %v5772_v21 = vld [vmem:[#allocation2 + $0x6c4] ss:$16 sps:$4 sm:$0xff]   ;;  %v5770_v23 = vld [vmem:[#allocation2 + $0x6c0] ss:$16 sps:$4 sm:$0xff]  }
  0x59   :  { %v5775_v24 = vld [vmem:[#allocation2 + $0x4a4] ss:$16 sps:$4 sm:$0xff]   ;;  %v5773_v26 = vld [vmem:[#allocation2 + $0x4a0] ss:$16 sps:$4 sm:$0xff]  }
  0x5a   :  { %1709 = vmatpush2.bf16.msra.mxu0 %v5722_v41  ;;  %v5778_v25 = vld [vmem:[#allocation2 + $0x6a4] ss:$16 sps:$4 sm:$0xff]   ;;  %v5776_v27 = vld [vmem:[#allocation2 + $0x6a0] ss:$16 sps:$4 sm:$0xff]  }
  0x5b   :  { %1750 = vmatpush2.bf16.msra.mxu1 %v5723_v44  ;;  %1710 = vmatprep.subr.bf16.mxu0 %v5724_v45  ;;  %v5781_v28 = vld [vmem:[#allocation2 + $0x484] ss:$16 sps:$4 sm:$0xff]   ;;  %v5779_v30 = vld [vmem:[#allocation2 + $0x480] ss:$16 sps:$4 sm:$0xff]   ;;  %v6444_v44 = vrot.slane %v79_v42, %v6421_v49  ;;  %v99_v45 = vcombine.high %v79_v42, %v79_v42  ;;  %v5870_v42 = vld [vmem:[#allocation2 + $0xa8] ss:$16 sps:$4 sm:$0xff]  }
  0x5c   :  { %1751 = vmatprep.subr.bf16.mxu1 %v5726_v46  ;;  %v5784_v29 = vld [vmem:[#allocation2 + $0x684] ss:$16 sps:$4 sm:$0xff]   ;;  %v5782_v31 = vld [vmem:[#allocation2 + $0x680] ss:$16 sps:$4 sm:$0xff]  }
  0x5d   :  { %v5787_v32 = vld [vmem:[#allocation2 + $0x464] ss:$16 sps:$4 sm:$0xff]   ;;  %v5785_v34 = vld [vmem:[#allocation2 + $0x460] ss:$16 sps:$4 sm:$0xff]  }
  0x5e   :  { %1711 = vmatpush2.bf16.msra.mxu0 %v5728_v47  ;;  %v5790_v33 = vld [vmem:[#allocation2 + $0x664] ss:$16 sps:$4 sm:$0xff]   ;;  %v5788_v35 = vld [vmem:[#allocation2 + $0x660] ss:$16 sps:$4 sm:$0xff]  }
  0x5f   :  { %1752 = vmatpush2.bf16.msra.mxu1 %v5729_v48  ;;  %1712 = vmatprep.subr.bf16.mxu0 %v5730_v50  ;;  %v5793_v36 = vld [vmem:[#allocation2 + $0x444] ss:$16 sps:$4 sm:$0xff]   ;;  %v5791_v38 = vld [vmem:[#allocation2 + $0x440] ss:$16 sps:$4 sm:$0xff]   ;;  %v114_v48 = vcombine.high %v6444_v44, %v6444_v44  ;;  %v6449_v50 = vrot.slane %v99_v45, %v6421_v49  ;;  %v5878_v45 = vld [vmem:[#allocation2 + $0x8c] ss:$16 sps:$4 sm:$0xff]  }
  0x60   :  { %1753 = vmatprep.subr.bf16.mxu1 %v5732_v51  ;;  %v5796_v37 = vld [vmem:[#allocation2 + $0x644] ss:$16 sps:$4 sm:$0xff]   ;;  %v5794_v39 = vld [vmem:[#allocation2 + $0x640] ss:$16 sps:$4 sm:$0xff]  }
  0x61   :  { %v5799_v40 = vld [vmem:[#allocation2 + $0x424] ss:$16 sps:$4 sm:$0xff]   ;;  %v5797_v46 = vld [vmem:[#allocation2 + $0x420] ss:$16 sps:$4 sm:$0xff]   ;;  %v115_v54 = vcombine.high %v6449_v50, %v6449_v50 }
  0x62   :  { %1713 = vmatpush2.bf16.msra.mxu0 %v5734_v53  ;;  %v5802_v41 = vld [vmem:[#allocation2 + $0x624] ss:$16 sps:$4 sm:$0xff]   ;;  %v5800_v47 = vld [vmem:[#allocation2 + $0x620] ss:$16 sps:$4 sm:$0xff]   ;;  %v6451_v53 = vpack.c.bf16 %v114_v48, %v114_v48  ;;  %v5879_v48 = vld [vmem:[#allocation2 + $0x288] ss:$16 sps:$4 sm:$0xff]  }
  0x63   :  { %1754 = vmatpush2.bf16.msra.mxu1 %v5735_v56  ;;  %1714 = vmatprep.subr.bf16.mxu0 %v5736_v57  ;;  %v5805_v51 = vld [vmem:[#allocation2 + $0x404] ss:$16 sps:$4 sm:$0xff]   ;;  %v5803_v55 = vld [vmem:[#allocation2 + $0x400] ss:$16 sps:$4 sm:$0xff]   ;;  %v6455_v57 = vpack.c.bf16 %v115_v54, %v115_v54  ;;  %v5893_v54 = vld [vmem:[#allocation2 + $0x24c] ss:$16 sps:$4 sm:$0xff]  }
  0x64   :  { %1755 = vmatprep.subr.bf16.mxu1 %v5738_v58  ;;  %v5808_v52 = vld [vmem:[#allocation2 + $0x604] ss:$16 sps:$4 sm:$0xff]   ;;  %v5806_v56 = vld [vmem:[#allocation2 + $0x600] ss:$16 sps:$4 sm:$0xff]  }
  0x65   :  { %v5811_v58 = vld [vmem:[#allocation2 + $0x5e4] ss:$16 sps:$4 sm:$0xff]   ;;  %v5809_v60 = vld [vmem:[#allocation2 + $0x5e0] ss:$16 sps:$4 sm:$0xff]  }
  0x66   :  { %1715 = vmatpush2.bf16.msra.mxu0 %v5740_v61  ;;  %v5814_v59 = vld [vmem:[#allocation2 + $0x7e4] ss:$16 sps:$4 sm:$0xff]   ;;  %v5812_v61 = vld [vmem:[#allocation2 + $0x7e0] ss:$16 sps:$4 sm:$0xff]  }
  0x67   :  { %1756 = vmatpush2.bf16.msra.mxu1 %v5741_v0  ;;  %1716 = vmatprep.subr.bf16.mxu0 %v5742_v1  ;;  %v5817_v63 = vld [vmem:[#allocation2 + $0x5c4] ss:$16 sps:$4 sm:$0xff]   ;;  %v5815_v1 = vld [vmem:[#allocation2 + $0x5c0] ss:$16 sps:$4 sm:$0xff]  }
  0x68   :  { %1757 = vmatprep.subr.bf16.mxu1 %v5744_v2  ;;  %v5820_v0 = vld [vmem:[#allocation2 + $0x7c4] ss:$16 sps:$4 sm:$0xff]   ;;  %v5818_v2 = vld [vmem:[#allocation2 + $0x7c0] ss:$16 sps:$4 sm:$0xff]  }
  0x6a   :  { %1717 = vmatpush2.bf16.msra.mxu0 %v5746_v4  ;;  %v5823_v4 = vld [vmem:[#allocation2 + $0x5a4] ss:$16 sps:$4 sm:$0xff]  }
  0x6b   :  { %1758 = vmatpush2.bf16.msra.mxu1 %v5747_v5  ;;  %1718 = vmatprep.subr.bf16.mxu0 %v5748_v6  ;;  %v5826_v5 = vld [vmem:[#allocation2 + $0x7a4] ss:$16 sps:$4 sm:$0xff]   ;;  %v5821_v6 = vld [vmem:[#allocation2 + $0x5a0] ss:$16 sps:$4 sm:$0xff]  }
  0x6c   :  { %1759 = vmatprep.subr.bf16.mxu1 %v5750_v7  ;;  %v5824_v7 = vld [vmem:[#allocation2 + $0x7a0] ss:$16 sps:$4 sm:$0xff]  }
  0x6e   :  { %1719 = vmatpush2.bf16.msra.mxu0 %v5752_v8  ;;  %v5829_v8 = vld [vmem:[#allocation2 + $0x584] ss:$16 sps:$4 sm:$0xff]  }
  0x6f   :  { %1760 = vmatpush2.bf16.msra.mxu1 %v5753_v9  ;;  %1720 = vmatprep.subr.bf16.mxu0 %v5754_v10  ;;  %v5832_v9 = vld [vmem:[#allocation2 + $0x784] ss:$16 sps:$4 sm:$0xff]   ;;  %v5827_v10 = vld [vmem:[#allocation2 + $0x580] ss:$16 sps:$4 sm:$0xff]  }
  0x70   :  { %1761 = vmatprep.subr.bf16.mxu1 %v5756_v11  ;;  %v5830_v11 = vld [vmem:[#allocation2 + $0x780] ss:$16 sps:$4 sm:$0xff]  }
  0x72   :  { %1721 = vmatpush2.bf16.msra.mxu0 %v5758_v12  ;;  %v5835_v12 = vld [vmem:[#allocation2 + $0x564] ss:$16 sps:$4 sm:$0xff]  }
  0x73   :  { %1762 = vmatpush2.bf16.msra.mxu1 %v5759_v13  ;;  %1772 = vmatprep.subr.bf16.mxu0 %v5763_v14  ;;  %v5838_v13 = vld [vmem:[#allocation2 + $0x764] ss:$16 sps:$4 sm:$0xff]   ;;  %v5833_v14 = vld [vmem:[#allocation2 + $0x560] ss:$16 sps:$4 sm:$0xff]  }
  0x74   :  { %1813 = vmatprep.subr.bf16.mxu1 %v5766_v15  ;;  %v5836_v15 = vld [vmem:[#allocation2 + $0x760] ss:$16 sps:$4 sm:$0xff]  }
  0x75   :  { %1723 = vmatmul.mubr.bf16.vlgmr.msra.gmra.mxu0 %v6434_v16 }
  0x76   :  { %1764 = vmatmul.mubr.bf16.vlgmr.msra.gmra.mxu1 %v6436_v17  ;;  %1773 = vmatpush1.bf16.msra.mxu0 %v5761_v18  ;;  %v5841_v18 = vld [vmem:[#allocation2 + $0x544] ss:$16 sps:$4 sm:$0xff]  }
  0x77   :  { %1814 = vmatpush1.bf16.msra.mxu1 %v5764_v19  ;;  %1774 = vmatprep.subr.bf16.mxu0 %v5769_v20  ;;  %v5844_v19 = vld [vmem:[#allocation2 + $0x744] ss:$16 sps:$4 sm:$0xff]   ;;  %v5839_v20 = vld [vmem:[#allocation2 + $0x540] ss:$16 sps:$4 sm:$0xff]  }
  0x78   :  { %1815 = vmatprep.subr.bf16.mxu1 %v5772_v21  ;;  %1804 = vmatprep.mubr.bf16.mxu0 %v6451_v53  ;;  %v5842_v21 = vld [vmem:[#allocation2 + $0x740] ss:$16 sps:$4 sm:$0xff]  }
  0x79   :  { %1845 = vmatprep.mubr.bf16.mxu1 %v6455_v57 }
  0x7a   :  { %1775 = vmatpush1.bf16.msra.mxu0 %v5767_v22  ;;  %v5847_v22 = vld [vmem:[#allocation2 + $0x524] ss:$16 sps:$4 sm:$0xff]  }
  0x7b   :  { %1816 = vmatpush1.bf16.msra.mxu1 %v5770_v23  ;;  %1776 = vmatprep.subr.bf16.mxu0 %v5775_v24  ;;  %v5850_v23 = vld [vmem:[#allocation2 + $0x724] ss:$16 sps:$4 sm:$0xff]   ;;  %v5845_v24 = vld [vmem:[#allocation2 + $0x520] ss:$16 sps:$4 sm:$0xff]  }
  0x7c   :  { %1817 = vmatprep.subr.bf16.mxu1 %v5778_v25  ;;  %v5848_v25 = vld [vmem:[#allocation2 + $0x720] ss:$16 sps:$4 sm:$0xff]  }
  0x7e   :  { %1777 = vmatpush1.bf16.msra.mxu0 %v5773_v26  ;;  %v5853_v26 = vld [vmem:[#allocation2 + $0x504] ss:$16 sps:$4 sm:$0xff]  }
  0x7f   :  { %1818 = vmatpush1.bf16.msra.mxu1 %v5776_v27  ;;  %1778 = vmatprep.subr.bf16.mxu0 %v5781_v28  ;;  %v5856_v27 = vld [vmem:[#allocation2 + $0x704] ss:$16 sps:$4 sm:$0xff]   ;;  %v5851_v28 = vld [vmem:[#allocation2 + $0x500] ss:$16 sps:$4 sm:$0xff]  }
  0x80   :  { %1819 = vmatprep.subr.bf16.mxu1 %v5784_v29  ;;  %v5854_v29 = vld [vmem:[#allocation2 + $0x700] ss:$16 sps:$4 sm:$0xff]  }
  0x82   :  { %1779 = vmatpush1.bf16.msra.mxu0 %v5779_v30  ;;  %v5860_v30 = vld [vmem:[#allocation2 + $0xec] ss:$16 sps:$4 sm:$0xff]  }
  0x83   :  { %1820 = vmatpush1.bf16.msra.mxu1 %v5782_v31  ;;  %1780 = vmatprep.subr.bf16.mxu0 %v5787_v32  ;;  %v5863_v31 = vld [vmem:[#allocation2 + $0x2ec] ss:$16 sps:$4 sm:$0xff]   ;;  %v6461_v32 = vpack.c.bf16 %v6444_v44, %v6444_v44  ;;  %v5873_v44 = vld [vmem:[#allocation2 + $0x2a8] ss:$16 sps:$4 sm:$0xff]  }
  0x84   :  { %1821 = vmatprep.subr.bf16.mxu1 %v5790_v33  ;;  %v6465_v33 = vpack.c.bf16 %v6449_v50, %v6449_v50  ;;  %v5884_v50 = vld [vmem:[#allocation2 + $0x6c] ss:$16 sps:$4 sm:$0xff]  }
  0x86   :  { %1781 = vmatpush1.bf16.msra.mxu0 %v5785_v34  ;;  %v5858_v34 = vld [vmem:[#allocation2 + $0xe8] ss:$16 sps:$4 sm:$0xff]  }
  0x87   :  { %1822 = vmatpush1.bf16.msra.mxu1 %v5788_v35  ;;  %1782 = vmatprep.subr.bf16.mxu0 %v5793_v36  ;;  %v5861_v35 = vld [vmem:[#allocation2 + $0x2e8] ss:$16 sps:$4 sm:$0xff]   ;;  %v5866_v36 = vld [vmem:[#allocation2 + $0xcc] ss:$16 sps:$4 sm:$0xff]  }
  0x88   :  { %1823 = vmatprep.subr.bf16.mxu1 %v5796_v37  ;;  %v5869_v37 = vld [vmem:[#allocation2 + $0x2cc] ss:$16 sps:$4 sm:$0xff]  }
  0x8a   :  { %1783 = vmatpush1.bf16.msra.mxu0 %v5791_v38  ;;  %v5864_v38 = vld [vmem:[#allocation2 + $0xc8] ss:$16 sps:$4 sm:$0xff]  }
  0x8b   :  { %1824 = vmatpush1.bf16.msra.mxu1 %v5794_v39  ;;  %1784 = vmatprep.subr.bf16.mxu0 %v5799_v40  ;;  %v5867_v39 = vld [vmem:[#allocation2 + $0x2c8] ss:$16 sps:$4 sm:$0xff]   ;;  %v5872_v40 = vld [vmem:[#allocation2 + $0xac] ss:$16 sps:$4 sm:$0xff]  }
  0x8c   :  { %1825 = vmatprep.subr.bf16.mxu1 %v5802_v41  ;;  %v5875_v41 = vld [vmem:[#allocation2 + $0x2ac] ss:$16 sps:$4 sm:$0xff]  }
  0x8e   :  { %1785 = vmatpush1.bf16.msra.mxu0 %v5797_v46  ;;  %v5881_v46 = vld [vmem:[#allocation2 + $0x28c] ss:$16 sps:$4 sm:$0xff]  }
  0x8f   :  { %1826 = vmatpush1.bf16.msra.mxu1 %v5800_v47  ;;  %1786 = vmatprep.subr.bf16.mxu0 %v5805_v51  ;;  %v5876_v47 = vld [vmem:[#allocation2 + $0x88] ss:$16 sps:$4 sm:$0xff]   ;;  %v5887_v51 = vld [vmem:[#allocation2 + $0x26c] ss:$16 sps:$4 sm:$0xff]  }
  0x90   :  { %1827 = vmatprep.subr.bf16.mxu1 %v5808_v52  ;;  %v5890_v52 = vld [vmem:[#allocation2 + $0x4c] ss:$16 sps:$4 sm:$0xff]  }
  0x92   :  { %1787 = vmatpush1.bf16.msra.mxu0 %v5803_v55  ;;  %v5888_v55 = vld [vmem:[#allocation2 + $0x48] ss:$16 sps:$4 sm:$0xff]  }
  0x93   :  { %1828 = vmatpush1.bf16.msra.mxu1 %v5806_v56  ;;  %1788 = vmatprep.subr.bf16.mxu0 %v5811_v58  ;;  %v5891_v56 = vld [vmem:[#allocation2 + $0x248] ss:$16 sps:$4 sm:$0xff]   ;;  %v5896_v58 = vld [vmem:[#allocation2 + $0x2c] ss:$16 sps:$4 sm:$0xff]  }
  0x94   :  { %1829 = vmatprep.subr.bf16.mxu1 %v5814_v59  ;;  %v5899_v59 = vld [vmem:[#allocation2 + $0x22c] ss:$16 sps:$4 sm:$0xff]  }
  0x96   :  { %1789 = vmatpush2.bf16.msra.mxu0 %v5809_v60  ;;  %v5894_v60 = vld [vmem:[#allocation2 + $0x28] ss:$16 sps:$4 sm:$0xff]  }
  0x97   :  { %1830 = vmatpush2.bf16.msra.mxu1 %v5812_v61  ;;  %1790 = vmatprep.subr.bf16.mxu0 %v5817_v63  ;;  %v5897_v61 = vld [vmem:[#allocation2 + $0x228] ss:$16 sps:$4 sm:$0xff]   ;;  %v5902_v63 = vld [vmem:[#allocation2 + $0xc] ss:$16 sps:$4 sm:$0xff]  }
  0x98   :  { %1831 = vmatprep.subr.bf16.mxu1 %v5820_v0  ;;  %v5905_v0 = vld [vmem:[#allocation2 + $0x20c] ss:$16 sps:$4 sm:$0xff]  }
  0x9a   :  { %1791 = vmatpush2.bf16.msra.mxu0 %v5815_v1  ;;  %v5900_v1 = vld [vmem:[#allocation2 + $0x8] ss:$16 sps:$4 sm:$0xff]  }
  0x9b   :  { %1832 = vmatpush2.bf16.msra.mxu1 %v5818_v2  ;;  %1792 = vmatprep.subr.bf16.mxu0 %v5823_v4  ;;  %v5903_v2 = vld [vmem:[#allocation2 + $0x208] ss:$16 sps:$4 sm:$0xff]   ;;  %v5908_v4 = vld [vmem:[#allocation2 + $0x1ec] ss:$16 sps:$4 sm:$0xff]  }
  0x9c   :  { %1833 = vmatprep.subr.bf16.mxu1 %v5826_v5  ;;  %v5911_v5 = vld [vmem:[#allocation2 + $0x3ec] ss:$16 sps:$4 sm:$0xff]  }
  0x9e   :  { %1793 = vmatpush2.bf16.msra.mxu0 %v5821_v6  ;;  %v5906_v6 = vld [vmem:[#allocation2 + $0x1e8] ss:$16 sps:$4 sm:$0xff]  }
  0x9f   :  { %1834 = vmatpush2.bf16.msra.mxu1 %v5824_v7  ;;  %1794 = vmatprep.subr.bf16.mxu0 %v5829_v8  ;;  %v5909_v7 = vld [vmem:[#allocation2 + $0x3e8] ss:$16 sps:$4 sm:$0xff]   ;;  %v5914_v8 = vld [vmem:[#allocation2 + $0x1cc] ss:$16 sps:$4 sm:$0xff]  }
  0xa0   :  { %1835 = vmatprep.subr.bf16.mxu1 %v5832_v9  ;;  %v5917_v9 = vld [vmem:[#allocation2 + $0x3cc] ss:$16 sps:$4 sm:$0xff]  }
  0xa2   :  { %1795 = vmatpush2.bf16.msra.mxu0 %v5827_v10  ;;  %v5912_v10 = vld [vmem:[#allocation2 + $0x1c8] ss:$16 sps:$4 sm:$0xff]  }
  0xa3   :  { %1836 = vmatpush2.bf16.msra.mxu1 %v5830_v11  ;;  %1796 = vmatprep.subr.bf16.mxu0 %v5835_v12  ;;  %v5915_v11 = vld [vmem:[#allocation2 + $0x3c8] ss:$16 sps:$4 sm:$0xff]   ;;  %v5920_v12 = vld [vmem:[#allocation2 + $0x1ac] ss:$16 sps:$4 sm:$0xff]  }
  0xa4   :  { %1837 = vmatprep.subr.bf16.mxu1 %v5838_v13  ;;  %v5923_v13 = vld [vmem:[#allocation2 + $0x3ac] ss:$16 sps:$4 sm:$0xff]  }
  0xa6   :  { %1797 = vmatpush2.bf16.msra.mxu0 %v5833_v14  ;;  %v5918_v14 = vld [vmem:[#allocation2 + $0x1a8] ss:$16 sps:$4 sm:$0xff]  }
  0xa7   :  { %1838 = vmatpush2.bf16.msra.mxu1 %v5836_v15  ;;  %1798 = vmatprep.subr.bf16.mxu0 %v5841_v18  ;;  %v5921_v15 = vld [vmem:[#allocation2 + $0x3a8] ss:$16 sps:$4 sm:$0xff]   ;;  %v5926_v18 = vld [vmem:[#allocation2 + $0x18c] ss:$16 sps:$4 sm:$0xff]  }
  0xa8   :  { %1839 = vmatprep.subr.bf16.mxu1 %v5844_v19  ;;  %v5929_v19 = vld [vmem:[#allocation2 + $0x38c] ss:$16 sps:$4 sm:$0xff]  }
  0xaa   :  { %1799 = vmatpush2.bf16.msra.mxu0 %v5839_v20  ;;  %v5924_v20 = vld [vmem:[#allocation2 + $0x188] ss:$16 sps:$4 sm:$0xff]  }
  0xab   :  { %1840 = vmatpush2.bf16.msra.mxu1 %v5842_v21  ;;  %1800 = vmatprep.subr.bf16.mxu0 %v5847_v22  ;;  %v5927_v21 = vld [vmem:[#allocation2 + $0x388] ss:$16 sps:$4 sm:$0xff]   ;;  %v5932_v22 = vld [vmem:[#allocation2 + $0x16c] ss:$16 sps:$4 sm:$0xff]  }
  0xac   :  { %1841 = vmatprep.subr.bf16.mxu1 %v5850_v23  ;;  %v5935_v23 = vld [vmem:[#allocation2 + $0x36c] ss:$16 sps:$4 sm:$0xff]  }
  0xae   :  { %1801 = vmatpush2.bf16.msra.mxu0 %v5845_v24  ;;  %v5930_v24 = vld [vmem:[#allocation2 + $0x168] ss:$16 sps:$4 sm:$0xff]  }
  0xaf   :  { %1842 = vmatpush2.bf16.msra.mxu1 %v5848_v25  ;;  %1802 = vmatprep.subr.bf16.mxu0 %v5853_v26  ;;  %v5933_v25 = vld [vmem:[#allocation2 + $0x368] ss:$16 sps:$4 sm:$0xff]   ;;  %v5938_v26 = vld [vmem:[#allocation2 + $0x14c] ss:$16 sps:$4 sm:$0xff]  }
  0xb0   :  { %1843 = vmatprep.subr.bf16.mxu1 %v5856_v27  ;;  %v5941_v27 = vld [vmem:[#allocation2 + $0x34c] ss:$16 sps:$4 sm:$0xff]  }
  0xb2   :  { %1803 = vmatpush2.bf16.msra.mxu0 %v5851_v28  ;;  %v5936_v28 = vld [vmem:[#allocation2 + $0x148] ss:$16 sps:$4 sm:$0xff]  }
  0xb3   :  { %1844 = vmatpush2.bf16.msra.mxu1 %v5854_v29  ;;  %1854 = vmatprep.subr.bf16.mxu0 %v5860_v30  ;;  %v5939_v29 = vld [vmem:[#allocation2 + $0x348] ss:$16 sps:$4 sm:$0xff]   ;;  %v5944_v30 = vld [vmem:[#allocation2 + $0x12c] ss:$16 sps:$4 sm:$0xff]  }
  0xb4   :  { %1895 = vmatprep.subr.bf16.mxu1 %v5863_v31  ;;  %v5947_v31 = vld [vmem:[#allocation2 + $0x32c] ss:$16 sps:$4 sm:$0xff]  }
  0xb5   :  { %1805 = vmatmul.mubr.bf16.vlgmr.msra.gmra.mxu0 %v6461_v32 }
  0xb6   :  { %1846 = vmatmul.mubr.bf16.vlgmr.msra.gmra.mxu1 %v6465_v33  ;;  %1855 = vmatpush1.bf16.msra.mxu0 %v5858_v34  ;;  %v5942_v34 = vld [vmem:[#allocation2 + $0x128] ss:$16 sps:$4 sm:$0xff]  }
  0xb7   :  { %1896 = vmatpush1.bf16.msra.mxu1 %v5861_v35  ;;  %1856 = vmatprep.subr.bf16.mxu0 %v5866_v36  ;;  %v5945_v35 = vld [vmem:[#allocation2 + $0x328] ss:$16 sps:$4 sm:$0xff]   ;;  %v5950_v36 = vld [vmem:[#allocation2 + $0x10c] ss:$16 sps:$4 sm:$0xff]  }
  0xb8   :  { %1897 = vmatprep.subr.bf16.mxu1 %v5869_v37  ;;  %1886 = vmatprep.mubr.bf16.mxu0 %v6428_v62  ;;  %v5882_v62 = vld [vmem:[#allocation2 + $0x68] ss:$16 sps:$4 sm:$0xff]   ;;  %v5953_v37 = vld [vmem:[#allocation2 + $0x30c] ss:$16 sps:$4 sm:$0xff]  }
  0xb9   :  { %1927 = vmatprep.mubr.bf16.mxu1 %v6430_v3  ;;  %v5885_v3 = vld [vmem:[#allocation2 + $0x268] ss:$16 sps:$4 sm:$0xff]  }
  0xba   :  { %1857 = vmatpush1.bf16.msra.mxu0 %v5864_v38  ;;  %v5948_v38 = vld [vmem:[#allocation2 + $0x108] ss:$16 sps:$4 sm:$0xff]  }
  0xbb   :  { %1898 = vmatpush1.bf16.msra.mxu1 %v5867_v39  ;;  %1858 = vmatprep.subr.bf16.mxu0 %v5872_v40  ;;  %v5951_v39 = vld [vmem:[#allocation2 + $0x308] ss:$16 sps:$4 sm:$0xff]   ;;  %v5956_v40 = vld [vmem:[#allocation2 + $0x4ec] ss:$16 sps:$4 sm:$0xff]  }
  0xbc   :  { %1899 = vmatprep.subr.bf16.mxu1 %v5875_v41  ;;  %v5959_v41 = vld [vmem:[#allocation2 + $0x6ec] ss:$16 sps:$4 sm:$0xff]  }
  0xbe   :  { %1859 = vmatpush1.bf16.msra.mxu0 %v5870_v42  ;;  %v5954_v42 = vld [vmem:[#allocation2 + $0x4e8] ss:$16 sps:$4 sm:$0xff]  }
  0xbf   :  { %1900 = vmatpush1.bf16.msra.mxu1 %v5873_v44  ;;  %1860 = vmatprep.subr.bf16.mxu0 %v5878_v45  ;;  %v5957_v44 = vld [vmem:[#allocation2 + $0x6e8] ss:$16 sps:$4 sm:$0xff]   ;;  %v5962_v45 = vld [vmem:[#allocation2 + $0x4cc] ss:$16 sps:$4 sm:$0xff]  }
  0xc0   :  { %1901 = vmatprep.subr.bf16.mxu1 %v5881_v46  ;;  %v5965_v46 = vld [vmem:[#allocation2 + $0x6cc] ss:$16 sps:$4 sm:$0xff]  }
  0xc2   :  { %1861 = vmatpush1.bf16.msra.mxu0 %v5876_v47  ;;  %v5960_v47 = vld [vmem:[#allocation2 + $0x4c8] ss:$16 sps:$4 sm:$0xff]  }
  0xc3   :  { %1902 = vmatpush1.bf16.msra.mxu1 %v5879_v48  ;;  %1862 = vmatprep.subr.bf16.mxu0 %v5884_v50  ;;  %v5963_v48 = vld [vmem:[#allocation2 + $0x6c8] ss:$16 sps:$4 sm:$0xff]   ;;  %v5968_v50 = vld [vmem:[#allocation2 + $0x4ac] ss:$16 sps:$4 sm:$0xff]  }
  0xc4   :  { %1903 = vmatprep.subr.bf16.mxu1 %v5887_v51  ;;  %v5971_v51 = vld [vmem:[#allocation2 + $0x6ac] ss:$16 sps:$4 sm:$0xff]  }
  0xc6   :  { %1863 = vmatpush1.bf16.msra.mxu0 %v5882_v62  ;;  %v5966_v62 = vld [vmem:[#allocation2 + $0x4a8] ss:$16 sps:$4 sm:$0xff]  }
  0xc7   :  { %1904 = vmatpush1.bf16.msra.mxu1 %v5885_v3  ;;  %1864 = vmatprep.subr.bf16.mxu0 %v5890_v52  ;;  %v5969_v3 = vld [vmem:[#allocation2 + $0x6a8] ss:$16 sps:$4 sm:$0xff]   ;;  %v5974_v52 = vld [vmem:[#allocation2 + $0x48c] ss:$16 sps:$4 sm:$0xff]  }
  0xc8   :  { %1905 = vmatprep.subr.bf16.mxu1 %v5893_v54  ;;  %v5977_v54 = vld [vmem:[#allocation2 + $0x68c] ss:$16 sps:$4 sm:$0xff]  }
  0xca   :  { %1865 = vmatpush1.bf16.msra.mxu0 %v5888_v55  ;;  %v5980_v55 = vld [vmem:[#allocation2 + $0x46c] ss:$16 sps:$4 sm:$0xff]  }
  0xcb   :  { %1906 = vmatpush1.bf16.msra.mxu1 %v5891_v56  ;;  %1866 = vmatprep.subr.bf16.mxu0 %v5896_v58  ;;  %v5983_v56 = vld [vmem:[#allocation2 + $0x66c] ss:$16 sps:$4 sm:$0xff]   ;;  %v5978_v58 = vld [vmem:[#allocation2 + $0x468] ss:$16 sps:$4 sm:$0xff]  }
  0xcc   :  { %1907 = vmatprep.subr.bf16.mxu1 %v5899_v59  ;;  %v5981_v59 = vld [vmem:[#allocation2 + $0x668] ss:$16 sps:$4 sm:$0xff]  }
  0xce   :  { %1867 = vmatpush1.bf16.msra.mxu0 %v5894_v60  ;;  %v5986_v60 = vld [vmem:[#allocation2 + $0x44c] ss:$16 sps:$4 sm:$0xff]  }
  0xcf   :  { %1908 = vmatpush1.bf16.msra.mxu1 %v5897_v61  ;;  %1868 = vmatprep.subr.bf16.mxu0 %v5902_v63  ;;  %v5987_v61 = vld [vmem:[#allocation2 + $0x648] ss:$16 sps:$4 sm:$0xff]   ;;  %v5992_v63 = vld [vmem:[#allocation2 + $0x42c] ss:$16 sps:$4 sm:$0xff]  }
  0xd0   :  { %1909 = vmatprep.subr.bf16.mxu1 %v5905_v0  ;;  %v5995_v0 = vld [vmem:[#allocation2 + $0x62c] ss:$16 sps:$4 sm:$0xff]  }
  0xd2   :  { %1869 = vmatpush1.bf16.msra.mxu0 %v5900_v1  ;;  %v5990_v1 = vld [vmem:[#allocation2 + $0x428] ss:$16 sps:$4 sm:$0xff]  }
  0xd3   :  { %1910 = vmatpush1.bf16.msra.mxu1 %v5903_v2  ;;  %1870 = vmatprep.subr.bf16.mxu0 %v5908_v4  ;;  %v5993_v2 = vld [vmem:[#allocation2 + $0x628] ss:$16 sps:$4 sm:$0xff]   ;;  %v5998_v4 = vld [vmem:[#allocation2 + $0x40c] ss:$16 sps:$4 sm:$0xff]  }
  0xd4   :  { %1911 = vmatprep.subr.bf16.mxu1 %v5911_v5  ;;  %v6001_v5 = vld [vmem:[#allocation2 + $0x60c] ss:$16 sps:$4 sm:$0xff]  }
  0xd6   :  { %1871 = vmatpush2.bf16.msra.mxu0 %v5906_v6  ;;  %v5996_v6 = vld [vmem:[#allocation2 + $0x408] ss:$16 sps:$4 sm:$0xff]  }
  0xd7   :  { %1912 = vmatpush2.bf16.msra.mxu1 %v5909_v7  ;;  %1872 = vmatprep.subr.bf16.mxu0 %v5914_v8  ;;  %v5999_v7 = vld [vmem:[#allocation2 + $0x608] ss:$16 sps:$4 sm:$0xff]   ;;  %v6004_v8 = vld [vmem:[#allocation2 + $0x5ec] ss:$16 sps:$4 sm:$0xff]  }
  0xd8   :  { %1913 = vmatprep.subr.bf16.mxu1 %v5917_v9  ;;  %v6007_v9 = vld [vmem:[#allocation2 + $0x7ec] ss:$16 sps:$4 sm:$0xff]  }
  0xda   :  { %1873 = vmatpush2.bf16.msra.mxu0 %v5912_v10  ;;  %v6002_v10 = vld [vmem:[#allocation2 + $0x5e8] ss:$16 sps:$4 sm:$0xff]  }
  0xdb   :  { %1914 = vmatpush2.bf16.msra.mxu1 %v5915_v11  ;;  %1874 = vmatprep.subr.bf16.mxu0 %v5920_v12  ;;  %v6005_v11 = vld [vmem:[#allocation2 + $0x7e8] ss:$16 sps:$4 sm:$0xff]   ;;  %v6010_v12 = vld [vmem:[#allocation2 + $0x5cc] ss:$16 sps:$4 sm:$0xff]  }
  0xdc   :  { %1915 = vmatprep.subr.bf16.mxu1 %v5923_v13  ;;  %v6013_v13 = vld [vmem:[#allocation2 + $0x7cc] ss:$16 sps:$4 sm:$0xff]  }
  0xde   :  { %1875 = vmatpush2.bf16.msra.mxu0 %v5918_v14  ;;  %v6008_v14 = vld [vmem:[#allocation2 + $0x5c8] ss:$16 sps:$4 sm:$0xff]  }
  0xdf   :  { %1916 = vmatpush2.bf16.msra.mxu1 %v5921_v15  ;;  %1876 = vmatprep.subr.bf16.mxu0 %v5926_v18  ;;  %v6011_v15 = vld [vmem:[#allocation2 + $0x7c8] ss:$16 sps:$4 sm:$0xff]   ;;  %v6016_v18 = vld [vmem:[#allocation2 + $0x5ac] ss:$16 sps:$4 sm:$0xff]  }
  0xe0   :  { %1917 = vmatprep.subr.bf16.mxu1 %v5929_v19  ;;  %v6019_v19 = vld [vmem:[#allocation2 + $0x7ac] ss:$16 sps:$4 sm:$0xff]  }
  0xe2   :  { %1877 = vmatpush2.bf16.msra.mxu0 %v5924_v20  ;;  %v6014_v20 = vld [vmem:[#allocation2 + $0x5a8] ss:$16 sps:$4 sm:$0xff]  }
  0xe3   :  { %1918 = vmatpush2.bf16.msra.mxu1 %v5927_v21  ;;  %1878 = vmatprep.subr.bf16.mxu0 %v5932_v22  ;;  %v6017_v21 = vld [vmem:[#allocation2 + $0x7a8] ss:$16 sps:$4 sm:$0xff]   ;;  %v6022_v22 = vld [vmem:[#allocation2 + $0x58c] ss:$16 sps:$4 sm:$0xff]  }
  0xe4   :  { %1919 = vmatprep.subr.bf16.mxu1 %v5935_v23  ;;  %v6025_v23 = vld [vmem:[#allocation2 + $0x78c] ss:$16 sps:$4 sm:$0xff]  }
  0xe6   :  { %1879 = vmatpush2.bf16.msra.mxu0 %v5930_v24  ;;  %v6020_v24 = vld [vmem:[#allocation2 + $0x588] ss:$16 sps:$4 sm:$0xff]  }
  0xe7   :  { %1920 = vmatpush2.bf16.msra.mxu1 %v5933_v25  ;;  %1880 = vmatprep.subr.bf16.mxu0 %v5938_v26  ;;  %v6023_v25 = vld [vmem:[#allocation2 + $0x788] ss:$16 sps:$4 sm:$0xff]   ;;  %v6028_v26 = vld [vmem:[#allocation2 + $0x56c] ss:$16 sps:$4 sm:$0xff]  }
  0xe8   :  { %1921 = vmatprep.subr.bf16.mxu1 %v5941_v27  ;;  %v6031_v27 = vld [vmem:[#allocation2 + $0x76c] ss:$16 sps:$4 sm:$0xff]  }
  0xea   :  { %1881 = vmatpush2.bf16.msra.mxu0 %v5936_v28  ;;  %v6026_v28 = vld [vmem:[#allocation2 + $0x568] ss:$16 sps:$4 sm:$0xff]  }
  0xeb   :  { %1922 = vmatpush2.bf16.msra.mxu1 %v5939_v29  ;;  %1882 = vmatprep.subr.bf16.mxu0 %v5944_v30  ;;  %v6029_v29 = vld [vmem:[#allocation2 + $0x768] ss:$16 sps:$4 sm:$0xff]   ;;  %v6034_v30 = vld [vmem:[#allocation2 + $0x54c] ss:$16 sps:$4 sm:$0xff]  }
  0xec   :  { %1923 = vmatprep.subr.bf16.mxu1 %v5947_v31  ;;  %v6037_v31 = vld [vmem:[#allocation2 + $0x74c] ss:$16 sps:$4 sm:$0xff]  }
  0xee   :  { %1883 = vmatpush2.bf16.msra.mxu0 %v5942_v34  ;;  %v6032_v34 = vld [vmem:[#allocation2 + $0x548] ss:$16 sps:$4 sm:$0xff]  }
  0xef   :  { %1924 = vmatpush2.bf16.msra.mxu1 %v5945_v35  ;;  %1884 = vmatprep.subr.bf16.mxu0 %v5950_v36  ;;  %v6035_v35 = vld [vmem:[#allocation2 + $0x748] ss:$16 sps:$4 sm:$0xff]   ;;  %v6040_v36 = vld [vmem:[#allocation2 + $0x52c] ss:$16 sps:$4 sm:$0xff]  }
  0xf0   :  { %1925 = vmatprep.subr.bf16.mxu1 %v5953_v37  ;;  %v6043_v37 = vld [vmem:[#allocation2 + $0x72c] ss:$16 sps:$4 sm:$0xff]  }
  0xf2   :  { %1885 = vmatpush2.bf16.msra.mxu0 %v5948_v38  ;;  %v6038_v38 = vld [vmem:[#allocation2 + $0x528] ss:$16 sps:$4 sm:$0xff]  }
  0xf3   :  { %1926 = vmatpush2.bf16.msra.mxu1 %v5951_v39  ;;  %1936 = vmatprep.subr.bf16.mxu0 %v5956_v40  ;;  %v6041_v39 = vld [vmem:[#allocation2 + $0x728] ss:$16 sps:$4 sm:$0xff]   ;;  %v6046_v40 = vld [vmem:[#allocation2 + $0x50c] ss:$16 sps:$4 sm:$0xff]  }
  0xf4   :  { %1977 = vmatprep.subr.bf16.mxu1 %v5959_v41  ;;  %v6049_v41 = vld [vmem:[#allocation2 + $0x70c] ss:$16 sps:$4 sm:$0xff]  }
  0xf5   :  { %1887 = vmatmul.mubr.bf16.vlgmr.msra.gmra.mxu0 %v6434_v16  ;;  %v5972_v16 = vld [vmem:[#allocation2 + $0x488] ss:$16 sps:$4 sm:$0xff]  }
  0xf6   :  { %1928 = vmatmul.mubr.bf16.vlgmr.msra.gmra.mxu1 %v6436_v17  ;;  %1937 = vmatpush1.bf16.msra.mxu0 %v5954_v42  ;;  %v5975_v17 = vld [vmem:[#allocation2 + $0x688] ss:$16 sps:$4 sm:$0xff]  }
  0xf7   :  { %1978 = vmatpush1.bf16.msra.mxu1 %v5957_v44  ;;  %1938 = vmatprep.subr.bf16.mxu0 %v5962_v45  ;;  %v6044_v42 = vld [vmem:[#allocation2 + $0x508] ss:$16 sps:$4 sm:$0xff]   ;;  %v6052_v45 = vld [vmem:[#allocation4 + $0x74] ss:$8 sps:$4 sm:$0xff]  }
  0xf8   :  { %1979 = vmatprep.subr.bf16.mxu1 %v5965_v46  ;;  %1968 = vmatprep.mubr.bf16.mxu0 %v6451_v53  ;;  %v5989_v53 = vld [vmem:[#allocation2 + $0x64c] ss:$16 sps:$4 sm:$0xff]   ;;  %v6047_v44 = vld [vmem:[#allocation2 + $0x708] ss:$16 sps:$4 sm:$0xff]  }
  0xf9   :  { %2009 = vmatprep.mubr.bf16.mxu1 %v6455_v57  ;;  %v5984_v57 = vld [vmem:[#allocation2 + $0x448] ss:$16 sps:$4 sm:$0xff]  }
  0xfa   :  { %1939 = vmatpush1.bf16.msra.mxu0 %v5960_v47  ;;  %v6050_v46 = vld [vmem:[#allocation4 + $0x70] ss:$8 sps:$4 sm:$0xff]   ;;  %v6055_v47 = vld [vmem:[#allocation4 + $0x64] ss:$8 sps:$4 sm:$0xff]  }
  0xfb   :  { %1980 = vmatpush1.bf16.msra.mxu1 %v5963_v48  ;;  %1940 = vmatprep.subr.bf16.mxu0 %v5968_v50 }
  0xfc   :  { %1981 = vmatprep.subr.bf16.mxu1 %v5971_v51  ;;  %v6053_v51 = vld [vmem:[#allocation4 + $0x60] ss:$8 sps:$4 sm:$0xff]  }
  0xfe   :  { %1941 = vmatpush1.bf16.msra.mxu0 %v5966_v62 }
  0xff   :  { %1982 = vmatpush1.bf16.msra.mxu1 %v5969_v3  ;;  %1942 = vmatprep.subr.bf16.mxu0 %v5974_v52  ;;  %v6058_v52 = vld [vmem:[#allocation4 + $0x54] ss:$8 sps:$4 sm:$0xff]  }
 0x100   :  { %1983 = vmatprep.subr.bf16.mxu1 %v5977_v54 }
 0x102   :  { %1943 = vmatpush1.bf16.msra.mxu0 %v5972_v16 }
 0x103   :  { %1984 = vmatpush1.bf16.msra.mxu1 %v5975_v17  ;;  %1944 = vmatprep.subr.bf16.mxu0 %v5980_v55  ;;  %v6056_v17 = vld [vmem:[#allocation4 + $0x50] ss:$8 sps:$4 sm:$0xff]  }
 0x104   :  { %1985 = vmatprep.subr.bf16.mxu1 %v5983_v56 }
 0x106   :  { %1945 = vmatpush1.bf16.msra.mxu0 %v5978_v58  ;;  %v6061_v58 = vld [vmem:[#allocation4 + $0x44] ss:$8 sps:$4 sm:$0xff]  }
 0x107   :  { %1986 = vmatpush1.bf16.msra.mxu1 %v5981_v59  ;;  %1946 = vmatprep.subr.bf16.mxu0 %v5986_v60  ;;  %v6098_v59 = vld [vmem:[#allocation4 + $0x170] ss:$8 sps:$4 sm:$0xff]   ;;  %v6103_v60 = vld [vmem:[#allocation4 + $0x164] ss:$8 sps:$4 sm:$0xff]  }
 0x108   :  { %1987 = vmatprep.subr.bf16.mxu1 %v5989_v53  ;;  %v6101_v53 = vld [vmem:[#allocation4 + $0x160] ss:$8 sps:$4 sm:$0xff]  }
 0x10a   :  { %1947 = vmatpush1.bf16.msra.mxu0 %v5984_v57  ;;  %v6064_v57 = vld [vmem:[#allocation4 + $0x34] ss:$8 sps:$4 sm:$0xff]  }
 0x10b   :  { %1988 = vmatpush1.bf16.msra.mxu1 %v5987_v61  ;;  %1948 = vmatprep.subr.bf16.mxu0 %v5992_v63  ;;  %v6106_v61 = vld [vmem:[#allocation4 + $0x154] ss:$8 sps:$4 sm:$0xff]   ;;  %v6062_v63 = vld [vmem:[#allocation4 + $0x30] ss:$8 sps:$4 sm:$0xff]  }
 0x10c   :  { %1989 = vmatprep.subr.bf16.mxu1 %v5995_v0  ;;  %v6104_v0 = vld [vmem:[#allocation4 + $0x150] ss:$8 sps:$4 sm:$0xff]  }
 0x10e   :  { %1949 = vmatpush1.bf16.msra.mxu0 %v5990_v1  ;;  %v6067_v1 = vld [vmem:[#allocation4 + $0x24] ss:$8 sps:$4 sm:$0xff]  }
 0x10f   :  { %1990 = vmatpush1.bf16.msra.mxu1 %v5993_v2  ;;  %1950 = vmatprep.subr.bf16.mxu0 %v5998_v4  ;;  %v6109_v2 = vld [vmem:[#allocation4 + $0x144] ss:$8 sps:$4 sm:$0xff]   ;;  %v6065_v4 = vld [vmem:[#allocation4 + $0x20] ss:$8 sps:$4 sm:$0xff]  }
 0x110   :  { %1991 = vmatprep.subr.bf16.mxu1 %v6001_v5  ;;  %v6107_v5 = vld [vmem:[#allocation4 + $0x140] ss:$8 sps:$4 sm:$0xff]  }
 0x112   :  { %1951 = vmatpush1.bf16.msra.mxu0 %v5996_v6  ;;  %v6070_v6 = vld [vmem:[#allocation4 + $0x14] ss:$8 sps:$4 sm:$0xff]  }
 0x113   :  { %1992 = vmatpush1.bf16.msra.mxu1 %v5999_v7  ;;  %1952 = vmatprep.subr.bf16.mxu0 %v6004_v8  ;;  %v6112_v7 = vld [vmem:[#allocation4 + $0x134] ss:$8 sps:$4 sm:$0xff]   ;;  %v6068_v8 = vld [vmem:[#allocation4 + $0x10] ss:$8 sps:$4 sm:$0xff]  }
 0x114   :  { %1993 = vmatprep.subr.bf16.mxu1 %v6007_v9  ;;  %v6110_v9 = vld [vmem:[#allocation4 + $0x130] ss:$8 sps:$4 sm:$0xff]  }
 0x116   :  { %1953 = vmatpush2.bf16.msra.mxu0 %v6002_v10  ;;  %v6073_v10 = vld [vmem:[#allocation4 + $0x4] ss:$8 sps:$4 sm:$0xff]  }
 0x117   :  { %1994 = vmatpush2.bf16.msra.mxu1 %v6005_v11  ;;  %1954 = vmatprep.subr.bf16.mxu0 %v6010_v12  ;;  %v6115_v11 = vld [vmem:[#allocation4 + $0x124] ss:$8 sps:$4 sm:$0xff]   ;;  %v6071_v12 = vld [vmem:[#allocation4] ss:$8 sps:$4 sm:$0xff]  }
 0x118   :  { %1995 = vmatprep.subr.bf16.mxu1 %v6013_v13  ;;  %v6113_v13 = vld [vmem:[#allocation4 + $0x120] ss:$8 sps:$4 sm:$0xff]  }
 0x11a   :  { %1955 = vmatpush2.bf16.msra.mxu0 %v6008_v14  ;;  %v6076_v14 = vld [vmem:[#allocation4 + $0xf4] ss:$8 sps:$4 sm:$0xff]  }
 0x11b   :  { %1996 = vmatpush2.bf16.msra.mxu1 %v6011_v15  ;;  %1956 = vmatprep.subr.bf16.mxu0 %v6016_v18  ;;  %v6118_v15 = vld [vmem:[#allocation4 + $0x114] ss:$8 sps:$4 sm:$0xff]   ;;  %v6074_v18 = vld [vmem:[#allocation4 + $0xf0] ss:$8 sps:$4 sm:$0xff]  }
 0x11c   :  { %1997 = vmatprep.subr.bf16.mxu1 %v6019_v19  ;;  %v6116_v19 = vld [vmem:[#allocation4 + $0x110] ss:$8 sps:$4 sm:$0xff]  }
 0x11e   :  { %1957 = vmatpush2.bf16.msra.mxu0 %v6014_v20  ;;  %v6079_v20 = vld [vmem:[#allocation4 + $0xe4] ss:$8 sps:$4 sm:$0xff]  }
 0x11f   :  { %1998 = vmatpush2.bf16.msra.mxu1 %v6017_v21  ;;  %1958 = vmatprep.subr.bf16.mxu0 %v6022_v22  ;;  %v6121_v21 = vld [vmem:[#allocation4 + $0x104] ss:$8 sps:$4 sm:$0xff]   ;;  %v6077_v22 = vld [vmem:[#allocation4 + $0xe0] ss:$8 sps:$4 sm:$0xff]  }
 0x120   :  { %1999 = vmatprep.subr.bf16.mxu1 %v6025_v23  ;;  %v6119_v23 = vld [vmem:[#allocation4 + $0x100] ss:$8 sps:$4 sm:$0xff]  }
 0x122   :  { %1959 = vmatpush2.bf16.msra.mxu0 %v6020_v24  ;;  %v6082_v24 = vld [vmem:[#allocation4 + $0xd4] ss:$8 sps:$4 sm:$0xff]  }
 0x123   :  { %2000 = vmatpush2.bf16.msra.mxu1 %v6023_v25  ;;  %1960 = vmatprep.subr.bf16.mxu0 %v6028_v26  ;;  %v6124_v25 = vld [vmem:[#allocation4 + $0x1f4] ss:$8 sps:$4 sm:$0xff]   ;;  %v6080_v26 = vld [vmem:[#allocation4 + $0xd0] ss:$8 sps:$4 sm:$0xff]  }
 0x124   :  { %2001 = vmatprep.subr.bf16.mxu1 %v6031_v27  ;;  %v6122_v27 = vld [vmem:[#allocation4 + $0x1f0] ss:$8 sps:$4 sm:$0xff]  }
 0x126   :  { %1961 = vmatpush2.bf16.msra.mxu0 %v6026_v28  ;;  %v6085_v28 = vld [vmem:[#allocation4 + $0xc4] ss:$8 sps:$4 sm:$0xff]  }
 0x127   :  { %2002 = vmatpush2.bf16.msra.mxu1 %v6029_v29  ;;  %1962 = vmatprep.subr.bf16.mxu0 %v6034_v30  ;;  %v6127_v29 = vld [vmem:[#allocation4 + $0x1e4] ss:$8 sps:$4 sm:$0xff]   ;;  %v6083_v30 = vld [vmem:[#allocation4 + $0xc0] ss:$8 sps:$4 sm:$0xff]  }
 0x128   :  { %2003 = vmatprep.subr.bf16.mxu1 %v6037_v31  ;;  %v6125_v31 = vld [vmem:[#allocation4 + $0x1e0] ss:$8 sps:$4 sm:$0xff]  }
 0x12a   :  { %1963 = vmatpush2.bf16.msra.mxu0 %v6032_v34  ;;  %v6088_v34 = vld [vmem:[#allocation4 + $0xb4] ss:$8 sps:$4 sm:$0xff]  }
 0x12b   :  { %2004 = vmatpush2.bf16.msra.mxu1 %v6035_v35  ;;  %1964 = vmatprep.subr.bf16.mxu0 %v6040_v36  ;;  %v6130_v35 = vld [vmem:[#allocation4 + $0x1d4] ss:$8 sps:$4 sm:$0xff]   ;;  %v6086_v36 = vld [vmem:[#allocation4 + $0xb0] ss:$8 sps:$4 sm:$0xff]  }
 0x12c   :  { %2005 = vmatprep.subr.bf16.mxu1 %v6043_v37  ;;  %v6128_v37 = vld [vmem:[#allocation4 + $0x1d0] ss:$8 sps:$4 sm:$0xff]  }
 0x12e   :  { %1965 = vmatpush2.bf16.msra.mxu0 %v6038_v38  ;;  %v6091_v38 = vld [vmem:[#allocation4 + $0xa4] ss:$8 sps:$4 sm:$0xff]  }
 0x12f   :  { %2006 = vmatpush2.bf16.msra.mxu1 %v6041_v39  ;;  %1966 = vmatprep.subr.bf16.mxu0 %v6046_v40  ;;  %v6133_v39 = vld [vmem:[#allocation4 + $0x1c4] ss:$8 sps:$4 sm:$0xff]   ;;  %v6089_v40 = vld [vmem:[#allocation4 + $0xa0] ss:$8 sps:$4 sm:$0xff]  }
 0x130   :  { %2007 = vmatprep.subr.bf16.mxu1 %v6049_v41  ;;  %v6131_v41 = vld [vmem:[#allocation4 + $0x1c0] ss:$8 sps:$4 sm:$0xff]  }
 0x132   :  { %1967 = vmatpush2.bf16.msra.mxu0 %v6044_v42  ;;  %v6094_v42 = vld [vmem:[#allocation4 + $0x94] ss:$8 sps:$4 sm:$0xff]  }
 0x133   :  { %2008 = vmatpush2.bf16.msra.mxu1 %v6047_v44  ;;  %2426 = vmatprep.subr.bf16.mxu0 %v6052_v45  ;;  %v6136_v44 = vld [vmem:[#allocation4 + $0x1b4] ss:$8 sps:$4 sm:$0xff]   ;;  %v6486_v45 = vsub.s32 0, %v6418_v43 }
 0x135   :  { %v6475_v48 = vpop.f32.mrf.mxu0  ;;  %1969 = vmatmul.mubr.bf16.vlgmr.msra.gmra.mxu0 %v6461_v32  ;;  %v6100_v32 = vld [vmem:[#allocation4 + $0x174] ss:$8 sps:$4 sm:$0xff]  }
 0x136   :  { %v6477_v50 = vpop.f32.mrf.mxu1  ;;  %2010 = vmatmul.mubr.bf16.vlgmr.msra.gmra.mxu1 %v6465_v33  ;;  %2427 = vmatpush1.bf16.msra.mxu0 %v6050_v46  ;;  %v6059_v33 = vld [vmem:[#allocation4 + $0x40] ss:$8 sps:$4 sm:$0xff]  }
 0x137   :  { %v6481_v62 = vpop.f32.mrf.mxu0  ;;  %2428 = vmatprep.subr.bf16.mxu0 %v6055_v47  ;;  %2467 = vmatprep.subr.bf16.mxu1 %v6100_v32  ;;  %v6491_v46 = vld [vmem:[%s6589_s5] sm:$0xf]  ;;  %v6494_v47 = vsub.s32 1, %v6418_v43 }
 0x138   :  { %v6483_v3 = vpop.f32.mrf.mxu1  ;;  %2468 = vmatpush1.bf16.msra.mxu1 %v6098_v59 }
 0x139   :  { %v1728_v54 = vpop.f32.mrf.mxu0  ;;  %2469 = vmatprep.subr.bf16.mxu1 %v6103_v60 }
 0x13a   :  { %v1769_v16 = vpop.f32.mrf.mxu1  ;;  %2429 = vmatpush1.bf16.msra.mxu0 %v6053_v51  ;;  %v6092_v51 = vld [vmem:[#allocation4 + $0x90] ss:$8 sps:$4 sm:$0xff]   ;;  %v6097_v54 = vld [vmem:[#allocation4 + $0x84] ss:$8 sps:$4 sm:$0xff]  }
 0x13b   :  { %v1729_v55 = vpop.f32.mrf.mxu0  ;;  %2430 = vmatprep.subr.bf16.mxu0 %v6058_v52  ;;  %v6134_v52 = vld [vmem:[#allocation4 + $0x1b0] ss:$8 sps:$4 sm:$0xff]   ;;  %v393_v16 = vrot.slane %v6491_v46, %v6486_v45 }
 0x13c   :  { %v1770_v56 = vpop.f32.mrf.mxu1  ;;  %2470 = vmatpush1.bf16.msra.mxu1 %v6101_v53  ;;  %v6095_v55 = vld [vmem:[#allocation4 + $0x80] ss:$8 sps:$4 sm:$0xff]  }
 0x13d   :  { %2471 = vmatprep.subr.bf16.mxu1 %v6106_v61  ;;  %v1725_v56 = vadd.f32 %v6475_v48, %v393_v16  ;;  %v6137_v61 = vld [vmem:[#allocation4 + $0x1a0] ss:$8 sps:$4 sm:$0xff]   ;;  %v6202_v16 = vld [vmem:[#allocation6 + $0x1c4] ss:$16 sps:$4 sm:$0xff]  }
 0x13e   :  { %2431 = vmatpush1.bf16.msra.mxu0 %v6056_v17  ;;  %v397_v17 = vrot.slane %v6491_v46, %v6494_v47 }
 0x13f   :  { %2432 = vmatprep.subr.bf16.mxu0 %v6061_v58  ;;  %v1766_v59 = vadd.f32 %v6477_v50, %v1725_v56  ;;  %v6200_v56 = vld [vmem:[#allocation6 + $0x1c0] ss:$16 sps:$4 sm:$0xff]  }
 0x140   :  { %2472 = vmatpush1.bf16.msra.mxu1 %v6104_v0  ;;  %v1727_v58 = vadd.f32 %v6481_v62, %v397_v17  ;;  %v6510_v17 = vsub.s32 3, %v6418_v43 }
 0x141   :  { %2473 = vmatprep.subr.bf16.mxu1 %v6109_v2 }
 0x142   :  { %2433 = vmatpush1.bf16.msra.mxu0 %v6059_v33  ;;  %v6139_v33 = vld [vmem:[#allocation4 + $0x1a4] ss:$8 sps:$4 sm:$0xff]   ;;  %v1768_v53 = vadd.f32 %v6483_v3, %v1727_v58 }
 0x143   :  { %2434 = vmatprep.subr.bf16.mxu0 %v6064_v57  ;;  %v6208_v58 = vld [vmem:[#allocation6 + $0x1a4] ss:$16 sps:$4 sm:$0xff]  }
 0x144   :  { %2474 = vmatpush1.bf16.msra.mxu1 %v6107_v5  ;;  %v6142_v5 = vld [vmem:[#allocation4 + $0x194] ss:$8 sps:$4 sm:$0xff]  }
 0x145   :  { %2475 = vmatprep.subr.bf16.mxu1 %v6112_v7  ;;  %v6140_v7 = vld [vmem:[#allocation4 + $0x190] ss:$8 sps:$4 sm:$0xff]  }
 0x146   :  { %2435 = vmatpush1.bf16.msra.mxu0 %v6062_v63 }
 0x147   :  { %2436 = vmatprep.subr.bf16.mxu0 %v6067_v1 }
 0x148   :  { %2476 = vmatpush1.bf16.msra.mxu1 %v6110_v9 }
 0x149   :  { %2477 = vmatprep.subr.bf16.mxu1 %v6115_v11 }
 0x14a   :  { %2437 = vmatpush1.bf16.msra.mxu0 %v6065_v4 }
 0x14b   :  { %2438 = vmatprep.subr.bf16.mxu0 %v6070_v6 }
 0x14c   :  { %2478 = vmatpush1.bf16.msra.mxu1 %v6113_v13 }
 0x14d   :  { %2479 = vmatprep.subr.bf16.mxu1 %v6118_v15 }
 0x14e   :  { %2439 = vmatpush1.bf16.msra.mxu0 %v6068_v8 }
 0x14f   :  { %2440 = vmatprep.subr.bf16.mxu0 %v6073_v10  ;;  %v6145_v10 = vld [vmem:[#allocation4 + $0x184] ss:$8 sps:$4 sm:$0xff]  }
 0x150   :  { %2480 = vmatpush1.bf16.msra.mxu1 %v6116_v19 }
 0x151   :  { %2481 = vmatprep.subr.bf16.mxu1 %v6121_v21 }
 0x152   :  { %2441 = vmatpush1.bf16.msra.mxu0 %v6071_v12  ;;  %v6143_v12 = vld [vmem:[#allocation4 + $0x180] ss:$8 sps:$4 sm:$0xff]  }
 0x153   :  { %2442 = vmatprep.subr.bf16.mxu0 %v6076_v14 }
 0x154   :  { %2482 = vmatpush1.bf16.msra.mxu1 %v6119_v23 }
 0x155   :  { %2483 = vmatprep.subr.bf16.mxu1 %v6124_v25  ;;  %v6146_v25 = vld [vmem:[#allocation6 + $0xe0] ss:$16 sps:$4 sm:$0xff]  }
 0x156   :  { %2443 = vmatpush2.bf16.msra.mxu0 %v6074_v18 }
 0x157   :  { %2444 = vmatprep.subr.bf16.mxu0 %v6079_v20 }
 0x158   :  { %2484 = vmatpush2.bf16.msra.mxu1 %v6122_v27  ;;  %v6151_v27 = vld [vmem:[#allocation6 + $0xec] ss:$16 sps:$4 sm:$0xff]  }
 0x159   :  { %2485 = vmatprep.subr.bf16.mxu1 %v6127_v29  ;;  %v6152_v29 = vld [vmem:[#allocation6 + $0xc0] ss:$16 sps:$4 sm:$0xff]  }
 0x15a   :  { %2445 = vmatpush2.bf16.msra.mxu0 %v6077_v22 }
 0x15b   :  { %2446 = vmatprep.subr.bf16.mxu0 %v6082_v24 }
 0x15c   :  { %2486 = vmatpush2.bf16.msra.mxu1 %v6125_v31  ;;  %v6158_v31 = vld [vmem:[#allocation6 + $0xa0] ss:$16 sps:$4 sm:$0xff]  }
 0x15d   :  { %2487 = vmatprep.subr.bf16.mxu1 %v6130_v35  ;;  %v6164_v35 = vld [vmem:[#allocation6 + $0x80] ss:$16 sps:$4 sm:$0xff]  }
 0x15e   :  { %2447 = vmatpush2.bf16.msra.mxu0 %v6080_v26  ;;  %v6148_v26 = vld [vmem:[#allocation6 + $0xe4] ss:$16 sps:$4 sm:$0xff]  }
 0x15f   :  { %2448 = vmatprep.subr.bf16.mxu0 %v6085_v28  ;;  %v6154_v28 = vld [vmem:[#allocation6 + $0xc4] ss:$16 sps:$4 sm:$0xff]  }
 0x160   :  { %2488 = vmatpush2.bf16.msra.mxu1 %v6128_v37  ;;  %v6170_v37 = vld [vmem:[#allocation6 + $0x60] ss:$16 sps:$4 sm:$0xff]  }
 0x161   :  { %2489 = vmatprep.subr.bf16.mxu1 %v6133_v39  ;;  %v6176_v39 = vld [vmem:[#allocation6 + $0x40] ss:$16 sps:$4 sm:$0xff]  }
 0x162   :  { %2449 = vmatpush2.bf16.msra.mxu0 %v6083_v30  ;;  %v6160_v30 = vld [vmem:[#allocation6 + $0xa4] ss:$16 sps:$4 sm:$0xff]  }
 0x163   :  { %2450 = vmatprep.subr.bf16.mxu0 %v6088_v34  ;;  %v6166_v34 = vld [vmem:[#allocation6 + $0x84] ss:$16 sps:$4 sm:$0xff]  }
 0x164   :  { %2490 = vmatpush2.bf16.msra.mxu1 %v6131_v41  ;;  %v6182_v41 = vld [vmem:[#allocation6 + $0x20] ss:$16 sps:$4 sm:$0xff]  }
 0x165   :  { %2491 = vmatprep.subr.bf16.mxu1 %v6136_v44  ;;  %v6188_v44 = vld [vmem:[#allocation6] ss:$16 sps:$4 sm:$0xff]  }
 0x166   :  { %2451 = vmatpush2.bf16.msra.mxu0 %v6086_v36  ;;  %v6172_v36 = vld [vmem:[#allocation6 + $0x64] ss:$16 sps:$4 sm:$0xff]  }
 0x167   :  { %2452 = vmatprep.subr.bf16.mxu0 %v6091_v38  ;;  %v6178_v38 = vld [vmem:[#allocation6 + $0x44] ss:$16 sps:$4 sm:$0xff]  }
 0x168   :  { %2492 = vmatpush2.bf16.msra.mxu1 %v6134_v52  ;;  %v6507_v52 = vsub.s32 2, %v6418_v43 }
 0x169   :  { %2493 = vmatprep.subr.bf16.mxu1 %v6139_v33  ;;  %v6214_v33 = vld [vmem:[#allocation6 + $0x184] ss:$16 sps:$4 sm:$0xff]  }
 0x16a   :  { %2453 = vmatpush2.bf16.msra.mxu0 %v6089_v40  ;;  %v6184_v40 = vld [vmem:[#allocation6 + $0x24] ss:$16 sps:$4 sm:$0xff]  }
 0x16b   :  { %2454 = vmatprep.subr.bf16.mxu0 %v6094_v42  ;;  %v6190_v42 = vld [vmem:[#allocation6 + $0x4] ss:$16 sps:$4 sm:$0xff]  }
 0x16c   :  { %2494 = vmatpush2.bf16.msra.mxu1 %v6137_v61  ;;  %v6212_v61 = vld [vmem:[#allocation6 + $0x180] ss:$16 sps:$4 sm:$0xff]  }
 0x16d   :  { %2495 = vmatprep.subr.bf16.mxu1 %v6142_v5 }
 0x16e   :  { %2455 = vmatpush2.bf16.msra.mxu0 %v6092_v51  ;;  %v6196_v51 = vld [vmem:[#allocation6 + $0x1e4] ss:$16 sps:$4 sm:$0xff]  }
 0x16f   :  { %2456 = vmatprep.subr.bf16.mxu0 %v6097_v54  ;;  %v6194_v54 = vld [vmem:[#allocation6 + $0x1e0] ss:$16 sps:$4 sm:$0xff]  }
 0x170   :  { %2496 = vmatpush2.bf16.msra.mxu1 %v6140_v7 }
 0x171   :  { %2497 = vmatprep.subr.bf16.mxu1 %v6145_v10 }
 0x172   :  { %2457 = vmatpush2.bf16.msra.mxu0 %v6095_v55  ;;  %v401_v55 = vrot.slane %v6491_v46, %v6507_v52 }
 0x173   :  { %2920 = vmatprep.subr.bf16.mxu0 %v6148_v26  ;;  %v6173_v26 = vld [vmem:[#allocation6 + $0x68] ss:$16 sps:$4 sm:$0xff]  }
 0x174   :  { %2498 = vmatpush2.bf16.msra.mxu1 %v6143_v12 }
 0x175   :  { %v1806_v32 = vpop.f32.mrf.mxu0  ;;  %2961 = vmatprep.subr.bf16.mxu1 %v6151_v27  ;;  %v6181_v27 = vld [vmem:[#allocation6 + $0x4c] ss:$16 sps:$4 sm:$0xff]  }
 0x176   :  { %v1847_v60 = vpop.f32.mrf.mxu1  ;;  %v1807_v57 = vadd.f32 %v1806_v32, %v1766_v59  ;;  %v405_v59 = vrot.slane %v6491_v46, %v6510_v17 }
 0x177   :  { %v1808_v63 = vpop.f32.mrf.mxu0 }
 0x178   :  { %v1849_v0 = vpop.f32.mrf.mxu1  ;;  %v1848_v1 = vadd.f32 %v1847_v60, %v1807_v57  ;;  %v1809_v2 = vadd.f32 %v1808_v63, %v1768_v53  ;;  %v6206_v60 = vld [vmem:[#allocation6 + $0x1a0] ss:$16 sps:$4 sm:$0xff]  }
 0x179   :  { %v1810_v4 = vpop.f32.mrf.mxu0 }
 0x17a   :  { %v1851_v48 = vpop.f32.mrf.mxu1  ;;  %v2018_v62 = vmul.f32 0.01, %v1848_v1  ;;  %v1850_v6 = vadd.f32 %v1849_v0, %v1809_v2 }
 0x17b   :  { %v1811_v50 = vpop.f32.mrf.mxu0 }
 0x17c   :  { %v1852_v8 = vpop.f32.mrf.mxu1  ;;  %v2019_v9 = vmul.f32 0.01, %v1850_v6  ;;  %v2022_v3 = vmax.f32 %v1848_v1, %v2018_v62  ;;  %v6220_v1 = vld [vmem:[#allocation6 + $0x164] ss:$16 sps:$4 sm:$0xff]  }
 0x17e   :  { %v2023_v11 = vmax.f32 %v1850_v6, %v2019_v9  ;;  %v2026_v14 = vpack.c.bf16 %v2022_v3, %v2022_v3  ;;  %v6218_v6 = vld [vmem:[#allocation6 + $0x160] ss:$16 sps:$4 sm:$0xff]  }
 0x180   :  { %v2027_v13 = vpack.c.bf16 %v2023_v11, %v2023_v11 }
 0x182   :  { %2458 = vmatprep.mubr.bf16.mxu0 %v2027_v13 }
 0x183   :  { %2459 = vmatmul.mubr.bf16.vlgmr.msra.gmra.mxu0 %v2026_v14 }
 0x184   :  { %2921 = vmatpush1.bf16.msra.mxu0 %v6146_v25  ;;  %v6175_v25 = vld [vmem:[#allocation6 + $0x6c] ss:$16 sps:$4 sm:$0xff]  }
 0x185   :  { %2922 = vmatprep.subr.bf16.mxu0 %v6154_v28  ;;  %v6179_v28 = vld [vmem:[#allocation6 + $0x48] ss:$16 sps:$4 sm:$0xff]  }
 0x188   :  { %2923 = vmatpush1.bf16.msra.mxu0 %v6152_v29  ;;  %v6187_v29 = vld [vmem:[#allocation6 + $0x2c] ss:$16 sps:$4 sm:$0xff]  }
 0x189   :  { %2924 = vmatprep.subr.bf16.mxu0 %v6160_v30  ;;  %v6185_v30 = vld [vmem:[#allocation6 + $0x28] ss:$16 sps:$4 sm:$0xff]  }
 0x18c   :  { %2925 = vmatpush1.bf16.msra.mxu0 %v6158_v31  ;;  %v6193_v31 = vld [vmem:[#allocation6 + $0xc] ss:$16 sps:$4 sm:$0xff]  }
 0x18d   :  { %2926 = vmatprep.subr.bf16.mxu0 %v6166_v34  ;;  %v6191_v34 = vld [vmem:[#allocation6 + $0x8] ss:$16 sps:$4 sm:$0xff]  }
 0x190   :  { %2927 = vmatpush1.bf16.msra.mxu0 %v6164_v35  ;;  %v6199_v35 = vld [vmem:[#allocation6 + $0x1ec] ss:$16 sps:$4 sm:$0xff]  }
 0x191   :  { %2928 = vmatprep.subr.bf16.mxu0 %v6172_v36  ;;  %v6197_v36 = vld [vmem:[#allocation6 + $0x1e8] ss:$16 sps:$4 sm:$0xff]  }
 0x194   :  { %2929 = vmatpush1.bf16.msra.mxu0 %v6170_v37  ;;  %v6205_v37 = vld [vmem:[#allocation6 + $0x1cc] ss:$16 sps:$4 sm:$0xff]  }
 0x195   :  { %2930 = vmatprep.subr.bf16.mxu0 %v6178_v38  ;;  %v6203_v38 = vld [vmem:[#allocation6 + $0x1c8] ss:$16 sps:$4 sm:$0xff]  }
 0x198   :  { %2931 = vmatpush1.bf16.msra.mxu0 %v6176_v39  ;;  %v6211_v39 = vld [vmem:[#allocation6 + $0x1ac] ss:$16 sps:$4 sm:$0xff]  }
 0x199   :  { %2932 = vmatprep.subr.bf16.mxu0 %v6184_v40  ;;  %v6209_v40 = vld [vmem:[#allocation6 + $0x1a8] ss:$16 sps:$4 sm:$0xff]  }
 0x19c   :  { %2933 = vmatpush1.bf16.msra.mxu0 %v6182_v41  ;;  %v6217_v41 = vld [vmem:[#allocation6 + $0x18c] ss:$16 sps:$4 sm:$0xff]  }
 0x19d   :  { %2934 = vmatprep.subr.bf16.mxu0 %v6190_v42  ;;  %v6215_v42 = vld [vmem:[#allocation6 + $0x188] ss:$16 sps:$4 sm:$0xff]  }
 0x1a0   :  { %2935 = vmatpush1.bf16.msra.mxu0 %v6188_v44  ;;  %v6223_v44 = vld [vmem:[#allocation6 + $0x16c] ss:$16 sps:$4 sm:$0xff]  }
 0x1a1   :  { %2936 = vmatprep.subr.bf16.mxu0 %v6196_v51  ;;  %v6221_v51 = vld [vmem:[#allocation6 + $0x168] ss:$16 sps:$4 sm:$0xff]  }
 0x1a4   :  { %2937 = vmatpush2.bf16.msra.mxu0 %v6194_v54  ;;  %v6226_v54 = vld [vmem:[#allocation6 + $0x144] ss:$16 sps:$4 sm:$0xff]  }
 0x1a5   :  { %2938 = vmatprep.subr.bf16.mxu0 %v6202_v16  ;;  %v6229_v16 = vld [vmem:[#allocation6 + $0x14c] ss:$16 sps:$4 sm:$0xff]  }
 0x1a8   :  { %2939 = vmatpush2.bf16.msra.mxu0 %v6200_v56  ;;  %v6227_v56 = vld [vmem:[#allocation6 + $0x148] ss:$16 sps:$4 sm:$0xff]  }
 0x1a9   :  { %2940 = vmatprep.subr.bf16.mxu0 %v6208_v58 }
 0x1ac   :  { %2941 = vmatpush2.bf16.msra.mxu0 %v6206_v60  ;;  %v6235_v60 = vld [vmem:[#allocation6 + $0x12c] ss:$16 sps:$4 sm:$0xff]  }
 0x1ad   :  { %2942 = vmatprep.subr.bf16.mxu0 %v6214_v33  ;;  %v6230_v33 = vld [vmem:[#allocation6 + $0x120] ss:$16 sps:$4 sm:$0xff]  }
 0x1b0   :  { %2943 = vmatpush2.bf16.msra.mxu0 %v6212_v61 }
 0x1b1   :  { %2944 = vmatprep.subr.bf16.mxu0 %v6220_v1  ;;  %v6236_v1 = vld [vmem:[#allocation6 + $0x100] ss:$16 sps:$4 sm:$0xff]  }
 0x1b4   :  { %2945 = vmatpush2.bf16.msra.mxu0 %v6218_v6  ;;  %v3202_v6 = vld [vmem:[#allocation7 + $0x5e0] sm:$0xff] }
 0x1b5   :  { %v1888_v15 = vpop.f32.mrf.mxu0  ;;  %2946 = vmatprep.subr.bf16.mxu0 %v6226_v54  ;;  %v3178_v54 = vld [vmem:[#allocation7 + $0x520] sm:$0xff] }
 0x1b6   :  { %v1929_v18 = vpop.f32.mrf.mxu1  ;;  %v1889_v32 = vadd.f32 %v1888_v15, %v401_v55  ;;  %v6149_v15 = vld [vmem:[#allocation6 + $0xe8] ss:$16 sps:$4 sm:$0xff]   ;;  %v6224_v55 = vld [vmem:[#allocation6 + $0x140] ss:$16 sps:$4 sm:$0xff]  }
 0x1b7   :  { %v1890_v19 = vpop.f32.mrf.mxu0 }
 0x1b8   :  { %v6504_v20 = vpop.f32.mrf.mxu1  ;;  %v1891_v53 = vadd.f32 %v1890_v19, %v405_v59  ;;  %v1930_v57 = vadd.f32 %v1929_v18, %v1889_v32  ;;  %v6157_v19 = vld [vmem:[#allocation6 + $0xcc] ss:$16 sps:$4 sm:$0xff]   ;;  %2947 = vmatpush2.bf16.msra.mxu0 %v6224_v55  ;;  %v6232_v32 = vld [vmem:[#allocation6 + $0x124] ss:$16 sps:$4 sm:$0xff]  }
 0x1b9   :  { %v1892_v21 = vpop.f32.mrf.mxu0  ;;  %2948 = vmatprep.subr.bf16.mxu0 %v6232_v32  ;;  %v3042_v32 = vld [vmem:[#allocation7 + $0xe0] sm:$0xff] }
 0x1ba   :  { %v1933_v22 = vpop.f32.mrf.mxu1  ;;  %v1932_v2 = vadd.f32 %v6504_v20, %v1891_v53  ;;  %v6155_v20 = vld [vmem:[#allocation6 + $0xc8] ss:$16 sps:$4 sm:$0xff]   ;;  %v6163_v21 = vld [vmem:[#allocation6 + $0xac] ss:$16 sps:$4 sm:$0xff]  }
 0x1bb   :  { %v1893_v23 = vpop.f32.mrf.mxu0  ;;  %v6161_v22 = vld [vmem:[#allocation6 + $0xa8] ss:$16 sps:$4 sm:$0xff]  }
 0x1bc   :  { %v1934_v24 = vpop.f32.mrf.mxu1  ;;  %v6169_v23 = vld [vmem:[#allocation6 + $0x8c] ss:$16 sps:$4 sm:$0xff]   ;;  %v6233_v53 = vld [vmem:[#allocation6 + $0x128] ss:$16 sps:$4 sm:$0xff]   ;;  %2949 = vmatpush2.bf16.msra.mxu0 %v6230_v33  ;;  %v3170_v33 = vld [vmem:[#allocation7 + $0x4e0] sm:$0xff] }
 0x1bd   :  { %v6167_v24 = vld [vmem:[#allocation6 + $0x88] ss:$16 sps:$4 sm:$0xff]  }
 0x1f5   :  { %v1970_v63 = vpop.f32.mrf.mxu0 }
 0x1f6   :  { %v2011_v0 = vpop.f32.mrf.mxu1  ;;  %v1971_v4 = vadd.f32 %v1970_v63, %v1930_v57  ;;  %v6238_v63 = vld [vmem:[#allocation6 + $0x104] ss:$16 sps:$4 sm:$0xff]  }
 0x1f7   :  { %v1972_v48 = vpop.f32.mrf.mxu0  ;;  %2950 = vmatprep.subr.bf16.mxu0 %v6238_v63 }
 0x1f8   :  { %v2013_v5 = vpop.f32.mrf.mxu1  ;;  %v2012_v62 = vadd.f32 %v2011_v0, %v1971_v4  ;;  %v1973_v46 = vadd.f32 %v1972_v48, %v1932_v2  ;;  %v6241_v0 = vld [vmem:[#allocation6 + $0x10c] ss:$16 sps:$4 sm:$0xff]   ;;  %v6239_v2 = vld [vmem:[#allocation6 + $0x108] ss:$16 sps:$4 sm:$0xff]   ;;  %2951 = vmatpush2.bf16.msra.mxu0 %v6236_v1  ;;  %v3070_v4 = vld [vmem:[#allocation7 + $0x1c0] sm:$0xff] }
 0x1f9   :  { %v1974_v7 = vpop.f32.mrf.mxu0  ;;  %v3074_v48 = vld [vmem:[#allocation7 + $0x1e0] sm:$0xff] }
 0x1fa   :  { %v2015_v50 = vpop.f32.mrf.mxu1  ;;  %v2020_v8 = vmul.f32 0.01, %v2012_v62  ;;  %v2014_v9 = vadd.f32 %v2013_v5, %v1973_v46  ;;  %v3198_v5 = vld [vmem:[#allocation7 + $0x5c0] sm:$0xff]  ;;  %v5454_v46 = vcombine.high %v3070_v4, %v3074_v48 }
 0x1fb   :  { %v1975_v3 = vpop.f32.mrf.mxu0  ;;  %v5581_v7 = vcombine.low %v3198_v5, %v3202_v6  ;;  %v5582_v50 = vcombine.high %v3198_v5, %v3202_v6  ;;  %v3034_v1 = vld [vmem:[#allocation7 + $0xa0] sm:$0xff] }
 0x1fc   :  { %v2016_v10 = vpop.f32.mrf.mxu1  ;;  %v2021_v11 = vmul.f32 0.01, %v2014_v9  ;;  %v2024_v12 = vmax.f32 %v2012_v62, %v2020_v8  ;;  %v5453_v62 = vcombine.low %v3070_v4, %v3074_v48  ;;  %4592 = vmatprep.subr.bf16.mxu0 %v5454_v46  ;;  %v2094_v8 = vld [vmem:[%s6589_s5 + $0x4] sm:$0x3] }
 0x1fd   :  { %v2103_v3 = vrot.slane %v2094_v8, %v6494_v47  ;;  %v3162_v4 = vld [vmem:[#allocation7 + $0x4a0] sm:$0xff] }
 0x1fe   :  { %v2025_v13 = vmax.f32 %v2014_v9, %v2021_v11  ;;  %v2028_v18 = vpack.c.bf16 %v2024_v12, %v2024_v12  ;;  %v2099_v9 = vrot.slane %v2094_v8, %v6486_v45  ;;  %v3022_v6 = vld [vmem:[#allocation7 + $0x40] sm:$0xff] }
 0x1ff   :  { %v3154_v8 = vld [vmem:[#allocation7 + $0x460] sm:$0xff] }
 0x200   :  { %v2029_v14 = vpack.c.bf16 %v2025_v13, %v2025_v13 }
 0x202   :  { %2499 = vmatprep.mubr.bf16.mxu1 %v2029_v14 }
 0x203   :  { %2500 = vmatmul.mubr.bf16.vlgmr.msra.gmra.mxu1 %v2028_v18 }
 0x204   :  { %2962 = vmatpush1.bf16.msra.mxu1 %v6149_v15 }
 0x205   :  { %2963 = vmatprep.subr.bf16.mxu1 %v6157_v19 }
 0x208   :  { %2964 = vmatpush1.bf16.msra.mxu1 %v6155_v20 }
 0x209   :  { %2965 = vmatprep.subr.bf16.mxu1 %v6163_v21 }
 0x20c   :  { %2966 = vmatpush1.bf16.msra.mxu1 %v6161_v22 }
 0x20d   :  { %2967 = vmatprep.subr.bf16.mxu1 %v6169_v23  ;;  %v3062_v23 = vld [vmem:[#allocation7 + $0x180] sm:$0xff] }
 0x210   :  { %2968 = vmatpush1.bf16.msra.mxu1 %v6167_v24 }
 0x211   :  { %2969 = vmatprep.subr.bf16.mxu1 %v6175_v25  ;;  %v3066_v25 = vld [vmem:[#allocation7 + $0x1a0] sm:$0xff] }
 0x214   :  { %2970 = vmatpush1.bf16.msra.mxu1 %v6173_v26  ;;  %v3190_v26 = vld [vmem:[#allocation7 + $0x580] sm:$0xff] }
 0x215   :  { %2971 = vmatprep.subr.bf16.mxu1 %v6181_v27  ;;  %v3194_v27 = vld [vmem:[#allocation7 + $0x5a0] sm:$0xff] }
 0x218   :  { %2972 = vmatpush1.bf16.msra.mxu1 %v6179_v28 }
 0x219   :  { %2973 = vmatprep.subr.bf16.mxu1 %v6187_v29 }
 0x21c   :  { %2974 = vmatpush1.bf16.msra.mxu1 %v6185_v30  ;;  %v5446_v30 = vcombine.high %v3062_v23, %v3066_v25 }
 0x21d   :  { %2975 = vmatprep.subr.bf16.mxu1 %v6193_v31  ;;  %v5574_v31 = vcombine.high %v3190_v26, %v3194_v27 }
 0x220   :  { %2976 = vmatpush1.bf16.msra.mxu1 %v6191_v34  ;;  %v3054_v34 = vld [vmem:[#allocation7 + $0x140] sm:$0xff] }
 0x221   :  { %2977 = vmatprep.subr.bf16.mxu1 %v6199_v35  ;;  %v3058_v35 = vld [vmem:[#allocation7 + $0x160] sm:$0xff] }
 0x224   :  { %2978 = vmatpush2.bf16.msra.mxu1 %v6197_v36  ;;  %v3182_v36 = vld [vmem:[#allocation7 + $0x540] sm:$0xff] }
 0x225   :  { %2979 = vmatprep.subr.bf16.mxu1 %v6205_v37  ;;  %v3186_v37 = vld [vmem:[#allocation7 + $0x560] sm:$0xff] }
 0x226   :  { %v5565_v55 = vcombine.low %v3182_v36, %v3186_v37 }
 0x228   :  { %2980 = vmatpush2.bf16.msra.mxu1 %v6203_v38  ;;  %v5445_v38 = vcombine.low %v3062_v23, %v3066_v25  ;;  %v3138_v23 = vld [vmem:[#allocation7 + $0x3e0] sm:$0xff] }
 0x229   :  { %2981 = vmatprep.subr.bf16.mxu1 %v6211_v39  ;;  %v5573_v39 = vcombine.low %v3190_v26, %v3194_v27  ;;  %v3266_v25 = vld [vmem:[#allocation7 + $0x7e0] sm:$0xff] }
 0x22c   :  { %2982 = vmatpush2.bf16.msra.mxu1 %v6209_v40  ;;  %v5438_v40 = vcombine.high %v3054_v34, %v3058_v35 }
 0x22d   :  { %2983 = vmatprep.subr.bf16.mxu1 %v6217_v41  ;;  %v5566_v41 = vcombine.high %v3182_v36, %v3186_v37 }
 0x230   :  { %2984 = vmatpush2.bf16.msra.mxu1 %v6215_v42  ;;  %v3046_v42 = vld [vmem:[#allocation7 + $0x100] sm:$0xff] }
 0x231   :  { %2985 = vmatprep.subr.bf16.mxu1 %v6223_v44  ;;  %v3050_v44 = vld [vmem:[#allocation7 + $0x120] sm:$0xff] }
 0x234   :  { %2986 = vmatpush2.bf16.msra.mxu1 %v6221_v51  ;;  %v3174_v51 = vld [vmem:[#allocation7 + $0x500] sm:$0xff] }
 0x235   :  { %2987 = vmatprep.subr.bf16.mxu1 %v6229_v16  ;;  %v5437_v16 = vcombine.low %v3054_v34, %v3058_v35  ;;  %v3254_v34 = vld [vmem:[#allocation7 + $0x780] sm:$0xff] }
 0x236   :  { %v3258_v35 = vld [vmem:[#allocation7 + $0x7a0] sm:$0xff] }
 0x238   :  { %2988 = vmatpush2.bf16.msra.mxu1 %v6227_v56  ;;  %v5430_v56 = vcombine.high %v3046_v42, %v3050_v44 }
 0x239   :  { %2989 = vmatprep.subr.bf16.mxu1 %v6235_v60  ;;  %v3166_v60 = vld [vmem:[#allocation7 + $0x4c0] sm:$0xff] }
 0x23a   :  { %v5550_v63 = vcombine.high %v3166_v60, %v3170_v33  ;;  %v5549_v5 = vcombine.low %v3166_v60, %v3170_v33 }
 0x23c   :  { %2990 = vmatpush2.bf16.msra.mxu1 %v6233_v53  ;;  %v5429_v53 = vcombine.low %v3046_v42, %v3050_v44  ;;  %v3246_v42 = vld [vmem:[#allocation7 + $0x740] sm:$0xff] }
 0x23d   :  { %2991 = vmatprep.subr.bf16.mxu1 %v6241_v0  ;;  %v3030_v0 = vld [vmem:[#allocation7 + $0x80] sm:$0xff] }
 0x23e   :  { %v3250_v44 = vld [vmem:[#allocation7 + $0x760] sm:$0xff] }
 0x23f   :  { %v5629_v33 = vcombine.low %v3246_v42, %v3250_v44 }
 0x240   :  { %2992 = vmatpush2.bf16.msra.mxu1 %v6239_v2  ;;  %v3158_v2 = vld [vmem:[#allocation7 + $0x480] sm:$0xff] }
 0x241   :  { %4633 = vmatprep.subr.bf16.mxu1 %v5582_v50  ;;  %v5542_v46 = vcombine.high %v3158_v2, %v3162_v4  ;;  %v3150_v50 = vld [vmem:[#allocation7 + $0x440] sm:$0xff] }
 0x243   :  { %v2460_v58 = vpop.f32.mrf.mxu0 }
 0x244   :  { %v2461_v10 = vadd.f32 %v2460_v58, %v2099_v9  ;;  %v5558_v58 = vcombine.high %v3174_v51, %v3178_v54  ;;  %v5413_v9 = vcombine.low %v3030_v0, %v3034_v1 }
 0x245   :  { %v2462_v59 = vpop.f32.mrf.mxu0 }
 0x246   :  { %v2463_v12 = vadd.f32 %v2462_v59, %v2103_v3  ;;  %v3038_v59 = vld [vmem:[#allocation7 + $0xc0] sm:$0xff]  ;;  %v5541_v3 = vcombine.low %v3158_v2, %v3162_v4 }
 0x247   :  { %v2464_v57 = vpop.f32.mrf.mxu0  ;;  %v5421_v48 = vcombine.low %v3038_v59, %v3042_v32 }
 0x248   :  { %v5557_v57 = vcombine.low %v3174_v51, %v3178_v54  ;;  %v5637_v54 = vcombine.low %v3254_v34, %v3258_v35 }
 0x249   :  { %v2465_v61 = vpop.f32.mrf.mxu0 }
 0x24a   :  { %v5422_v61 = vcombine.high %v3038_v59, %v3042_v32  ;;  %v3238_v59 = vld [vmem:[#allocation7 + $0x700] sm:$0xff] }
 0x24b   :  { %v3242_v32 = vld [vmem:[#allocation7 + $0x720] sm:$0xff] }
 0x24c   :  { %v5621_v4 = vcombine.low %v3238_v59, %v3242_v32 }
 0x2c3   :  { %v2501_v11 = vpop.f32.mrf.mxu1 }
 0x2c4   :  { %v2502_v13 = vadd.f32 %v2501_v11, %v2461_v10  ;;  %v5534_v11 = vcombine.high %v3150_v50, %v3154_v8 }
 0x2c5   :  { %v2503_v14 = vpop.f32.mrf.mxu1 }
 0x2c6   :  { %v2508_v15 = vmul.f32 0.01, %v2502_v13  ;;  %v2504_v18 = vadd.f32 %v2503_v14, %v2463_v12  ;;  %v3014_v12 = vld [vmem:[#allocation7] sm:$0xff] }
 0x2c7   :  { %v2505_v19 = vpop.f32.mrf.mxu1  ;;  %v3142_v14 = vld [vmem:[#allocation7 + $0x400] sm:$0xff] }
 0x2c8   :  { %v2509_v20 = vmul.f32 0.01, %v2504_v18  ;;  %v2510_v21 = vmax.f32 %v2502_v13, %v2508_v15  ;;  %v3018_v13 = vld [vmem:[#allocation7 + $0x20] sm:$0xff]  ;;  %v5533_v19 = vcombine.low %v3150_v50, %v3154_v8 }
 0x2c9   :  { %v2506_v22 = vpop.f32.mrf.mxu1  ;;  %v3146_v15 = vld [vmem:[#allocation7 + $0x420] sm:$0xff]  ;;  %v5397_v26 = vcombine.low %v3014_v12, %v3018_v13 }
 0x2ca   :  { %v2511_v24 = vmax.f32 %v2504_v18, %v2509_v20  ;;  %v2512_v29 = vpack.c.bf16 %v2510_v21, %v2510_v21  ;;  %v5398_v20 = vcombine.high %v3014_v12, %v3018_v13  ;;  %v5526_v21 = vcombine.high %v3142_v14, %v3146_v15  ;;  %v3134_v22 = vld [vmem:[#allocation7 + $0x3c0] sm:$0xff] }
 0x2cb   :  { %v5525_v27 = vcombine.low %v3142_v14, %v3146_v15  ;;  %v5517_v36 = vcombine.low %v3134_v22, %v3138_v23  ;;  %v3086_v12 = vld [vmem:[#allocation7 + $0x240] sm:$0xff] }
 0x2cc   :  { %v2513_v28 = vpack.c.bf16 %v2511_v24, %v2511_v24  ;;  %v3262_v24 = vld [vmem:[#allocation7 + $0x7c0] sm:$0xff] }
 0x2cd   :  { %v5645_v37 = vcombine.low %v3262_v24, %v3266_v25  ;;  %v3090_v13 = vld [vmem:[#allocation7 + $0x260] sm:$0xff] }
 0x2ce   :  { %2952 = vmatprep.mubr.bf16.mxu0 %v2513_v28  ;;  %2993 = vmatprep.mubr.bf16.mxu1 %v2513_v28  ;;  %v5518_v28 = vcombine.high %v3134_v22, %v3138_v23  ;;  %v3214_v14 = vld [vmem:[#allocation7 + $0x640] sm:$0xff]  ;;  %v5470_v15 = vcombine.high %v3086_v12, %v3090_v13 }
 0x2cf   :  { %2953 = vmatmul.mubr.bf16.vlgmr.msra.gmra.mxu0 %v2512_v29  ;;  %2994 = vmatmul.mubr.bf16.vlgmr.msra.gmra.mxu1 %v2512_v29  ;;  %v5646_v29 = vcombine.high %v3262_v24, %v3266_v25  ;;  %v3078_v22 = vld [vmem:[#allocation7 + $0x200] sm:$0xff] }
 0x2d0   :  { %4593 = vmatpush1.bf16.msra.mxu0 %v5453_v62  ;;  %4634 = vmatpush1.bf16.msra.mxu1 %v5581_v7  ;;  %v5414_v62 = vcombine.high %v3030_v0, %v3034_v1  ;;  %v3026_v7 = vld [vmem:[#allocation7 + $0x60] sm:$0xff] }
 0x2d1   :  { %4594 = vmatprep.subr.bf16.mxu0 %v5446_v30  ;;  %4635 = vmatprep.subr.bf16.mxu1 %v5574_v31  ;;  %v5406_v10 = vcombine.high %v3022_v6, %v3026_v7  ;;  %v5405_v18 = vcombine.low %v3022_v6, %v3026_v7  ;;  %v3126_v30 = vld [vmem:[#allocation7 + $0x380] sm:$0xff] }
 0x2d2   :  { %v3130_v31 = vld [vmem:[#allocation7 + $0x3a0] sm:$0xff] }
 0x2d3   :  { %v5509_v51 = vcombine.low %v3126_v30, %v3130_v31  ;;  %v3230_v0 = vld [vmem:[#allocation7 + $0x6c0] sm:$0xff] }
 0x2d4   :  { %4595 = vmatpush1.bf16.msra.mxu0 %v5445_v38  ;;  %4636 = vmatpush1.bf16.msra.mxu1 %v5573_v39  ;;  %v5510_v38 = vcombine.high %v3126_v30, %v3130_v31  ;;  %v5638_v39 = vcombine.high %v3254_v34, %v3258_v35  ;;  %v3234_v1 = vld [vmem:[#allocation7 + $0x6e0] sm:$0xff]  ;;  %v3071_v30 = vld [vmem:[#allocation7 + $0x1c8] sm:$0xff] }
 0x2d5   :  { %4596 = vmatprep.subr.bf16.mxu0 %v5438_v40  ;;  %4637 = vmatprep.subr.bf16.mxu1 %v5566_v41  ;;  %v3118_v40 = vld [vmem:[#allocation7 + $0x340] sm:$0xff]  ;;  %v5613_v8 = vcombine.low %v3230_v0, %v3234_v1  ;;  %v3075_v31 = vld [vmem:[#allocation7 + $0x1e8] sm:$0xff] }
 0x2d6   :  { %v3122_v41 = vld [vmem:[#allocation7 + $0x360] sm:$0xff]  ;;  %v3199_v34 = vld [vmem:[#allocation7 + $0x5c8] sm:$0xff]  ;;  %v5456_v35 = vcombine.high %v3071_v30, %v3075_v31 }
 0x2d7   :  { %v5501_v60 = vcombine.low %v3118_v40, %v3122_v41  ;;  %v3222_v6 = vld [vmem:[#allocation7 + $0x680] sm:$0xff] }
 0x2d8   :  { %4597 = vmatpush1.bf16.msra.mxu0 %v5437_v16  ;;  %4638 = vmatpush1.bf16.msra.mxu1 %v5565_v55  ;;  %v5502_v16 = vcombine.high %v3118_v40, %v3122_v41  ;;  %v5630_v55 = vcombine.high %v3246_v42, %v3250_v44  ;;  %v3226_v7 = vld [vmem:[#allocation7 + $0x6a0] sm:$0xff] }
 0x2d9   :  { %4598 = vmatprep.subr.bf16.mxu0 %v5430_v56  ;;  %4639 = vmatprep.subr.bf16.mxu1 %v5558_v58  ;;  %v3110_v56 = vld [vmem:[#allocation7 + $0x300] sm:$0xff] }
 0x2da   :  { %v3114_v58 = vld [vmem:[#allocation7 + $0x320] sm:$0xff] }
 0x2db   :  { %v5493_v2 = vcombine.low %v3110_v56, %v3114_v58  ;;  %v3082_v23 = vld [vmem:[#allocation7 + $0x220] sm:$0xff] }
 0x2dc   :  { %4599 = vmatpush1.bf16.msra.mxu0 %v5429_v53  ;;  %4640 = vmatpush1.bf16.msra.mxu1 %v5557_v57  ;;  %v5494_v53 = vcombine.high %v3110_v56, %v3114_v58  ;;  %v5622_v57 = vcombine.high %v3238_v59, %v3242_v32  ;;  %v3206_v24 = vld [vmem:[#allocation7 + $0x600] sm:$0xff]  ;;  %v5462_v25 = vcombine.high %v3078_v22, %v3082_v23 }
 0x2dd   :  { %4600 = vmatprep.subr.bf16.mxu0 %v5422_v61  ;;  %4641 = vmatprep.subr.bf16.mxu1 %v5550_v63  ;;  %v3102_v61 = vld [vmem:[#allocation7 + $0x2c0] sm:$0xff] }
 0x2de   :  { %v3106_v63 = vld [vmem:[#allocation7 + $0x2e0] sm:$0xff] }
 0x2df   :  { %v5485_v50 = vcombine.low %v3102_v61, %v3106_v63  ;;  %v2578_v40 = vld [vmem:[%s6589_s5 + $0x6] sm:$0xf] }
 0x2e0   :  { %4601 = vmatpush1.bf16.msra.mxu0 %v5421_v48  ;;  %4642 = vmatpush1.bf16.msra.mxu1 %v5549_v5  ;;  %v5486_v48 = vcombine.high %v3102_v61, %v3106_v63  ;;  %v5614_v5 = vcombine.high %v3230_v0, %v3234_v1  ;;  %v2583_v41 = vrot.slane %v2578_v40, %v6486_v45 }
 0x2e1   :  { %4602 = vmatprep.subr.bf16.mxu0 %v5414_v62  ;;  %4643 = vmatprep.subr.bf16.mxu1 %v5542_v46  ;;  %v3094_v62 = vld [vmem:[#allocation7 + $0x280] sm:$0xff]  ;;  %v2591_v42 = vrot.slane %v2578_v40, %v6507_v52  ;;  %v2587_v44 = vrot.slane %v2578_v40, %v6494_v47 }
 0x2e2   :  { %v3098_v46 = vld [vmem:[#allocation7 + $0x2a0] sm:$0xff] }
 0x2e4   :  { %4603 = vmatpush1.bf16.msra.mxu0 %v5413_v9  ;;  %4644 = vmatpush1.bf16.msra.mxu1 %v5541_v3  ;;  %v5478_v9 = vcombine.high %v3094_v62, %v3098_v46  ;;  %v5606_v3 = vcombine.high %v3222_v6, %v3226_v7 }
 0x2e5   :  { %4604 = vmatprep.subr.bf16.mxu0 %v5406_v10  ;;  %4645 = vmatprep.subr.bf16.mxu1 %v5534_v11  ;;  %v5477_v10 = vcombine.low %v3094_v62, %v3098_v46  ;;  %v5605_v11 = vcombine.low %v3222_v6, %v3226_v7  ;;  %v3063_v46 = vld [vmem:[#allocation7 + $0x188] sm:$0xff] }
 0x2e6   :  { %v3067_v6 = vld [vmem:[#allocation7 + $0x1a8] sm:$0xff] }
 0x2e7   :  { %v3191_v7 = vld [vmem:[#allocation7 + $0x588] sm:$0xff] }
 0x2e8   :  { %4605 = vmatpush1.bf16.msra.mxu0 %v5405_v18  ;;  %4646 = vmatpush1.bf16.msra.mxu1 %v5533_v19  ;;  %v3218_v18 = vld [vmem:[#allocation7 + $0x660] sm:$0xff]  ;;  %v5469_v19 = vcombine.low %v3086_v12, %v3090_v13  ;;  %v5448_v12 = vcombine.high %v3063_v46, %v3067_v6 }
 0x2e9   :  { %4606 = vmatprep.subr.bf16.mxu0 %v5398_v20  ;;  %4647 = vmatprep.subr.bf16.mxu1 %v5526_v21  ;;  %v5597_v20 = vcombine.low %v3214_v14, %v3218_v18  ;;  %v5598_v21 = vcombine.high %v3214_v14, %v3218_v18  ;;  %v3059_v14 = vld [vmem:[#allocation7 + $0x168] sm:$0xff] }
 0x2ea   :  { %v3187_v18 = vld [vmem:[#allocation7 + $0x568] sm:$0xff] }
 0x2ec   :  { %4607 = vmatpush1.bf16.msra.mxu0 %v5397_v26  ;;  %4648 = vmatpush1.bf16.msra.mxu1 %v5525_v27  ;;  %v3210_v26 = vld [vmem:[#allocation7 + $0x620] sm:$0xff]  ;;  %v5461_v27 = vcombine.low %v3078_v22, %v3082_v23  ;;  %v3047_v23 = vld [vmem:[#allocation7 + $0x108] sm:$0xff] }
 0x2ed   :  { %4608 = vmatprep.subr.bf16.mxu0 %v5518_v28  ;;  %4649 = vmatprep.subr.bf16.mxu1 %v5646_v29  ;;  %v5589_v28 = vcombine.low %v3206_v24, %v3210_v26  ;;  %v5590_v29 = vcombine.high %v3206_v24, %v3210_v26  ;;  %v3051_v24 = vld [vmem:[#allocation7 + $0x128] sm:$0xff] }
 0x2ee   :  { %v3179_v26 = vld [vmem:[#allocation7 + $0x528] sm:$0xff] }
 0x2f0   :  { %4609 = vmatpush2.bf16.msra.mxu0 %v5517_v36  ;;  %4650 = vmatpush2.bf16.msra.mxu1 %v5645_v37  ;;  %v3203_v36 = vld [vmem:[#allocation7 + $0x5e8] sm:$0xff]  ;;  %v5455_v37 = vcombine.low %v3071_v30, %v3075_v31 }
 0x2f1   :  { %4610 = vmatprep.subr.bf16.mxu0 %v5510_v38  ;;  %4651 = vmatprep.subr.bf16.mxu1 %v5638_v39  ;;  %v5583_v38 = vcombine.low %v3199_v34, %v3203_v36  ;;  %v5584_v39 = vcombine.high %v3199_v34, %v3203_v36  ;;  %v3039_v31 = vld [vmem:[#allocation7 + $0xc8] sm:$0xff] }
 0x2f2   :  { %v3043_v34 = vld [vmem:[#allocation7 + $0xe8] sm:$0xff] }
 0x2f3   :  { %v3171_v36 = vld [vmem:[#allocation7 + $0x4e8] sm:$0xff] }
 0x2f4   :  { %4611 = vmatpush2.bf16.msra.mxu0 %v5509_v51  ;;  %4652 = vmatpush2.bf16.msra.mxu1 %v5637_v54  ;;  %v2595_v51 = vrot.slane %v2578_v40, %v6510_v17 }
 0x2f5   :  { %4612 = vmatprep.subr.bf16.mxu0 %v5502_v16  ;;  %4653 = vmatprep.subr.bf16.mxu1 %v5630_v55 }
 0x2f8   :  { %4613 = vmatpush2.bf16.msra.mxu0 %v5501_v60  ;;  %4654 = vmatpush2.bf16.msra.mxu1 %v5629_v33 }
 0x2f9   :  { %4614 = vmatprep.subr.bf16.mxu0 %v5494_v53  ;;  %4655 = vmatprep.subr.bf16.mxu1 %v5622_v57 }
 0x2fc   :  { %4615 = vmatpush2.bf16.msra.mxu0 %v5493_v2  ;;  %4656 = vmatpush2.bf16.msra.mxu1 %v5621_v4 }
 0x2fd   :  { %4616 = vmatprep.subr.bf16.mxu0 %v5486_v48  ;;  %4657 = vmatprep.subr.bf16.mxu1 %v5614_v5 }
 0x300   :  { %4617 = vmatpush2.bf16.msra.mxu0 %v5485_v50  ;;  %4658 = vmatpush2.bf16.msra.mxu1 %v5613_v8  ;;  %v3195_v50 = vld [vmem:[#allocation7 + $0x5a8] sm:$0xff] }
 0x301   :  { %4618 = vmatprep.subr.bf16.mxu0 %v5478_v9  ;;  %4659 = vmatprep.subr.bf16.mxu1 %v5606_v3  ;;  %v5576_v13 = vcombine.high %v3191_v7, %v3195_v50 }
 0x304   :  { %4619 = vmatpush2.bf16.msra.mxu0 %v5477_v10  ;;  %4660 = vmatpush2.bf16.msra.mxu1 %v5605_v11  ;;  %v3055_v11 = vld [vmem:[#allocation7 + $0x148] sm:$0xff] }
 0x305   :  { %4620 = vmatprep.subr.bf16.mxu0 %v5470_v15  ;;  %4661 = vmatprep.subr.bf16.mxu1 %v5598_v21  ;;  %v3183_v15 = vld [vmem:[#allocation7 + $0x548] sm:$0xff]  ;;  %v5440_v21 = vcombine.high %v3055_v11, %v3059_v14 }
 0x306   :  { %v5568_v22 = vcombine.high %v3183_v15, %v3187_v18 }
 0x308   :  { %4621 = vmatpush2.bf16.msra.mxu0 %v5469_v19  ;;  %4662 = vmatpush2.bf16.msra.mxu1 %v5597_v20  ;;  %v5447_v19 = vcombine.low %v3063_v46, %v3067_v6  ;;  %v5575_v20 = vcombine.low %v3191_v7, %v3195_v50  ;;  %v3135_v46 = vld [vmem:[#allocation7 + $0x3c8] sm:$0xff] }
 0x309   :  { %4622 = vmatprep.subr.bf16.mxu0 %v5462_v25  ;;  %4663 = vmatprep.subr.bf16.mxu1 %v5590_v29  ;;  %v3175_v25 = vld [vmem:[#allocation7 + $0x508] sm:$0xff]  ;;  %v5432_v29 = vcombine.high %v3047_v23, %v3051_v24 }
 0x30a   :  { %v5560_v30 = vcombine.high %v3175_v25, %v3179_v26  ;;  %v3139_v6 = vld [vmem:[#allocation7 + $0x3e8] sm:$0xff] }
 0x30b   :  { %v3263_v7 = vld [vmem:[#allocation7 + $0x7c8] sm:$0xff] }
 0x30c   :  { %4623 = vmatpush2.bf16.msra.mxu0 %v5461_v27  ;;  %4664 = vmatpush2.bf16.msra.mxu1 %v5589_v28  ;;  %v5439_v27 = vcombine.low %v3055_v11, %v3059_v14  ;;  %v5567_v28 = vcombine.low %v3183_v15, %v3187_v18  ;;  %v3267_v50 = vld [vmem:[#allocation7 + $0x7e8] sm:$0xff] }
 0x30d   :  { %4674 = vmatprep.subr.bf16.mxu0 %v5456_v35  ;;  %4715 = vmatprep.subr.bf16.mxu1 %v5584_v39  ;;  %v3167_v35 = vld [vmem:[#allocation7 + $0x4c8] sm:$0xff]  ;;  %v5424_v39 = vcombine.high %v3039_v31, %v3043_v34  ;;  %v5648_v14 = vcombine.high %v3263_v7, %v3267_v50 }
 0x30e   :  { %v5552_v40 = vcombine.high %v3167_v35, %v3171_v36  ;;  %v3127_v15 = vld [vmem:[#allocation7 + $0x388] sm:$0xff] }
 0x30f   :  { %v3131_v18 = vld [vmem:[#allocation7 + $0x3a8] sm:$0xff] }
 0x38f   :  { %v2954_v54 = vpop.f32.mrf.mxu0  ;;  %v2995_v16 = vpop.f32.mrf.mxu1 }
 0x390   :  { %v2955_v55 = vadd.f32 %v2954_v54, %v2583_v41  ;;  %v2996_v56 = vadd.f32 %v2995_v16, %v2591_v42  ;;  %v3031_v41 = vld [vmem:[#allocation7 + $0x88] sm:$0xff]  ;;  %v5423_v54 = vcombine.low %v3039_v31, %v3043_v34  ;;  %v5551_v16 = vcombine.low %v3167_v35, %v3171_v36 }
 0x391   :  { %v2956_v58 = vpop.f32.mrf.mxu0  ;;  %v2997_v59 = vpop.f32.mrf.mxu1  ;;  %v3035_v42 = vld [vmem:[#allocation7 + $0xa8] sm:$0xff] }
 0x392   :  { %v3002_v32 = vmul.f32 0.01, %v2955_v55  ;;  %v3004_v60 = vmul.f32 0.01, %v2996_v56  ;;  %v2957_v33 = vadd.f32 %v2956_v58, %v2587_v44  ;;  %v2998_v53 = vadd.f32 %v2997_v59, %v2595_v51  ;;  %v3159_v44 = vld [vmem:[#allocation7 + $0x488] sm:$0xff] }
 0x393   :  { %v2958_v57 = vpop.f32.mrf.mxu0  ;;  %v2999_v61 = vpop.f32.mrf.mxu1  ;;  %v3163_v51 = vld [vmem:[#allocation7 + $0x4a8] sm:$0xff] }
 0x394   :  { %v3003_v63 = vmul.f32 0.01, %v2957_v33  ;;  %v3005_v0 = vmul.f32 0.01, %v2998_v53  ;;  %v3006_v1 = vmax.f32 %v2955_v55, %v3002_v32  ;;  %v3008_v2 = vmax.f32 %v2996_v56, %v3004_v60  ;;  %v3023_v58 = vld [vmem:[#allocation7 + $0x48] sm:$0xff] }
 0x395   :  { %v2959_v4 = vpop.f32.mrf.mxu0  ;;  %v3000_v48 = vpop.f32.mrf.mxu1  ;;  %v5416_v55 = vcombine.high %v3031_v41, %v3035_v42  ;;  %v5544_v56 = vcombine.high %v3159_v44, %v3163_v51  ;;  %v3027_v59 = vld [vmem:[#allocation7 + $0x68] sm:$0xff] }
 0x396   :  { %v3007_v5 = vmax.f32 %v2957_v33, %v3003_v63  ;;  %v3009_v62 = vmax.f32 %v2998_v53, %v3005_v0  ;;  %v6533_v3 = vpack.c.bf16 %v3006_v1, %v3006_v1  ;;  %v6535_v10 = vpack.c.bf16 %v3008_v2, %v3008_v2  ;;  %v3151_v32 = vld [vmem:[#allocation7 + $0x448] sm:$0xff] }
 0x397   :  { %v3155_v60 = vld [vmem:[#allocation7 + $0x468] sm:$0xff]  ;;  %v5415_v33 = vcombine.low %v3031_v41, %v3035_v42  ;;  %v5543_v53 = vcombine.low %v3159_v44, %v3163_v51  ;;  %v5408_v57 = vcombine.high %v3023_v58, %v3027_v59  ;;  %v5407_v4 = vcombine.low %v3023_v58, %v3027_v59 }
 0x398   :  { %v6529_v8 = vpack.c.bf16 %v3007_v5, %v3007_v5  ;;  %v6531_v9 = vpack.c.bf16 %v3009_v62, %v3009_v62  ;;  %v5536_v61 = vcombine.high %v3151_v32, %v3155_v60  ;;  %v3015_v63 = vld [vmem:[#allocation7 + $0x8] sm:$0xff]  ;;  %v5535_v48 = vcombine.low %v3151_v32, %v3155_v60 }
 0x399   :  { %v3019_v0 = vld [vmem:[#allocation7 + $0x28] sm:$0xff] }
 0x39a   :  { %4624 = vmatprep.mubr.bf16.mxu0 %v6529_v8  ;;  %4665 = vmatprep.mubr.bf16.mxu1 %v6531_v9  ;;  %v3143_v1 = vld [vmem:[#allocation7 + $0x408] sm:$0xff]  ;;  %v5400_v5 = vcombine.high %v3015_v63, %v3019_v0  ;;  %v5399_v11 = vcombine.low %v3015_v63, %v3019_v0 }
 0x39b   :  { %4625 = vmatmul.mubr.bf16.vlgmr.msra.gmra.mxu0 %v6533_v3  ;;  %4666 = vmatmul.mubr.bf16.vlgmr.msra.gmra.mxu1 %v6535_v10  ;;  %v3147_v2 = vld [vmem:[#allocation7 + $0x428] sm:$0xff] }
 0x39c   :  { %4675 = vmatpush1.bf16.msra.mxu0 %v5455_v37  ;;  %4716 = vmatpush1.bf16.msra.mxu1 %v5583_v38  ;;  %v5431_v37 = vcombine.low %v3047_v23, %v3051_v24  ;;  %v5559_v38 = vcombine.low %v3175_v25, %v3179_v26  ;;  %v5528_v62 = vcombine.high %v3143_v1, %v3147_v2  ;;  %v3119_v25 = vld [vmem:[#allocation7 + $0x348] sm:$0xff] }
 0x39d   :  { %4706 = vmatprep.mubr.bf16.mxu0 %v6529_v8  ;;  %4747 = vmatprep.mubr.bf16.mxu1 %v6531_v9  ;;  %v5512_v23 = vcombine.high %v3127_v15, %v3131_v18  ;;  %v3123_v26 = vld [vmem:[#allocation7 + $0x368] sm:$0xff] }
 0x39e   :  { %4676 = vmatprep.subr.bf16.mxu0 %v5448_v12  ;;  %4717 = vmatprep.subr.bf16.mxu1 %v5576_v13  ;;  %v5527_v12 = vcombine.low %v3143_v1, %v3147_v2  ;;  %v5520_v13 = vcombine.high %v3135_v46, %v3139_v6  ;;  %v5504_v31 = vcombine.high %v3119_v25, %v3123_v26  ;;  %v3111_v35 = vld [vmem:[#allocation7 + $0x308] sm:$0xff] }
 0x39f   :  { %v3115_v36 = vld [vmem:[#allocation7 + $0x328] sm:$0xff] }
 0x3a0   :  { %4677 = vmatpush1.bf16.msra.mxu0 %v5447_v19  ;;  %4718 = vmatpush1.bf16.msra.mxu1 %v5575_v20  ;;  %v3255_v19 = vld [vmem:[#allocation7 + $0x788] sm:$0xff]  ;;  %v5496_v41 = vcombine.high %v3111_v35, %v3115_v36 }
 0x3a1   :  { %4678 = vmatprep.subr.bf16.mxu0 %v5440_v21  ;;  %4719 = vmatprep.subr.bf16.mxu1 %v5568_v22  ;;  %v3259_v20 = vld [vmem:[#allocation7 + $0x7a8] sm:$0xff]  ;;  %v5519_v21 = vcombine.low %v3135_v46, %v3139_v6  ;;  %v5647_v22 = vcombine.low %v3263_v7, %v3267_v50 }
 0x3a2   :  { %v5640_v24 = vcombine.high %v3255_v19, %v3259_v20  ;;  %v3103_v44 = vld [vmem:[#allocation7 + $0x2c8] sm:$0xff] }
 0x3a3   :  { %v3107_v51 = vld [vmem:[#allocation7 + $0x2e8] sm:$0xff] }
 0x3a4   :  { %4679 = vmatpush1.bf16.msra.mxu0 %v5439_v27  ;;  %4720 = vmatpush1.bf16.msra.mxu1 %v5567_v28  ;;  %v3247_v27 = vld [vmem:[#allocation7 + $0x748] sm:$0xff]  ;;  %v5488_v58 = vcombine.high %v3103_v44, %v3107_v51 }
 0x3a5   :  { %4680 = vmatprep.subr.bf16.mxu0 %v5432_v29  ;;  %4721 = vmatprep.subr.bf16.mxu1 %v5560_v30  ;;  %v3251_v28 = vld [vmem:[#allocation7 + $0x768] sm:$0xff]  ;;  %v5511_v29 = vcombine.low %v3127_v15, %v3131_v18  ;;  %v5639_v30 = vcombine.low %v3255_v19, %v3259_v20  ;;  %v3072_v19 = vld [vmem:[#allocation7 + $0x1d0] sm:$0xff] }
 0x3a6   :  { %v5632_v34 = vcombine.high %v3247_v27, %v3251_v28  ;;  %v3095_v32 = vld [vmem:[#allocation7 + $0x288] sm:$0xff]  ;;  %v3076_v20 = vld [vmem:[#allocation7 + $0x1f0] sm:$0xff] }
 0x3a7   :  { %v3099_v60 = vld [vmem:[#allocation7 + $0x2a8] sm:$0xff] }
 0x3a8   :  { %4681 = vmatpush1.bf16.msra.mxu0 %v5431_v37  ;;  %4722 = vmatpush1.bf16.msra.mxu1 %v5559_v38  ;;  %v3239_v37 = vld [vmem:[#allocation7 + $0x708] sm:$0xff]  ;;  %v5480_v63 = vcombine.high %v3095_v32, %v3099_v60 }
 0x3a9   :  { %4682 = vmatprep.subr.bf16.mxu0 %v5424_v39  ;;  %4723 = vmatprep.subr.bf16.mxu1 %v5552_v40  ;;  %v3243_v38 = vld [vmem:[#allocation7 + $0x728] sm:$0xff]  ;;  %v5503_v39 = vcombine.low %v3119_v25, %v3123_v26  ;;  %v5631_v40 = vcombine.low %v3247_v27, %v3251_v28  ;;  %v5458_v25 = vcombine.high %v3072_v19, %v3076_v20  ;;  %v3064_v27 = vld [vmem:[#allocation7 + $0x190] sm:$0xff] }
 0x3aa   :  { %v5624_v42 = vcombine.high %v3239_v37, %v3243_v38  ;;  %v3087_v1 = vld [vmem:[#allocation7 + $0x248] sm:$0xff]  ;;  %v3068_v28 = vld [vmem:[#allocation7 + $0x1b0] sm:$0xff] }
 0x3ab   :  { %v3091_v2 = vld [vmem:[#allocation7 + $0x268] sm:$0xff] }
 0x3ac   :  { %4683 = vmatpush1.bf16.msra.mxu0 %v5423_v54  ;;  %4724 = vmatpush1.bf16.msra.mxu1 %v5551_v16  ;;  %v3231_v54 = vld [vmem:[#allocation7 + $0x6c8] sm:$0xff]  ;;  %v5472_v46 = vcombine.high %v3087_v1, %v3091_v2 }
 0x3ad   :  { %4684 = vmatprep.subr.bf16.mxu0 %v5416_v55  ;;  %4725 = vmatprep.subr.bf16.mxu1 %v5544_v56  ;;  %v3235_v16 = vld [vmem:[#allocation7 + $0x6e8] sm:$0xff]  ;;  %v5495_v55 = vcombine.low %v3111_v35, %v3115_v36  ;;  %v5623_v56 = vcombine.low %v3239_v37, %v3243_v38  ;;  %v5450_v35 = vcombine.high %v3064_v27, %v3068_v28  ;;  %v3056_v37 = vld [vmem:[#allocation7 + $0x150] sm:$0xff] }
 0x3ae   :  { %v5616_v59 = vcombine.high %v3231_v54, %v3235_v16  ;;  %v3079_v7 = vld [vmem:[#allocation7 + $0x208] sm:$0xff]  ;;  %v3060_v38 = vld [vmem:[#allocation7 + $0x170] sm:$0xff] }
 0x3af   :  { %v3083_v50 = vld [vmem:[#allocation7 + $0x228] sm:$0xff] }
 0x3b0   :  { %4685 = vmatpush1.bf16.msra.mxu0 %v5415_v33  ;;  %4726 = vmatpush1.bf16.msra.mxu1 %v5543_v53  ;;  %v3223_v33 = vld [vmem:[#allocation7 + $0x688] sm:$0xff]  ;;  %v5464_v15 = vcombine.high %v3079_v7, %v3083_v50 }
 0x3b1   :  { %4686 = vmatprep.subr.bf16.mxu0 %v5408_v57  ;;  %4727 = vmatprep.subr.bf16.mxu1 %v5536_v61  ;;  %v3227_v53 = vld [vmem:[#allocation7 + $0x6a8] sm:$0xff]  ;;  %v5487_v57 = vcombine.low %v3103_v44, %v3107_v51  ;;  %v5615_v61 = vcombine.low %v3231_v54, %v3235_v16  ;;  %v5442_v44 = vcombine.high %v3056_v37, %v3060_v38  ;;  %v3048_v54 = vld [vmem:[#allocation7 + $0x110] sm:$0xff] }
 0x3b2   :  { %v5608_v0 = vcombine.high %v3223_v33, %v3227_v53  ;;  %v3052_v16 = vld [vmem:[#allocation7 + $0x130] sm:$0xff] }
 0x3b4   :  { %4687 = vmatpush1.bf16.msra.mxu0 %v5407_v4  ;;  %4728 = vmatpush1.bf16.msra.mxu1 %v5535_v48  ;;  %v3215_v4 = vld [vmem:[#allocation7 + $0x648] sm:$0xff] }
 0x3b5   :  { %4688 = vmatprep.subr.bf16.mxu0 %v5400_v5  ;;  %4729 = vmatprep.subr.bf16.mxu1 %v5528_v62  ;;  %v3219_v48 = vld [vmem:[#allocation7 + $0x668] sm:$0xff]  ;;  %v5479_v5 = vcombine.low %v3095_v32, %v3099_v60  ;;  %v5607_v62 = vcombine.low %v3223_v33, %v3227_v53  ;;  %v5434_v32 = vcombine.high %v3048_v54, %v3052_v16  ;;  %v3040_v33 = vld [vmem:[#allocation7 + $0xd0] sm:$0xff] }
 0x3b6   :  { %v5600_v6 = vcombine.high %v3215_v4, %v3219_v48  ;;  %v3044_v53 = vld [vmem:[#allocation7 + $0xf0] sm:$0xff] }
 0x3b8   :  { %4689 = vmatpush1.bf16.msra.mxu0 %v5399_v11  ;;  %4730 = vmatpush1.bf16.msra.mxu1 %v5527_v12  ;;  %v3207_v11 = vld [vmem:[#allocation7 + $0x608] sm:$0xff] }
 0x3b9   :  { %4690 = vmatprep.subr.bf16.mxu0 %v5520_v13  ;;  %4731 = vmatprep.subr.bf16.mxu1 %v5648_v14  ;;  %v3211_v12 = vld [vmem:[#allocation7 + $0x628] sm:$0xff]  ;;  %v5471_v13 = vcombine.low %v3087_v1, %v3091_v2  ;;  %v5599_v14 = vcombine.low %v3215_v4, %v3219_v48  ;;  %v5426_v1 = vcombine.high %v3040_v33, %v3044_v53  ;;  %v3032_v4 = vld [vmem:[#allocation7 + $0x90] sm:$0xff] }
 0x3ba   :  { %v5592_v18 = vcombine.high %v3207_v11, %v3211_v12  ;;  %v3036_v48 = vld [vmem:[#allocation7 + $0xb0] sm:$0xff] }
 0x3bc   :  { %4691 = vmatpush2.bf16.msra.mxu0 %v5519_v21  ;;  %4732 = vmatpush2.bf16.msra.mxu1 %v5647_v22  ;;  %v3200_v21 = vld [vmem:[#allocation7 + $0x5d0] sm:$0xff] }
 0x3bd   :  { %4692 = vmatprep.subr.bf16.mxu0 %v5512_v23  ;;  %4733 = vmatprep.subr.bf16.mxu1 %v5640_v24  ;;  %v3204_v22 = vld [vmem:[#allocation7 + $0x5f0] sm:$0xff]  ;;  %v5463_v23 = vcombine.low %v3079_v7, %v3083_v50  ;;  %v5591_v24 = vcombine.low %v3207_v11, %v3211_v12  ;;  %v5418_v7 = vcombine.high %v3032_v4, %v3036_v48 }
 0x3be   :  { %v5586_v26 = vcombine.high %v3200_v21, %v3204_v22  ;;  %v3024_v11 = vld [vmem:[#allocation7 + $0x50] sm:$0xff] }
 0x3bf   :  { %v3028_v12 = vld [vmem:[#allocation7 + $0x70] sm:$0xff] }
 0x3c0   :  { %4693 = vmatpush2.bf16.msra.mxu0 %v5511_v29  ;;  %4734 = vmatpush2.bf16.msra.mxu1 %v5639_v30  ;;  %v3192_v29 = vld [vmem:[#allocation7 + $0x590] sm:$0xff] }
 0x3c1   :  { %4694 = vmatprep.subr.bf16.mxu0 %v5504_v31  ;;  %4735 = vmatprep.subr.bf16.mxu1 %v5632_v34  ;;  %v3196_v30 = vld [vmem:[#allocation7 + $0x5b0] sm:$0xff]  ;;  %v5457_v31 = vcombine.low %v3072_v19, %v3076_v20  ;;  %v5585_v34 = vcombine.low %v3200_v21, %v3204_v22  ;;  %v5410_v19 = vcombine.high %v3024_v11, %v3028_v12 }
 0x3c2   :  { %v5578_v36 = vcombine.high %v3192_v29, %v3196_v30  ;;  %v3016_v21 = vld [vmem:[#allocation7 + $0x10] sm:$0xff] }
 0x3c3   :  { %v3020_v22 = vld [vmem:[#allocation7 + $0x30] sm:$0xff] }
 0x3c4   :  { %4695 = vmatpush2.bf16.msra.mxu0 %v5503_v39  ;;  %4736 = vmatpush2.bf16.msra.mxu1 %v5631_v40  ;;  %v3184_v39 = vld [vmem:[#allocation7 + $0x550] sm:$0xff] }
 0x3c5   :  { %4696 = vmatprep.subr.bf16.mxu0 %v5496_v41  ;;  %4737 = vmatprep.subr.bf16.mxu1 %v5624_v42  ;;  %v3188_v40 = vld [vmem:[#allocation7 + $0x570] sm:$0xff]  ;;  %v5449_v41 = vcombine.low %v3064_v27, %v3068_v28  ;;  %v5577_v42 = vcombine.low %v3192_v29, %v3196_v30  ;;  %v5402_v27 = vcombine.high %v3016_v21, %v3020_v22 }
 0x3c6   :  { %v5570_v51 = vcombine.high %v3184_v39, %v3188_v40  ;;  %v3136_v29 = vld [vmem:[#allocation7 + $0x3d0] sm:$0xff] }
 0x3c7   :  { %v3140_v30 = vld [vmem:[#allocation7 + $0x3f0] sm:$0xff] }
 0x3c8   :  { %4697 = vmatpush2.bf16.msra.mxu0 %v5495_v55  ;;  %4738 = vmatpush2.bf16.msra.mxu1 %v5623_v56  ;;  %v3176_v55 = vld [vmem:[#allocation7 + $0x510] sm:$0xff] }
 0x3c9   :  { %4698 = vmatprep.subr.bf16.mxu0 %v5488_v58  ;;  %4739 = vmatprep.subr.bf16.mxu1 %v5616_v59  ;;  %v3180_v56 = vld [vmem:[#allocation7 + $0x530] sm:$0xff]  ;;  %v5441_v58 = vcombine.low %v3056_v37, %v3060_v38  ;;  %v5569_v59 = vcombine.low %v3184_v39, %v3188_v40  ;;  %v5522_v37 = vcombine.high %v3136_v29, %v3140_v30 }
 0x3ca   :  { %v5562_v60 = vcombine.high %v3176_v55, %v3180_v56  ;;  %v3128_v39 = vld [vmem:[#allocation7 + $0x390] sm:$0xff] }
 0x3cb   :  { %v3132_v40 = vld [vmem:[#allocation7 + $0x3b0] sm:$0xff] }
 0x3cc   :  { %4699 = vmatpush2.bf16.msra.mxu0 %v5487_v57  ;;  %4740 = vmatpush2.bf16.msra.mxu1 %v5615_v61  ;;  %v3168_v57 = vld [vmem:[#allocation7 + $0x4d0] sm:$0xff] }
 0x3cd   :  { %4700 = vmatprep.subr.bf16.mxu0 %v5480_v63  ;;  %4741 = vmatprep.subr.bf16.mxu1 %v5608_v0  ;;  %v3172_v61 = vld [vmem:[#allocation7 + $0x4f0] sm:$0xff]  ;;  %v5433_v63 = vcombine.low %v3048_v54, %v3052_v16  ;;  %v5561_v0 = vcombine.low %v3176_v55, %v3180_v56  ;;  %v5514_v54 = vcombine.high %v3128_v39, %v3132_v40 }
 0x3ce   :  { %v5554_v2 = vcombine.high %v3168_v57, %v3172_v61  ;;  %v3120_v55 = vld [vmem:[#allocation7 + $0x350] sm:$0xff] }
 0x3cf   :  { %v3124_v56 = vld [vmem:[#allocation7 + $0x370] sm:$0xff] }
 0x3d0   :  { %4701 = vmatpush2.bf16.msra.mxu0 %v5479_v5  ;;  %4742 = vmatpush2.bf16.msra.mxu1 %v5607_v62  ;;  %v3160_v5 = vld [vmem:[#allocation7 + $0x490] sm:$0xff] }
 0x3d1   :  { %4702 = vmatprep.subr.bf16.mxu0 %v5472_v46  ;;  %4743 = vmatprep.subr.bf16.mxu1 %v5600_v6  ;;  %v3164_v62 = vld [vmem:[#allocation7 + $0x4b0] sm:$0xff]  ;;  %v5425_v46 = vcombine.low %v3040_v33, %v3044_v53  ;;  %v5553_v6 = vcombine.low %v3168_v57, %v3172_v61  ;;  %v5506_v33 = vcombine.high %v3120_v55, %v3124_v56 }
 0x3d2   :  { %v5546_v50 = vcombine.high %v3160_v5, %v3164_v62  ;;  %v3112_v57 = vld [vmem:[#allocation7 + $0x310] sm:$0xff] }
 0x3d3   :  { %v3116_v61 = vld [vmem:[#allocation7 + $0x330] sm:$0xff] }
 0x3d4   :  { %4703 = vmatpush2.bf16.msra.mxu0 %v5471_v13  ;;  %4744 = vmatpush2.bf16.msra.mxu1 %v5599_v14  ;;  %v3152_v13 = vld [vmem:[#allocation7 + $0x450] sm:$0xff] }
 0x3d5   :  { %4704 = vmatprep.subr.bf16.mxu0 %v5464_v15  ;;  %4745 = vmatprep.subr.bf16.mxu1 %v5592_v18  ;;  %v3156_v14 = vld [vmem:[#allocation7 + $0x470] sm:$0xff]  ;;  %v5417_v15 = vcombine.low %v3032_v4, %v3036_v48  ;;  %v5545_v18 = vcombine.low %v3160_v5, %v3164_v62  ;;  %v5498_v4 = vcombine.high %v3112_v57, %v3116_v61 }
 0x3d6   :  { %v5538_v20 = vcombine.high %v3152_v13, %v3156_v14  ;;  %v3104_v5 = vld [vmem:[#allocation7 + $0x2d0] sm:$0xff] }
 0x3d7   :  { %v3108_v62 = vld [vmem:[#allocation7 + $0x2f0] sm:$0xff] }
 0x3d8   :  { %4705 = vmatpush2.bf16.msra.mxu0 %v5463_v23  ;;  %4746 = vmatpush2.bf16.msra.mxu1 %v5591_v24  ;;  %v3144_v23 = vld [vmem:[#allocation7 + $0x410] sm:$0xff] }
 0x3d9   :  { %4756 = vmatprep.subr.bf16.mxu0 %v5458_v25  ;;  %4797 = vmatprep.subr.bf16.mxu1 %v5586_v26  ;;  %v3148_v24 = vld [vmem:[#allocation7 + $0x430] sm:$0xff]  ;;  %v5409_v25 = vcombine.low %v3024_v11, %v3028_v12  ;;  %v5537_v26 = vcombine.low %v3152_v13, %v3156_v14  ;;  %v5490_v11 = vcombine.high %v3104_v5, %v3108_v62 }
 0x3da   :  { %v5530_v28 = vcombine.high %v3144_v23, %v3148_v24  ;;  %v3096_v13 = vld [vmem:[#allocation7 + $0x290] sm:$0xff] }
 0x3db   :  { %4707 = vmatmul.mubr.bf16.vlgmr.msra.gmra.mxu0 %v6533_v3  ;;  %4748 = vmatmul.mubr.bf16.vlgmr.msra.gmra.mxu1 %v6535_v10  ;;  %v3100_v14 = vld [vmem:[#allocation7 + $0x2b0] sm:$0xff] }
 0x3dc   :  { %4757 = vmatpush1.bf16.msra.mxu0 %v5457_v31  ;;  %4788 = vmatprep.mubr.bf16.mxu0 %v6529_v8  ;;  %v3264_v31 = vld [vmem:[#allocation7 + $0x7d0] sm:$0xff] }
 0x3dd   :  { %4798 = vmatpush1.bf16.msra.mxu1 %v5585_v34  ;;  %4829 = vmatprep.mubr.bf16.mxu1 %v6531_v9  ;;  %v3268_v34 = vld [vmem:[#allocation7 + $0x7f0] sm:$0xff] }
 0x3de   :  { %4758 = vmatprep.subr.bf16.mxu0 %v5450_v35  ;;  %4799 = vmatprep.subr.bf16.mxu1 %v5578_v36  ;;  %v5401_v35 = vcombine.low %v3016_v21, %v3020_v22  ;;  %v5529_v36 = vcombine.low %v3144_v23, %v3148_v24  ;;  %v5650_v38 = vcombine.high %v3264_v31, %v3268_v34  ;;  %v3088_v23 = vld [vmem:[#allocation7 + $0x250] sm:$0xff] }
 0x3df   :  { %v5482_v21 = vcombine.high %v3096_v13, %v3100_v14  ;;  %v3092_v24 = vld [vmem:[#allocation7 + $0x270] sm:$0xff] }
 0x3e0   :  { %4759 = vmatpush1.bf16.msra.mxu0 %v5449_v41  ;;  %v3256_v41 = vld [vmem:[#allocation7 + $0x790] sm:$0xff] }
 0x3e1   :  { %4800 = vmatpush1.bf16.msra.mxu1 %v5577_v42  ;;  %4760 = vmatprep.subr.bf16.mxu0 %v5442_v44  ;;  %v3260_v42 = vld [vmem:[#allocation7 + $0x7b0] sm:$0xff]  ;;  %v5521_v44 = vcombine.low %v3136_v29, %v3140_v30  ;;  %v5474_v29 = vcombine.high %v3088_v23, %v3092_v24 }
 0x3e2   :  { %4801 = vmatprep.subr.bf16.mxu1 %v5570_v51  ;;  %v5649_v51 = vcombine.low %v3264_v31, %v3268_v34  ;;  %v5642_v16 = vcombine.high %v3256_v41, %v3260_v42  ;;  %v3080_v31 = vld [vmem:[#allocation7 + $0x210] sm:$0xff] }
 0x3e3   :  { %v3084_v34 = vld [vmem:[#allocation7 + $0x230] sm:$0xff] }
 0x3e4   :  { %4761 = vmatpush1.bf16.msra.mxu0 %v5441_v58  ;;  %v3248_v58 = vld [vmem:[#allocation7 + $0x750] sm:$0xff] }
 0x3e5   :  { %4802 = vmatpush1.bf16.msra.mxu1 %v5569_v59  ;;  %4762 = vmatprep.subr.bf16.mxu0 %v5434_v32  ;;  %v3252_v59 = vld [vmem:[#allocation7 + $0x770] sm:$0xff]  ;;  %v5513_v32 = vcombine.low %v3128_v39, %v3132_v40  ;;  %v5466_v39 = vcombine.high %v3080_v31, %v3084_v34 }
 0x3e6   :  { %4803 = vmatprep.subr.bf16.mxu1 %v5562_v60  ;;  %v5641_v60 = vcombine.low %v3256_v41, %v3260_v42  ;;  %v5634_v53 = vcombine.high %v3248_v58, %v3252_v59  ;;  %v3073_v41 = vld [vmem:[#allocation7 + $0x1d8] sm:$0xff] }
 0x3e7   :  { %v3077_v42 = vld [vmem:[#allocation7 + $0x1f8] sm:$0xff] }
 0x3e8   :  { %4763 = vmatpush1.bf16.msra.mxu0 %v5433_v63  ;;  %v3240_v63 = vld [vmem:[#allocation7 + $0x710] sm:$0xff] }
 0x3e9   :  { %4804 = vmatpush1.bf16.msra.mxu1 %v5561_v0  ;;  %4764 = vmatprep.subr.bf16.mxu0 %v5426_v1  ;;  %v3244_v0 = vld [vmem:[#allocation7 + $0x730] sm:$0xff]  ;;  %v5505_v1 = vcombine.low %v3120_v55, %v3124_v56  ;;  %v5460_v55 = vcombine.high %v3073_v41, %v3077_v42 }
 0x3ea   :  { %4805 = vmatprep.subr.bf16.mxu1 %v5554_v2  ;;  %v5633_v2 = vcombine.low %v3248_v58, %v3252_v59  ;;  %v5626_v48 = vcombine.high %v3240_v63, %v3244_v0  ;;  %v3065_v58 = vld [vmem:[#allocation7 + $0x198] sm:$0xff] }
 0x3eb   :  { %v3069_v59 = vld [vmem:[#allocation7 + $0x1b8] sm:$0xff] }
 0x3ec   :  { %4765 = vmatpush1.bf16.msra.mxu0 %v5425_v46  ;;  %v3232_v46 = vld [vmem:[#allocation7 + $0x6d0] sm:$0xff] }
 0x3ed   :  { %4806 = vmatpush1.bf16.msra.mxu1 %v5553_v6  ;;  %4766 = vmatprep.subr.bf16.mxu0 %v5418_v7  ;;  %v3236_v6 = vld [vmem:[#allocation7 + $0x6f0] sm:$0xff]  ;;  %v5497_v7 = vcombine.low %v3112_v57, %v3116_v61  ;;  %v5452_v57 = vcombine.high %v3065_v58, %v3069_v59  ;;  %v3057_v61 = vld [vmem:[#allocation7 + $0x158] sm:$0xff] }
 0x3ee   :  { %4807 = vmatprep.subr.bf16.mxu1 %v5546_v50  ;;  %v5625_v50 = vcombine.low %v3240_v63, %v3244_v0  ;;  %v5618_v12 = vcombine.high %v3232_v46, %v3236_v6  ;;  %v3061_v63 = vld [vmem:[#allocation7 + $0x178] sm:$0xff] }
 0x3f0   :  { %4767 = vmatpush1.bf16.msra.mxu0 %v5417_v15  ;;  %v3224_v15 = vld [vmem:[#allocation7 + $0x690] sm:$0xff] }
 0x3f1   :  { %4808 = vmatpush1.bf16.msra.mxu1 %v5545_v18  ;;  %4768 = vmatprep.subr.bf16.mxu0 %v5410_v19  ;;  %v3228_v18 = vld [vmem:[#allocation7 + $0x6b0] sm:$0xff]  ;;  %v5489_v19 = vcombine.low %v3104_v5, %v3108_v62  ;;  %v5444_v5 = vcombine.high %v3057_v61, %v3061_v63 }
 0x3f2   :  { %4809 = vmatprep.subr.bf16.mxu1 %v5538_v20  ;;  %v5617_v20 = vcombine.low %v3232_v46, %v3236_v6  ;;  %v5610_v22 = vcombine.high %v3224_v15, %v3228_v18  ;;  %v3049_v46 = vld [vmem:[#allocation7 + $0x118] sm:$0xff] }
 0x3f3   :  { %v3053_v6 = vld [vmem:[#allocation7 + $0x138] sm:$0xff] }
 0x3f4   :  { %4769 = vmatpush1.bf16.msra.mxu0 %v5409_v25  ;;  %v3216_v25 = vld [vmem:[#allocation7 + $0x650] sm:$0xff] }
 0x3f5   :  { %4810 = vmatpush1.bf16.msra.mxu1 %v5537_v26  ;;  %4770 = vmatprep.subr.bf16.mxu0 %v5402_v27  ;;  %v3220_v26 = vld [vmem:[#allocation7 + $0x670] sm:$0xff]  ;;  %v5481_v27 = vcombine.low %v3096_v13, %v3100_v14  ;;  %v5436_v13 = vcombine.high %v3049_v46, %v3053_v6  ;;  %v3041_v14 = vld [vmem:[#allocation7 + $0xd8] sm:$0xff] }
 0x3f6   :  { %4811 = vmatprep.subr.bf16.mxu1 %v5530_v28  ;;  %v5609_v28 = vcombine.low %v3224_v15, %v3228_v18  ;;  %v5602_v30 = vcombine.high %v3216_v25, %v3220_v26  ;;  %v3045_v15 = vld [vmem:[#allocation7 + $0xf8] sm:$0xff] }
 0x3f7   :  { %v3169_v18 = vld [vmem:[#allocation7 + $0x4d8] sm:$0xff] }
 0x3f8   :  { %4771 = vmatpush1.bf16.msra.mxu0 %v5401_v35  ;;  %v3208_v35 = vld [vmem:[#allocation7 + $0x610] sm:$0xff] }
 0x3f9   :  { %4812 = vmatpush1.bf16.msra.mxu1 %v5529_v36  ;;  %4772 = vmatprep.subr.bf16.mxu0 %v5522_v37  ;;  %v3212_v36 = vld [vmem:[#allocation7 + $0x630] sm:$0xff]  ;;  %v5473_v37 = vcombine.low %v3088_v23, %v3092_v24  ;;  %v3033_v23 = vld [vmem:[#allocation7 + $0x98] sm:$0xff] }
 0x3fa   :  { %4813 = vmatprep.subr.bf16.mxu1 %v5650_v38  ;;  %v5601_v38 = vcombine.low %v3216_v25, %v3220_v26  ;;  %v5594_v40 = vcombine.high %v3208_v35, %v3212_v36  ;;  %v3037_v24 = vld [vmem:[#allocation7 + $0xb8] sm:$0xff] }
 0x3fb   :  { %v3161_v25 = vld [vmem:[#allocation7 + $0x498] sm:$0xff] }
 0x3fc   :  { %4773 = vmatpush2.bf16.msra.mxu0 %v5521_v44  ;;  %v3201_v44 = vld [vmem:[#allocation7 + $0x5d8] sm:$0xff] }
 0x3fd   :  { %4814 = vmatpush2.bf16.msra.mxu1 %v5649_v51  ;;  %4774 = vmatprep.subr.bf16.mxu0 %v5514_v54  ;;  %v3205_v51 = vld [vmem:[#allocation7 + $0x5f8] sm:$0xff]  ;;  %v5465_v54 = vcombine.low %v3080_v31, %v3084_v34 }
 0x3fe   :  { %4815 = vmatprep.subr.bf16.mxu1 %v5642_v16  ;;  %v5593_v16 = vcombine.low %v3208_v35, %v3212_v36  ;;  %v5588_v56 = vcombine.high %v3201_v44, %v3205_v51  ;;  %v3165_v26 = vld [vmem:[#allocation7 + $0x4b8] sm:$0xff] }
 0x3ff   :  { %v3025_v31 = vld [vmem:[#allocation7 + $0x58] sm:$0xff] }
 0x400   :  { %4775 = vmatpush2.bf16.msra.mxu0 %v5513_v32  ;;  %v5459_v32 = vcombine.low %v3073_v41, %v3077_v42  ;;  %v3029_v34 = vld [vmem:[#allocation7 + $0x78] sm:$0xff] }
 0x401   :  { %4816 = vmatpush2.bf16.msra.mxu1 %v5641_v60  ;;  %4776 = vmatprep.subr.bf16.mxu0 %v5506_v33  ;;  %v3193_v60 = vld [vmem:[#allocation7 + $0x598] sm:$0xff] }
 0x402   :  { %4817 = vmatprep.subr.bf16.mxu1 %v5634_v53  ;;  %v3197_v33 = vld [vmem:[#allocation7 + $0x5b8] sm:$0xff]  ;;  %v5587_v53 = vcombine.low %v3201_v44, %v3205_v51 }
 0x403   :  { %v5580_v0 = vcombine.high %v3193_v60, %v3197_v33  ;;  %v3153_v35 = vld [vmem:[#allocation7 + $0x458] sm:$0xff] }
 0x404   :  { %4777 = vmatpush2.bf16.msra.mxu0 %v5505_v1  ;;  %v3185_v1 = vld [vmem:[#allocation7 + $0x558] sm:$0xff] }
 0x405   :  { %4818 = vmatpush2.bf16.msra.mxu1 %v5633_v2  ;;  %4778 = vmatprep.subr.bf16.mxu0 %v5498_v4  ;;  %v3189_v2 = vld [vmem:[#allocation7 + $0x578] sm:$0xff]  ;;  %v5451_v4 = vcombine.low %v3065_v58, %v3069_v59 }
 0x406   :  { %4819 = vmatprep.subr.bf16.mxu1 %v5626_v48  ;;  %v5579_v48 = vcombine.low %v3193_v60, %v3197_v33  ;;  %v5572_v62 = vcombine.high %v3185_v1, %v3189_v2  ;;  %v3157_v36 = vld [vmem:[#allocation7 + $0x478] sm:$0xff] }
 0x407   :  { %v3017_v41 = vld [vmem:[#allocation7 + $0x18] sm:$0xff] }
 0x408   :  { %4779 = vmatpush2.bf16.msra.mxu0 %v5497_v7  ;;  %v3177_v7 = vld [vmem:[#allocation7 + $0x518] sm:$0xff] }
 0x409   :  { %4820 = vmatpush2.bf16.msra.mxu1 %v5625_v50  ;;  %4780 = vmatprep.subr.bf16.mxu0 %v5490_v11  ;;  %v3181_v50 = vld [vmem:[#allocation7 + $0x538] sm:$0xff]  ;;  %v5443_v11 = vcombine.low %v3057_v61, %v3061_v63 }
 0x40a   :  { %4821 = vmatprep.subr.bf16.mxu1 %v5618_v12  ;;  %v5571_v12 = vcombine.low %v3185_v1, %v3189_v2  ;;  %v3021_v42 = vld [vmem:[#allocation7 + $0x38] sm:$0xff] }
 0x40b   :  { %v3145_v44 = vld [vmem:[#allocation7 + $0x418] sm:$0xff]  ;;  %v5403_v33 = vcombine.low %v3017_v41, %v3021_v42 }
 0x40c   :  { %4781 = vmatpush2.bf16.msra.mxu0 %v5489_v19  ;;  %v3173_v19 = vld [vmem:[#allocation7 + $0x4f8] sm:$0xff] }
 0x40d   :  { %4822 = vmatpush2.bf16.msra.mxu1 %v5617_v20  ;;  %4782 = vmatprep.subr.bf16.mxu0 %v5482_v21  ;;  %v5563_v20 = vcombine.low %v3177_v7, %v3181_v50  ;;  %v5428_v21 = vcombine.high %v3041_v14, %v3045_v15  ;;  %v3149_v51 = vld [vmem:[#allocation7 + $0x438] sm:$0xff] }
 0x40e   :  { %4823 = vmatprep.subr.bf16.mxu1 %v5610_v22  ;;  %v5556_v22 = vcombine.high %v3169_v18, %v3173_v19  ;;  %v3137_v58 = vld [vmem:[#allocation7 + $0x3d8] sm:$0xff] }
 0x40f   :  { %v3141_v59 = vld [vmem:[#allocation7 + $0x3f8] sm:$0xff] }
 0x410   :  { %4783 = vmatpush2.bf16.msra.mxu0 %v5481_v27  ;;  %v5427_v27 = vcombine.low %v3041_v14, %v3045_v15  ;;  %v3269_v60 = vld [vmem:[#allocation7 + $0x7f8] sm:$0xff] }
 0x411   :  { %4824 = vmatpush2.bf16.msra.mxu1 %v5609_v28  ;;  %4784 = vmatprep.subr.bf16.mxu0 %v5474_v29  ;;  %v5555_v28 = vcombine.low %v3169_v18, %v3173_v19  ;;  %v5420_v29 = vcombine.high %v3033_v23, %v3037_v24  ;;  %v3129_v63 = vld [vmem:[#allocation7 + $0x398] sm:$0xff] }
 0x412   :  { %4825 = vmatprep.subr.bf16.mxu1 %v5602_v30  ;;  %v5548_v30 = vcombine.high %v3161_v25, %v3165_v26  ;;  %v3257_v1 = vld [vmem:[#allocation7 + $0x798] sm:$0xff] }
 0x413   :  { %v3261_v2 = vld [vmem:[#allocation7 + $0x7b8] sm:$0xff] }
 0x414   :  { %4785 = vmatpush2.bf16.msra.mxu0 %v5473_v37  ;;  %v5419_v37 = vcombine.low %v3033_v23, %v3037_v24  ;;  %v3113_v14 = vld [vmem:[#allocation7 + $0x318] sm:$0xff] }
 0x415   :  { %4826 = vmatpush2.bf16.msra.mxu1 %v5601_v38  ;;  %4786 = vmatprep.subr.bf16.mxu0 %v5466_v39  ;;  %v5547_v38 = vcombine.low %v3161_v25, %v3165_v26  ;;  %v5412_v39 = vcombine.high %v3025_v31, %v3029_v34  ;;  %v3117_v15 = vld [vmem:[#allocation7 + $0x338] sm:$0xff] }
 0x416   :  { %4827 = vmatprep.subr.bf16.mxu1 %v5594_v40  ;;  %v5540_v40 = vcombine.high %v3153_v35, %v3157_v36  ;;  %v3241_v18 = vld [vmem:[#allocation7 + $0x718] sm:$0xff] }
 0x417   :  { %v3245_v19 = vld [vmem:[#allocation7 + $0x738] sm:$0xff] }
 0x418   :  { %4787 = vmatpush2.bf16.msra.mxu0 %v5465_v54  ;;  %v5411_v54 = vcombine.low %v3025_v31, %v3029_v34  ;;  %v3105_v23 = vld [vmem:[#allocation7 + $0x2d8] sm:$0xff] }
 0x419   :  { %4828 = vmatpush2.bf16.msra.mxu1 %v5593_v16  ;;  %4838 = vmatprep.subr.bf16.mxu0 %v5460_v55  ;;  %v5539_v16 = vcombine.low %v3153_v35, %v3157_v36  ;;  %v5404_v55 = vcombine.high %v3017_v41, %v3021_v42  ;;  %v3109_v24 = vld [vmem:[#allocation7 + $0x2f8] sm:$0xff] }
 0x41a   :  { %4879 = vmatprep.subr.bf16.mxu1 %v5588_v56  ;;  %v5532_v56 = vcombine.high %v3145_v44, %v3149_v51  ;;  %v3233_v25 = vld [vmem:[#allocation7 + $0x6d8] sm:$0xff] }
 0x41b   :  { %4789 = vmatmul.mubr.bf16.vlgmr.msra.gmra.mxu0 %v6533_v3  ;;  %v3237_v26 = vld [vmem:[#allocation7 + $0x6f8] sm:$0xff] }
 0x41c   :  { %4830 = vmatmul.mubr.bf16.vlgmr.msra.gmra.mxu1 %v6535_v10  ;;  %4839 = vmatpush1.bf16.msra.mxu0 %v5459_v32  ;;  %v3265_v32 = vld [vmem:[#allocation7 + $0x7d8] sm:$0xff] }
 0x41d   :  { %4870 = vmatprep.mubr.bf16.mxu0 %v6529_v8  ;;  %4880 = vmatpush1.bf16.msra.mxu1 %v5587_v53  ;;  %v5564_v8 = vcombine.high %v3177_v7, %v3181_v50  ;;  %v5531_v53 = vcombine.low %v3145_v44, %v3149_v51  ;;  %v5652_v61 = vcombine.high %v3265_v32, %v3269_v60  ;;  %v3249_v7 = vld [vmem:[#allocation7 + $0x758] sm:$0xff] }
 0x41e   :  { %4911 = vmatprep.mubr.bf16.mxu1 %v6531_v9  ;;  %4840 = vmatprep.subr.bf16.mxu0 %v5452_v57  ;;  %v5435_v9 = vcombine.low %v3049_v46, %v3053_v6  ;;  %v5524_v57 = vcombine.high %v3137_v58, %v3141_v59  ;;  %v3121_v46 = vld [vmem:[#allocation7 + $0x358] sm:$0xff] }
 0x41f   :  { %4881 = vmatprep.subr.bf16.mxu1 %v5580_v0  ;;  %v3133_v0 = vld [vmem:[#allocation7 + $0x3b8] sm:$0xff] }
 0x420   :  { %4841 = vmatpush1.bf16.msra.mxu0 %v5451_v4  ;;  %v5523_v4 = vcombine.low %v3137_v58, %v3141_v59  ;;  %v3125_v6 = vld [vmem:[#allocation7 + $0x378] sm:$0xff] }
 0x421   :  { %4882 = vmatpush1.bf16.msra.mxu1 %v5579_v48  ;;  %4842 = vmatprep.subr.bf16.mxu0 %v5444_v5  ;;  %v5651_v48 = vcombine.low %v3265_v32, %v3269_v60  ;;  %v5516_v5 = vcombine.high %v3129_v63, %v3133_v0  ;;  %v3253_v50 = vld [vmem:[#allocation7 + $0x778] sm:$0xff] }
 0x422   :  { %4883 = vmatprep.subr.bf16.mxu1 %v5572_v62  ;;  %v5644_v62 = vcombine.high %v3257_v1, %v3261_v2  ;;  %v3097_v31 = vld [vmem:[#allocation7 + $0x298] sm:$0xff] }
 0x423   :  { %v3101_v34 = vld [vmem:[#allocation7 + $0x2b8] sm:$0xff] }
 0x424   :  { %4843 = vmatpush1.bf16.msra.mxu0 %v5443_v11  ;;  %v5515_v11 = vcombine.low %v3129_v63, %v3133_v0  ;;  %v3225_v35 = vld [vmem:[#allocation7 + $0x698] sm:$0xff] }
 0x425   :  { %4884 = vmatpush1.bf16.msra.mxu1 %v5571_v12  ;;  %4844 = vmatprep.subr.bf16.mxu0 %v5436_v13  ;;  %v5643_v12 = vcombine.low %v3257_v1, %v3261_v2  ;;  %v5508_v13 = vcombine.high %v3121_v46, %v3125_v6  ;;  %v3229_v36 = vld [vmem:[#allocation7 + $0x6b8] sm:$0xff]  ;;  %v6554_v1 = vld [vmem:[%s6589_s5 + $0xa] sm:$0xff] }
 0x426   :  { %4885 = vmatprep.subr.bf16.mxu1 %v5564_v8  ;;  %v5636_v8 = vcombine.high %v3249_v7, %v3253_v50  ;;  %v3089_v41 = vld [vmem:[#allocation7 + $0x258] sm:$0xff]  ;;  %v3275_v2 = vrot.slane %v6554_v1, %v6486_v45 }
 0x427   :  { %v3093_v42 = vld [vmem:[#allocation7 + $0x278] sm:$0xff] }
 0x428   :  { %4845 = vmatpush1.bf16.msra.mxu0 %v5435_v9  ;;  %v5507_v9 = vcombine.low %v3121_v46, %v3125_v6  ;;  %v3217_v44 = vld [vmem:[#allocation7 + $0x658] sm:$0xff] }
 0x429   :  { %4886 = vmatpush1.bf16.msra.mxu1 %v5563_v20  ;;  %4846 = vmatprep.subr.bf16.mxu0 %v5428_v21  ;;  %v5635_v20 = vcombine.low %v3249_v7, %v3253_v50  ;;  %v5500_v21 = vcombine.high %v3113_v14, %v3117_v15  ;;  %v3221_v51 = vld [vmem:[#allocation7 + $0x678] sm:$0xff] }
 0x42a   :  { %4887 = vmatprep.subr.bf16.mxu1 %v5556_v22  ;;  %v5628_v22 = vcombine.high %v3241_v18, %v3245_v19  ;;  %v3081_v58 = vld [vmem:[#allocation7 + $0x218] sm:$0xff] }
 0x42b   :  { %v3085_v59 = vld [vmem:[#allocation7 + $0x238] sm:$0xff] }
 0x42c   :  { %4847 = vmatpush1.bf16.msra.mxu0 %v5427_v27  ;;  %v5499_v27 = vcombine.low %v3113_v14, %v3117_v15  ;;  %v3209_v32 = vld [vmem:[#allocation7 + $0x618] sm:$0xff]  ;;  %v5467_v63 = vcombine.low %v3081_v58, %v3085_v59 }
 0x42d   :  { %4888 = vmatpush1.bf16.msra.mxu1 %v5555_v28  ;;  %4848 = vmatprep.subr.bf16.mxu0 %v5420_v29  ;;  %v5627_v28 = vcombine.low %v3241_v18, %v3245_v19  ;;  %v5492_v29 = vcombine.high %v3105_v23, %v3109_v24  ;;  %v3213_v60 = vld [vmem:[#allocation7 + $0x638] sm:$0xff] }
 0x42e   :  { %4889 = vmatprep.subr.bf16.mxu1 %v5548_v30  ;;  %v5620_v30 = vcombine.high %v3233_v25, %v3237_v26  ;;  %v5595_v0 = vcombine.low %v3209_v32, %v3213_v60 }
 0x430   :  { %4849 = vmatpush1.bf16.msra.mxu0 %v5419_v37  ;;  %v5491_v37 = vcombine.low %v3105_v23, %v3109_v24  ;;  %v3283_v23 = vrot.slane %v6554_v1, %v6507_v52  ;;  %v3287_v24 = vrot.slane %v6554_v1, %v6510_v17 }
 0x431   :  { %4890 = vmatpush1.bf16.msra.mxu1 %v5547_v38  ;;  %4850 = vmatprep.subr.bf16.mxu0 %v5412_v39  ;;  %v5619_v38 = vcombine.low %v3233_v25, %v3237_v26  ;;  %v5484_v39 = vcombine.high %v3097_v31, %v3101_v34 }
 0x432   :  { %4891 = vmatprep.subr.bf16.mxu1 %v5540_v40  ;;  %v5612_v40 = vcombine.high %v3225_v35, %v3229_v36 }
 0x434   :  { %4851 = vmatpush1.bf16.msra.mxu0 %v5411_v54  ;;  %v5483_v54 = vcombine.low %v3097_v31, %v3101_v34 }
 0x435   :  { %4892 = vmatpush1.bf16.msra.mxu1 %v5539_v16  ;;  %4852 = vmatprep.subr.bf16.mxu0 %v5404_v55  ;;  %v5611_v16 = vcombine.low %v3225_v35, %v3229_v36  ;;  %v5476_v55 = vcombine.high %v3089_v41, %v3093_v42 }
 0x436   :  { %4893 = vmatprep.subr.bf16.mxu1 %v5532_v56  ;;  %v5604_v56 = vcombine.high %v3217_v44, %v3221_v51 }
 0x438   :  { %4853 = vmatpush1.bf16.msra.mxu0 %v5403_v33  ;;  %v5475_v33 = vcombine.low %v3089_v41, %v3093_v42 }
 0x439   :  { %4894 = vmatpush1.bf16.msra.mxu1 %v5531_v53  ;;  %4854 = vmatprep.subr.bf16.mxu0 %v5524_v57  ;;  %v5603_v53 = vcombine.low %v3217_v44, %v3221_v51  ;;  %v5468_v57 = vcombine.high %v3081_v58, %v3085_v59 }
 0x43a   :  { %4895 = vmatprep.subr.bf16.mxu1 %v5652_v61  ;;  %v5596_v61 = vcombine.high %v3209_v32, %v3213_v60  ;;  %v3290_v32 = vsub.s32 4, %v6418_v43  ;;  %v3294_v60 = vsub.s32 5, %v6418_v43 }
 0x43c   :  { %4855 = vmatpush2.bf16.msra.mxu0 %v5523_v4  ;;  %v3279_v4 = vrot.slane %v6554_v1, %v6494_v47 }
 0x43d   :  { %4896 = vmatpush2.bf16.msra.mxu1 %v5651_v48  ;;  %4856 = vmatprep.subr.bf16.mxu0 %v5516_v5 }
 0x43e   :  { %4897 = vmatprep.subr.bf16.mxu1 %v5644_v62 }
 0x440   :  { %4857 = vmatpush2.bf16.msra.mxu0 %v5515_v11 }
 0x441   :  { %4898 = vmatpush2.bf16.msra.mxu1 %v5643_v12  ;;  %4858 = vmatprep.subr.bf16.mxu0 %v5508_v13 }
 0x442   :  { %4899 = vmatprep.subr.bf16.mxu1 %v5636_v8 }
 0x444   :  { %4859 = vmatpush2.bf16.msra.mxu0 %v5507_v9 }
 0x445   :  { %4900 = vmatpush2.bf16.msra.mxu1 %v5635_v20  ;;  %4860 = vmatprep.subr.bf16.mxu0 %v5500_v21 }
 0x446   :  { %4901 = vmatprep.subr.bf16.mxu1 %v5628_v22 }
 0x448   :  { %4861 = vmatpush2.bf16.msra.mxu0 %v5499_v27 }
 0x449   :  { %4902 = vmatpush2.bf16.msra.mxu1 %v5627_v28  ;;  %4862 = vmatprep.subr.bf16.mxu0 %v5492_v29 }
 0x44a   :  { %4903 = vmatprep.subr.bf16.mxu1 %v5620_v30 }
 0x44c   :  { %4863 = vmatpush2.bf16.msra.mxu0 %v5491_v37 }
 0x44d   :  { %4904 = vmatpush2.bf16.msra.mxu1 %v5619_v38  ;;  %4864 = vmatprep.subr.bf16.mxu0 %v5484_v39 }
 0x44e   :  { %4905 = vmatprep.subr.bf16.mxu1 %v5612_v40 }
 0x450   :  { %4865 = vmatpush2.bf16.msra.mxu0 %v5483_v54 }
 0x451   :  { %4906 = vmatpush2.bf16.msra.mxu1 %v5611_v16  ;;  %4866 = vmatprep.subr.bf16.mxu0 %v5476_v55 }
 0x452   :  { %4907 = vmatprep.subr.bf16.mxu1 %v5604_v56 }
 0x454   :  { %4867 = vmatpush2.bf16.msra.mxu0 %v5475_v33  ;;  %v3291_v33 = vrot.slane %v6554_v1, %v3290_v32 }
 0x455   :  { %4908 = vmatpush2.bf16.msra.mxu1 %v5603_v53  ;;  %4868 = vmatprep.subr.bf16.mxu0 %v5468_v57  ;;  %v3295_v53 = vrot.slane %v6554_v1, %v3294_v60 }
 0x456   :  { %4909 = vmatprep.subr.bf16.mxu1 %v5596_v61 }
 0x458   :  { %4869 = vmatpush2.bf16.msra.mxu0 %v5467_v63 }
 0x459   :  { %4910 = vmatpush2.bf16.msra.mxu1 %v5595_v0 }
 0x45b   :  { %4871 = vmatmul.mubr.bf16.vlgmr.msra.gmra.mxu0 %v6533_v3  ;;  %v4626_v48 = vpop.f32.mrf.mxu0  ;;  %v4667_v5 = vpop.f32.mrf.mxu1 }
 0x45c   :  { %4912 = vmatmul.mubr.bf16.vlgmr.msra.gmra.mxu1 %v6535_v10  ;;  %v4627_v62 = vadd.f32 %v4626_v48, %v3275_v2 }
 0x45d   :  { %v4628_v46 = vpop.f32.mrf.mxu0  ;;  %v4669_v6 = vpop.f32.mrf.mxu1 }
 0x45e   :  { %v4668_v7 = vadd.f32 %v4667_v5, %v4627_v62  ;;  %v4629_v50 = vadd.f32 %v4628_v46, %v3279_v4 }
 0x45f   :  { %v4630_v11 = vpop.f32.mrf.mxu0  ;;  %v4671_v12 = vpop.f32.mrf.mxu1 }
 0x460   :  { %v4920_v13 = vsub.f32 0.0, %v4668_v7  ;;  %v4670_v8 = vadd.f32 %v4669_v6, %v4629_v50 }
 0x461   :  { %v4631_v45 = vpop.f32.mrf.mxu0  ;;  %v4672_v14 = vpop.f32.mrf.mxu1 }
 0x462   :  { %v4928_v15 = vmul.f32 1.442695, %v4920_v13  ;;  %v4921_v18 = vsub.f32 0.0, %v4670_v8 }
 0x464   :  { %6242 = vpow2.f32 %v4928_v15  ;;  %v4930_v47 = vmul.f32 1.442695, %v4921_v18 }
 0x466   :  { %6244 = vpow2.f32 %v4930_v47 }
 0x471   :  { %v6243_v3 = vpop.eup %6242 }
 0x472   :  { %v4944_v19 = vadd.f32 1.0, %v6243_v3 }
 0x473   :  { %v6245_v9 = vpop.eup %6244 }
 0x474   :  { %v4945_v10 = vadd.f32 1.0, %v6245_v9  ;;  %6246 = vrcp.f32 %v4944_v19  ;;  %v3298_v19 = vsub.s32 6, %v6418_v43  ;;  %v3302_v9 = vsub.s32 7, %v6418_v43 }
 0x476   :  { %6248 = vrcp.f32 %v4945_v10  ;;  %v3299_v10 = vrot.slane %v6554_v1, %v3298_v19 }
 0x481   :  { %v6247_v20 = vpop.eup %6246 }
 0x483   :  { %v6249_v21 = vpop.eup %6248 }
 0x484   :  { %v4968_v22 = vcombine.low %v6247_v20, %v6249_v21  ;;  %v3303_v20 = vrot.slane %v6554_v1, %v3302_v9 }
 0x486   :  { %v4976_v56 = vrot.slane %v4968_v22, %v6421_v49 }
 0x49b   :  { %v4708_v25 = vpop.f32.mrf.mxu0  ;;  %v4749_v26 = vpop.f32.mrf.mxu1 }
 0x49c   :  { %v4709_v27 = vadd.f32 %v4708_v25, %v3283_v23 }
 0x49d   :  { %v4710_v28 = vpop.f32.mrf.mxu0  ;;  %v4751_v29 = vpop.f32.mrf.mxu1 }
 0x49e   :  { %v4750_v30 = vadd.f32 %v4749_v26, %v4709_v27  ;;  %v4711_v31 = vadd.f32 %v4710_v28, %v3287_v24 }
 0x49f   :  { %v4712_v34 = vpop.f32.mrf.mxu0  ;;  %v4753_v35 = vpop.f32.mrf.mxu1 }
 0x4a0   :  { %v4922_v36 = vsub.f32 0.0, %v4750_v30  ;;  %v4752_v37 = vadd.f32 %v4751_v29, %v4711_v31 }
 0x4a1   :  { %v4713_v38 = vpop.f32.mrf.mxu0  ;;  %v4754_v39 = vpop.f32.mrf.mxu1 }
 0x4a2   :  { %v4932_v40 = vmul.f32 1.442695, %v4922_v36  ;;  %v4923_v41 = vsub.f32 0.0, %v4752_v37 }
 0x4a4   :  { %6250 = vpow2.f32 %v4932_v40  ;;  %v4934_v52 = vmul.f32 1.442695, %v4923_v41 }
 0x4a6   :  { %6252 = vpow2.f32 %v4934_v52 }
 0x4b1   :  { %v6251_v42 = vpop.eup %6250 }
 0x4b2   :  { %v4946_v17 = vadd.f32 1.0, %v6251_v42 }
 0x4b3   :  { %v6253_v44 = vpop.eup %6252 }
 0x4b4   :  { %v4947_v51 = vadd.f32 1.0, %v6253_v44  ;;  %6254 = vrcp.f32 %v4946_v17 }
 0x4b6   :  { %6256 = vrcp.f32 %v4947_v51 }
 0x4c1   :  { %v6255_v54 = vpop.eup %6254 }
 0x4c3   :  { %v6257_v16 = vpop.eup %6256 }
 0x4c4   :  { %v4969_v55 = vcombine.low %v6255_v54, %v6257_v16 }
 0x4c6   :  { %v4983_v58 = vrot.slane %v4969_v55, %v6421_v49 }
 0x4c8   :  { %v4984_v59 = vcombine.low %v4976_v56, %v4983_v58 }
 0x4ca   :  { %5004 = vst [vmem:[%s6590_s6] sm:$0xff] %v4984_v59 }
 0x4db   :  { %v4790_v57 = vpop.f32.mrf.mxu0 }
 0x4dc   :  { %v4791_v61 = vadd.f32 %v4790_v57, %v3291_v33  ;;  %v4831_v63 = vpop.f32.mrf.mxu1 }
 0x4dd   :  { %v4792_v0 = vpop.f32.mrf.mxu0 }
 0x4de   :  { %v4832_v2 = vadd.f32 %v4831_v63, %v4791_v61  ;;  %v4793_v4 = vadd.f32 %v4792_v0, %v3295_v53  ;;  %v4833_v48 = vpop.f32.mrf.mxu1 }
 0x4df   :  { %v4794_v5 = vpop.f32.mrf.mxu0 }
 0x4e0   :  { %v4924_v62 = vsub.f32 0.0, %v4832_v2  ;;  %v4834_v46 = vadd.f32 %v4833_v48, %v4793_v4  ;;  %v4835_v6 = vpop.f32.mrf.mxu1 }
 0x4e1   :  { %v4795_v7 = vpop.f32.mrf.mxu0 }
 0x4e2   :  { %v4936_v50 = vmul.f32 1.442695, %v4924_v62  ;;  %v4925_v11 = vsub.f32 0.0, %v4834_v46  ;;  %v4836_v12 = vpop.f32.mrf.mxu1 }
 0x4e4   :  { %6258 = vpow2.f32 %v4936_v50  ;;  %v4938_v13 = vmul.f32 1.442695, %v4925_v11 }
 0x4e6   :  { %6260 = vpow2.f32 %v4938_v13 }
 0x4f1   :  { %v6259_v8 = vpop.eup %6258 }
 0x4f2   :  { %v4948_v45 = vadd.f32 1.0, %v6259_v8 }
 0x4f3   :  { %v6261_v14 = vpop.eup %6260 }
 0x4f4   :  { %v4949_v15 = vadd.f32 1.0, %v6261_v14  ;;  %6262 = vrcp.f32 %v4948_v45 }
 0x4f6   :  { %6264 = vrcp.f32 %v4949_v15 }
 0x501   :  { %v6263_v18 = vpop.eup %6262 }
 0x503   :  { %v6265_v47 = vpop.eup %6264 }
 0x504   :  { %v4985_v3 = vcombine.low %v6263_v18, %v6265_v47 }
 0x506   :  { %v4993_v17 = vrot.slane %v4985_v3, %v6421_v49 }
 0x51b   :  { %v4872_v21 = vpop.f32.mrf.mxu0 }
 0x51c   :  { %v4873_v22 = vadd.f32 %v4872_v21, %v3299_v10  ;;  %v4913_v23 = vpop.f32.mrf.mxu1 }
 0x51d   :  { %v4874_v24 = vpop.f32.mrf.mxu0 }
 0x51e   :  { %v4914_v25 = vadd.f32 %v4913_v23, %v4873_v22  ;;  %v4875_v26 = vadd.f32 %v4874_v24, %v3303_v20  ;;  %v4915_v27 = vpop.f32.mrf.mxu1 }
 0x51f   :  { %v4876_v28 = vpop.f32.mrf.mxu0 }
 0x520   :  { %v4926_v29 = vsub.f32 0.0, %v4914_v25  ;;  %v4916_v30 = vadd.f32 %v4915_v27, %v4875_v26  ;;  %v4917_v31 = vpop.f32.mrf.mxu1 }
 0x521   :  { %v4877_v34 = vpop.f32.mrf.mxu0 }
 0x522   :  { %v4940_v35 = vmul.f32 1.442695, %v4926_v29  ;;  %v4927_v36 = vsub.f32 0.0, %v4916_v30  ;;  %v4918_v37 = vpop.f32.mrf.mxu1 }
 0x524   :  { %6266 = vpow2.f32 %v4940_v35  ;;  %v4942_v43 = vmul.f32 1.442695, %v4927_v36 }
 0x526   :  { %6268 = vpow2.f32 %v4942_v43 }
 0x531   :  { %v6267_v38 = vpop.eup %6266 }
 0x532   :  { %v4950_v1 = vadd.f32 1.0, %v6267_v38 }
 0x533   :  { %v6269_v39 = vpop.eup %6268 }
 0x534   :  { %v4951_v40 = vadd.f32 1.0, %v6269_v39  ;;  %6270 = vrcp.f32 %v4950_v1 }
 0x536   :  { %6272 = vrcp.f32 %v4951_v40 }
 0x541   :  { %v6271_v41 = vpop.eup %6270 }
 0x543   :  { %v6273_v52 = vpop.eup %6272 }
 0x544   :  { %v4986_v42 = vcombine.low %v6271_v41, %v6273_v52 }
 0x546   :  { %v5000_v44 = vrot.slane %v4986_v42, %v6421_v49 }
 0x548   :  { %v5001_v51 = vcombine.low %v4993_v17, %v5000_v44 }
 0x54a   :  { %5005 = vst [vmem:[%s6590_s6 + $0x8] sm:$0xff] %v5001_v51 }
 0x54b   :  { %5010 = vsyncpa [#allocation3], 1 }
 0x54c   :  { %5011 = vsyncpa [#allocation5], 1 }
 0x54d   :  { %5012 = vsyncpa [#allocation8], 1 }

</bundles_post_ra>
